<compile_context>
chip_gen: v5e
topology: v5e:2x2
jax: 0.10.0
libtpu: 0.0.40
codegen_flags: <defaults>
</compile_context>

<pallas_src>
import functools

import jax
import jax.numpy as jnp
from jax.experimental import pallas as pl
from jax.experimental.pallas import tpu as pltpu


# ----------------------------- fused Pallas kernel --------------------------

def _qofmu_fused_kernel(
    p1_ref,      # (B*OH1*OW1, C*KH1*KW1) f32  conv1 im2col patches (raw pixels)
    w1_ref,      # (C*KH1*KW1, OC1)       f32  conv1 weight (norm folded in)
    b1_ref,      # (1, OC1)               f32  conv1 bias   (norm folded in)
    w2_ref,      # (KH2*KW2*OC1, OC2)     f32  conv2 weight, K-order (ki, kj, c1)
    b2_ref,      # (1, OC2)               f32
    act_ref,     # (B, A)                 f32
    wf1c_ref,    # (OH2*OW2*OC2, FC)      f32  fc1 weight, conv-feature columns
    wf1a_ref,    # (A, FC)                f32  fc1 weight, action columns
    bf1_ref,     # (1, FC)                f32
    wf2_ref,     # (1, FC)                f32
    bf2_ref,     # (1, 1)                 f32
    q_ref,       # (B, 1)                 f32  output
    out1_ref,    # scratch (B*OH1*OW1, OC1)
    p2_ref,      # scratch (B*OH2*OW2, KH2*KW2*OC1)
    out2_ref,    # scratch (B*OH2*OW2, OC2)
    f1in_ref,    # scratch (B, OH2*OW2*OC2)
    *, batch, oh1, ow1, oh2, ow2, kh2, kw2, s2):
    oc1 = out1_ref.shape[1]
    oc2 = out2_ref.shape[1]
    npos = oh2 * ow2

    # conv1: one K=256 MXU matmul + bias + ReLU (normalization pre-folded).
    h1 = jnp.dot(p1_ref[...], w1_ref[...], preferred_element_type=jnp.float32)
    out1_ref[...] = jnp.maximum(h1 + b1_ref[...], 0.0)

    # conv2 im2col entirely in VMEM: each conv2 output pixel gathers KH2*KW2
    # rows of conv1's (row=(b,i,j), col=c1) output into one K=256 patch row,
    # K-order (ki, kj, c1).  All indices static -> plain masked vld/vst pairs.
    for b in range(batch):
        for oi in range(oh2):
            for oj in range(ow2):
                m2 = (b * oh2 + oi) * ow2 + oj
                rbase = b * oh1 * ow1 + (oi * s2) * ow1 + oj * s2
                for ki in range(kh2):
                    for kj in range(kw2):
                        r = rbase + ki * ow1 + kj
                        k0 = (ki * kw2 + kj) * oc1
                        p2_ref[m2:m2 + 1, k0:k0 + oc1] = out1_ref[r:r + 1, :]

    # conv2: one K=256 MXU matmul + bias + ReLU.
    h2 = jnp.dot(p2_ref[...], w2_ref[...], preferred_element_type=jnp.float32)
    out2_ref[...] = jnp.maximum(h2 + b2_ref[...], 0.0)

    # Per-sample flatten of conv2's output (fc1's conv-part weight was permuted
    # to the matching (pos, channel) column order in the wrapper).
    for b in range(batch):
        for p in range(npos):
            r = b * npos + p
            f1in_ref[b:b + 1, p * oc2:(p + 1) * oc2] = out2_ref[r:r + 1, :]

    # fc1: conv-feature contraction (K=128) + action contraction (K=A) + bias,
    # ReLU.  Replaces the XLA concatenate and the padded K=260 matmul.
    h3 = (jnp.dot(f1in_ref[...], wf1c_ref[...], preferred_element_type=jnp.float32)
          + jnp.dot(act_ref[...], wf1a_ref[...], preferred_element_type=jnp.float32)
          + bf1_ref[...])
    h3 = jnp.maximum(h3, 0.0)

    # fc2 (output width 1): elementwise multiply + lane reduction instead of a
    # degenerate 1-wide MXU matmul.
    q_ref[...] = jnp.sum(h3 * wf2_ref[...], axis=1, keepdims=True) + bf2_ref[...]


# ------------------------------ JAX wrapper ----------------------------------

def _conv1_patches(obs_u8, kh, kw, s):
    """im2col for conv1 (stride divides kernel): a handful of cheap XLA
    reshape/transpose/shift ops on the tiny uint8 image; the f32 cast is fused
    into the same copy fusion.

    Returns (B*OH*OW, KH*KW*C) f32 patches with K-order (di, dj, c, r, q) where
    ki = s*di + r, kj = s*dj + q.  conv1's weight is permuted to match.
    """
    b, c, h, w = obs_u8.shape
    assert h % s == 0 and w % s == 0 and kh % s == 0 and kw % s == 0
    oh = (h - kh) // s + 1
    ow = (w - kw) // s + 1
    dh, dw = kh // s, kw // s
    x = obs_u8.astype(jnp.float32)
    blocks = x.reshape(b, c, h // s, s, w // s, s).transpose(0, 2, 4, 1, 3, 5)
    # blocks[b, I, J, c, r, q] = x[b, c, s*I + r, s*J + q]
    shards = [blocks[:, di:di + oh, dj:dj + ow]
              for di in range(dh) for dj in range(dw)]
    p = jnp.stack(shards, axis=3)            # (B, OH, OW, dh*dw, C, s, s)
    return p.reshape(b * oh * ow, kh * kw * c), oh, ow


@jax.jit
def qofmu_forward(params, observation_u8, action):
    """observation_u8: (B, C, H, W) uint8; action: (B, A). Returns q: (B,)."""
    # TODO(synk): only lead_dim=1 (batch-only) handling; T x B leading dims from
    # infer_leading_dims collapse to the same flat batch.
    w1, b1 = params["conv1_w"], params["conv1_b"]
    w2, b2 = params["conv2_w"], params["conv2_b"]
    fw1, fb1 = params["fc1_w"], params["fc1_b"]
    fw2, fb2 = params["fc2_w"], params["fc2_b"]

    bsz = observation_u8.shape[0]
    oc1, c_in, kh1, kw1 = w1.shape
    oc2, _, kh2, kw2 = w2.shape
    s1, s2 = 4, 2
    fc = fw1.shape[0]

    patches1, oh1, ow1 = _conv1_patches(observation_u8, kh1, kw1, s1)
    oh2 = (oh1 - kh2) // s2 + 1
    ow2 = (ow1 - kw2) // s2 + 1
    npos = oh2 * ow2
    conv_flat = oc2 * npos

    # ---- parameter prep (tiny jnp ops, fused by XLA) ----
    dh, dw = kh1 // s1, kw1 // s1
    # conv1 weight permuted to the patch K-order (di, dj, c, r, q), scale folded.
    w1m = w1.reshape(oc1, c_in, dh, s1, dw, s1).transpose(2, 4, 1, 3, 5, 0)
    w1m = (2.0 / 255.0) * w1m.reshape(kh1 * kw1 * c_in, oc1)
    b1f = (b1 - jnp.sum(w1, axis=(1, 2, 3))).reshape(1, oc1)   # folds the "-1" shift

    w2m = w2.transpose(2, 3, 1, 0).reshape(kh2 * kw2 * oc1, oc2)   # K-order (ki,kj,c1)
    b2r = b2.reshape(1, oc2)

    # fc1 weight split: conv-feature part re-ordered to (pos, channel) rows;
    # action part separate (avoids the XLA concat and the K=260 pad).
    wf1c = (fw1[:, :conv_flat].reshape(fc, oc2, npos)
            .transpose(2, 1, 0).reshape(conv_flat, fc))
    wf1a = fw1[:, conv_flat:].T
    bf1r = fb1.reshape(1, fc)
    wf2r = fw2.reshape(1, fc)
    bf2r = fb2.reshape(1, 1)

    act = action.reshape(bsz, -1).astype(jnp.float32)

    kernel = functools.partial(
        _qofmu_fused_kernel,
        batch=bsz, oh1=oh1, ow1=ow1, oh2=oh2, ow2=ow2,
        kh2=kh2, kw2=kw2, s2=s2)

    q = pl.pallas_call(
        kernel,
        out_shape=jax.ShapeDtypeStruct((bsz, 1), jnp.float32),
        # No grid: the whole problem (<1 MiB) is VMEM-resident for a single
        # invocation; default full-array VMEM specs for every operand.
        # TODO(synk): for large batches, add a batch grid axis marked
        # "parallel" so v7x's two TensorCores split the work.
        scratch_shapes=[
            pltpu.VMEM((bsz * oh1 * ow1, oc1), jnp.float32),         # conv1 out
            pltpu.VMEM((bsz * npos, kh2 * kw2 * oc1), jnp.float32),  # conv2 patches
            pltpu.VMEM((bsz * npos, oc2), jnp.float32),              # conv2 out
            pltpu.VMEM((bsz, conv_flat), jnp.float32),               # fc1 conv input
        ],
    )(patches1, w1m, b1f, w2m, b2r, act, wf1c, wf1a, bf1r, wf2r, bf2r)
    return q[:, 0]


# -------------------------- reference (pure JAX) ----------------------------

def ref_forward(params, observation_u8, action):
    img = 2.0 * (observation_u8.astype(jnp.float32) / 255.0) - 1.0
    dn = ("NCHW", "OIHW", "NCHW")
    h = jax.lax.conv_general_dilated(img, params["conv1_w"], (4, 4), "VALID",
                                     dimension_numbers=dn)
    h = jnp.maximum(h + params["conv1_b"][None, :, None, None], 0.0)
    h = jax.lax.conv_general_dilated(h, params["conv2_w"], (2, 2), "VALID",
                                     dimension_numbers=dn)
    h = jnp.maximum(h + params["conv2_b"][None, :, None, None], 0.0)
    b = observation_u8.shape[0]
    q_in = jnp.concatenate([h.reshape(b, -1), action.reshape(b, -1)], axis=1)
    hh = jnp.maximum(q_in @ params["fc1_w"].T + params["fc1_b"], 0.0)
    q = hh @ params["fc2_w"].T + params["fc2_b"]
    return q.squeeze(-1)


# --------------------------------- main --------------------------------------

if __name__ == "__main__":
    # Module defaults: channels=[16,32], kernels=[8,4], strides=[4,2], pads=[0,0]
    C, H, W = 4, 32, 32
    ACTION_SIZE = 4
    FC = 256
    B = 2

    # conv output sizes: (32-8)//4+1 = 7 ; (7-4)//2+1 = 2  -> conv_out_size = 32*2*2
    conv_out_size = 32 * 2 * 2
    mlp_in = conv_out_size + ACTION_SIZE

    key = jax.random.PRNGKey(0)
    ks = jax.random.split(key, 10)
    params = {
        "conv1_w": 0.05 * jax.random.normal(ks[0], (16, C, 8, 8), jnp.float32),
        "conv1_b": 0.01 * jax.random.normal(ks[1], (16,), jnp.float32),
        "conv2_w": 0.05 * jax.random.normal(ks[2], (32, 16, 4, 4), jnp.float32),
        "conv2_b": 0.01 * jax.random.normal(ks[3], (32,), jnp.float32),
        "fc1_w": 0.05 * jax.random.normal(ks[4], (FC, mlp_in), jnp.float32),
        "fc1_b": 0.01 * jax.random.normal(ks[5], (FC,), jnp.float32),
        "fc2_w": 0.05 * jax.random.normal(ks[6], (1, FC), jnp.float32),
        "fc2_b": 0.01 * jax.random.normal(ks[7], (1,), jnp.float32),
    }

    observation = jax.random.randint(
        ks[8], (B, C, H, W), 0, 256, dtype=jnp.int32).astype(jnp.uint8)
    action = jax.random.normal(ks[9], (B, ACTION_SIZE), jnp.float32)

    q = qofmu_forward(params, observation, action)
    q = jax.block_until_ready(q)

    q_ref = ref_forward(params, observation, action)
    assert q.shape == (B,)
    assert jnp.allclose(q, q_ref, atol=5e-4, rtol=5e-4), (q, q_ref)

    print("KERNEL_OK")
</pallas_src>

<mosaic_0001>
module attributes {stable_mosaic.version = 11 : i64} {
  func.func @_qofmu_fused_kernel(%arg0: memref<98x256xf32, #tpu.memory_space<vmem>>, %arg1: memref<256x16xf32, #tpu.memory_space<vmem>>, %arg2: memref<1x16xf32, #tpu.memory_space<vmem>>, %arg3: memref<256x32xf32, #tpu.memory_space<vmem>>, %arg4: memref<1x32xf32, #tpu.memory_space<vmem>>, %arg5: memref<2x4xf32, #tpu.memory_space<vmem>>, %arg6: memref<128x256xf32, #tpu.memory_space<vmem>>, %arg7: memref<4x256xf32, #tpu.memory_space<vmem>>, %arg8: memref<1x256xf32, #tpu.memory_space<vmem>>, %arg9: memref<1x256xf32, #tpu.memory_space<vmem>>, %arg10: memref<1x1xf32, #tpu.memory_space<vmem>>, %arg11: memref<2x1xf32, #tpu.memory_space<vmem>>, %arg12: memref<98x16xf32, #tpu.memory_space<vmem>>, %arg13: memref<8x256xf32, #tpu.memory_space<vmem>>, %arg14: memref<8x32xf32, #tpu.memory_space<vmem>>, %arg15: memref<2x128xf32, #tpu.memory_space<vmem>>) attributes {dimension_semantics = [], scalar_prefetch = 0 : i64, scratch_operands = 4 : i64, tpu.core_type = #tpu.core_type<tc>} {
    %c0 = arith.constant 0 : index
    %c0_0 = arith.constant 0 : index
    %0 = vector.load %arg0[%c0, %c0_0] : memref<98x256xf32, #tpu.memory_space<vmem>>, vector<98x256xf32>
    %c0_1 = arith.constant 0 : index
    %c0_2 = arith.constant 0 : index
    %1 = vector.load %arg1[%c0_1, %c0_2] : memref<256x16xf32, #tpu.memory_space<vmem>>, vector<256x16xf32>
    %cst = arith.constant dense<0.000000e+00> : vector<98x16xf32>
    %2 = tpu.matmul %0, %1, %cst {dimension_numbers = #tpu.dot_dimension_numbers<[1], [0], [0], [1], [0, 0, 1, 1], [], []>} : vector<98x256xf32>, vector<256x16xf32>, vector<98x16xf32> -> vector<98x16xf32>
    %c0_3 = arith.constant 0 : index
    %c0_4 = arith.constant 0 : index
    %3 = vector.load %arg2[%c0_3, %c0_4] : memref<1x16xf32, #tpu.memory_space<vmem>>, vector<1x16xf32>
    %4 = vector.broadcast %3 : vector<1x16xf32> to vector<98x16xf32>
    %5 = arith.addf %2, %4 : vector<98x16xf32>
    %cst_5 = arith.constant 0.000000e+00 : f32
    %6 = vector.broadcast %cst_5 : f32 to vector<98x16xf32>
    %7 = arith.maximumf %5, %6 : vector<98x16xf32>
    %c0_6 = arith.constant 0 : index
    %c0_7 = arith.constant 0 : index
    %8 = vector.load %arg12[%c0_6, %c0_7] : memref<98x16xf32, #tpu.memory_space<vmem>>, vector<98x16xf32>
    tpu.vector_store %arg12[%c0_6, %c0_7], %7 {strides = array<i32>} : memref<98x16xf32, #tpu.memory_space<vmem>>, vector<98x16xf32>,
    %c0_8 = arith.constant 0 : index
    %c0_9 = arith.constant 0 : index
    %9 = vector.load %arg12[%c0_8, %c0_9] : memref<98x16xf32, #tpu.memory_space<vmem>>, vector<1x16xf32>
    %c0_10 = arith.constant 0 : index
    %c0_11 = arith.constant 0 : index
    %10 = vector.load %arg13[%c0_10, %c0_11] : memref<8x256xf32, #tpu.memory_space<vmem>>, vector<1x16xf32>
    tpu.vector_store %arg13[%c0_10, %c0_11], %9 {strides = array<i32>} : memref<8x256xf32, #tpu.memory_space<vmem>>, vector<1x16xf32>,
    %c1 = arith.constant 1 : index
    %c0_12 = arith.constant 0 : index
    %11 = vector.load %arg12[%c1, %c0_12] : memref<98x16xf32, #tpu.memory_space<vmem>>, vector<1x16xf32>
    %c0_13 = arith.constant 0 : index
    %c16 = arith.constant 16 : index
    %12 = vector.load %arg13[%c0_13, %c16] : memref<8x256xf32, #tpu.memory_space<vmem>>, vector<1x16xf32>
    tpu.vector_store %arg13[%c0_13, %c16], %11 {strides = array<i32>} : memref<8x256xf32, #tpu.memory_space<vmem>>, vector<1x16xf32>,
    %c2 = arith.constant 2 : index
    %c0_14 = arith.constant 0 : index
    %13 = vector.load %arg12[%c2, %c0_14] : memref<98x16xf32, #tpu.memory_space<vmem>>, vector<1x16xf32>
    %c0_15 = arith.constant 0 : index
    %c32 = arith.constant 32 : index
    %14 = vector.load %arg13[%c0_15, %c32] : memref<8x256xf32, #tpu.memory_space<vmem>>, vector<1x16xf32>
    tpu.vector_store %arg13[%c0_15, %c32], %13 {strides = array<i32>} : memref<8x256xf32, #tpu.memory_space<vmem>>, vector<1x16xf32>,
    %c3 = arith.constant 3 : index
    %c0_16 = arith.constant 0 : index
    %15 = vector.load %arg12[%c3, %c0_16] : memref<98x16xf32, #tpu.memory_space<vmem>>, vector<1x16xf32>
    %c0_17 = arith.constant 0 : index
    %c48 = arith.constant 48 : index
    %16 = vector.load %arg13[%c0_17, %c48] : memref<8x256xf32, #tpu.memory_space<vmem>>, vector<1x16xf32>
    tpu.vector_store %arg13[%c0_17, %c48], %15 {strides = array<i32>} : memref<8x256xf32, #tpu.memory_space<vmem>>, vector<1x16xf32>,
    %c7 = arith.constant 7 : index
    %c0_18 = arith.constant 0 : index
    %17 = vector.load %arg12[%c7, %c0_18] : memref<98x16xf32, #tpu.memory_space<vmem>>, vector<1x16xf32>
    %c0_19 = arith.constant 0 : index
    %c64 = arith.constant 64 : index
    %18 = vector.load %arg13[%c0_19, %c64] : memref<8x256xf32, #tpu.memory_space<vmem>>, vector<1x16xf32>
    tpu.vector_store %arg13[%c0_19, %c64], %17 {strides = array<i32>} : memref<8x256xf32, #tpu.memory_space<vmem>>, vector<1x16xf32>,
    %c8 = arith.constant 8 : index
    %c0_20 = arith.constant 0 : index
    %19 = vector.load %arg12[%c8, %c0_20] : memref<98x16xf32, #tpu.memory_space<vmem>>, vector<1x16xf32>
    %c0_21 = arith.constant 0 : index
    %c80 = arith.constant 80 : index
    %20 = vector.load %arg13[%c0_21, %c80] : memref<8x256xf32, #tpu.memory_space<vmem>>, vector<1x16xf32>
    tpu.vector_store %arg13[%c0_21, %c80], %19 {strides = array<i32>} : memref<8x256xf32, #tpu.memory_space<vmem>>, vector<1x16xf32>,
    %c9 = arith.constant 9 : index
    %c0_22 = arith.constant 0 : index
    %21 = vector.load %arg12[%c9, %c0_22] : memref<98x16xf32, #tpu.memory_space<vmem>>, vector<1x16xf32>
    %c0_23 = arith.constant 0 : index
    %c96 = arith.constant 96 : index
    %22 = vector.load %arg13[%c0_23, %c96] : memref<8x256xf32, #tpu.memory_space<vmem>>, vector<1x16xf32>
    tpu.vector_store %arg13[%c0_23, %c96], %21 {strides = array<i32>} : memref<8x256xf32, #tpu.memory_space<vmem>>, vector<1x16xf32>,
    %c10 = arith.constant 10 : index
    %c0_24 = arith.constant 0 : index
    %23 = vector.load %arg12[%c10, %c0_24] : memref<98x16xf32, #tpu.memory_space<vmem>>, vector<1x16xf32>
    %c0_25 = arith.constant 0 : index
    %c112 = arith.constant 112 : index
    %24 = vector.load %arg13[%c0_25, %c112] : memref<8x256xf32, #tpu.memory_space<vmem>>, vector<1x16xf32>
    tpu.vector_store %arg13[%c0_25, %c112], %23 {strides = array<i32>} : memref<8x256xf32, #tpu.memory_space<vmem>>, vector<1x16xf32>,
    %c14 = arith.constant 14 : index
    %c0_26 = arith.constant 0 : index
    %25 = vector.load %arg12[%c14, %c0_26] : memref<98x16xf32, #tpu.memory_space<vmem>>, vector<1x16xf32>
    %c0_27 = arith.constant 0 : index
    %c128 = arith.constant 128 : index
    %26 = vector.load %arg13[%c0_27, %c128] : memref<8x256xf32, #tpu.memory_space<vmem>>, vector<1x16xf32>
    tpu.vector_store %arg13[%c0_27, %c128], %25 {strides = array<i32>} : memref<8x256xf32, #tpu.memory_space<vmem>>, vector<1x16xf32>,
    %c15 = arith.constant 15 : index
    %c0_28 = arith.constant 0 : index
    %27 = vector.load %arg12[%c15, %c0_28] : memref<98x16xf32, #tpu.memory_space<vmem>>, vector<1x16xf32>
    %c0_29 = arith.constant 0 : index
    %c144 = arith.constant 144 : index
    %28 = vector.load %arg13[%c0_29, %c144] : memref<8x256xf32, #tpu.memory_space<vmem>>, vector<1x16xf32>
    tpu.vector_store %arg13[%c0_29, %c144], %27 {strides = array<i32>} : memref<8x256xf32, #tpu.memory_space<vmem>>, vector<1x16xf32>,
    %c16_30 = arith.constant 16 : index
    %c0_31 = arith.constant 0 : index
    %29 = vector.load %arg12[%c16_30, %c0_31] : memref<98x16xf32, #tpu.memory_space<vmem>>, vector<1x16xf32>
    %c0_32 = arith.constant 0 : index
    %c160 = arith.constant 160 : index
    %30 = vector.load %arg13[%c0_32, %c160] : memref<8x256xf32, #tpu.memory_space<vmem>>, vector<1x16xf32>
    tpu.vector_store %arg13[%c0_32, %c160], %29 {strides = array<i32>} : memref<8x256xf32, #tpu.memory_space<vmem>>, vector<1x16xf32>,
    %c17 = arith.constant 17 : index
    %c0_33 = arith.constant 0 : index
    %31 = vector.load %arg12[%c17, %c0_33] : memref<98x16xf32, #tpu.memory_space<vmem>>, vector<1x16xf32>
    %c0_34 = arith.constant 0 : index
    %c176 = arith.constant 176 : index
    %32 = vector.load %arg13[%c0_34, %c176] : memref<8x256xf32, #tpu.memory_space<vmem>>, vector<1x16xf32>
    tpu.vector_store %arg13[%c0_34, %c176], %31 {strides = array<i32>} : memref<8x256xf32, #tpu.memory_space<vmem>>, vector<1x16xf32>,
    %c21 = arith.constant 21 : index
    %c0_35 = arith.constant 0 : index
    %33 = vector.load %arg12[%c21, %c0_35] : memref<98x16xf32, #tpu.memory_space<vmem>>, vector<1x16xf32>
    %c0_36 = arith.constant 0 : index
    %c192 = arith.constant 192 : index
    %34 = vector.load %arg13[%c0_36, %c192] : memref<8x256xf32, #tpu.memory_space<vmem>>, vector<1x16xf32>
    tpu.vector_store %arg13[%c0_36, %c192], %33 {strides = array<i32>} : memref<8x256xf32, #tpu.memory_space<vmem>>, vector<1x16xf32>,
    %c22 = arith.constant 22 : index
    %c0_37 = arith.constant 0 : index
    %35 = vector.load %arg12[%c22, %c0_37] : memref<98x16xf32, #tpu.memory_space<vmem>>, vector<1x16xf32>
    %c0_38 = arith.constant 0 : index
    %c208 = arith.constant 208 : index
    %36 = vector.load %arg13[%c0_38, %c208] : memref<8x256xf32, #tpu.memory_space<vmem>>, vector<1x16xf32>
    tpu.vector_store %arg13[%c0_38, %c208], %35 {strides = array<i32>} : memref<8x256xf32, #tpu.memory_space<vmem>>, vector<1x16xf32>,
    %c23 = arith.constant 23 : index
    %c0_39 = arith.constant 0 : index
    %37 = vector.load %arg12[%c23, %c0_39] : memref<98x16xf32, #tpu.memory_space<vmem>>, vector<1x16xf32>
    %c0_40 = arith.constant 0 : index
    %c224 = arith.constant 224 : index
    %38 = vector.load %arg13[%c0_40, %c224] : memref<8x256xf32, #tpu.memory_space<vmem>>, vector<1x16xf32>
    tpu.vector_store %arg13[%c0_40, %c224], %37 {strides = array<i32>} : memref<8x256xf32, #tpu.memory_space<vmem>>, vector<1x16xf32>,
    %c24 = arith.constant 24 : index
    %c0_41 = arith.constant 0 : index
    %39 = vector.load %arg12[%c24, %c0_41] : memref<98x16xf32, #tpu.memory_space<vmem>>, vector<1x16xf32>
    %c0_42 = arith.constant 0 : index
    %c240 = arith.constant 240 : index
    %40 = vector.load %arg13[%c0_42, %c240] : memref<8x256xf32, #tpu.memory_space<vmem>>, vector<1x16xf32>
    tpu.vector_store %arg13[%c0_42, %c240], %39 {strides = array<i32>} : memref<8x256xf32, #tpu.memory_space<vmem>>, vector<1x16xf32>,
    %c2_43 = arith.constant 2 : index
    %c0_44 = arith.constant 0 : index
    %41 = vector.load %arg12[%c2_43, %c0_44] : memref<98x16xf32, #tpu.memory_space<vmem>>, vector<1x16xf32>
    %c1_45 = arith.constant 1 : index
    %c0_46 = arith.constant 0 : index
    %42 = vector.load %arg13[%c1_45, %c0_46] : memref<8x256xf32, #tpu.memory_space<vmem>>, vector<1x16xf32>
    tpu.vector_store %arg13[%c1_45, %c0_46], %41 {strides = array<i32>} : memref<8x256xf32, #tpu.memory_space<vmem>>, vector<1x16xf32>,
    %c3_47 = arith.constant 3 : index
    %c0_48 = arith.constant 0 : index
    %43 = vector.load %arg12[%c3_47, %c0_48] : memref<98x16xf32, #tpu.memory_space<vmem>>, vector<1x16xf32>
    %c1_49 = arith.constant 1 : index
    %c16_50 = arith.constant 16 : index
    %44 = vector.load %arg13[%c1_49, %c16_50] : memref<8x256xf32, #tpu.memory_space<vmem>>, vector<1x16xf32>
    tpu.vector_store %arg13[%c1_49, %c16_50], %43 {strides = array<i32>} : memref<8x256xf32, #tpu.memory_space<vmem>>, vector<1x16xf32>,
    %c4 = arith.constant 4 : index
    %c0_51 = arith.constant 0 : index
    %45 = vector.load %arg12[%c4, %c0_51] : memref<98x16xf32, #tpu.memory_space<vmem>>, vector<1x16xf32>
    %c1_52 = arith.constant 1 : index
    %c32_53 = arith.constant 32 : index
    %46 = vector.load %arg13[%c1_52, %c32_53] : memref<8x256xf32, #tpu.memory_space<vmem>>, vector<1x16xf32>
    tpu.vector_store %arg13[%c1_52, %c32_53], %45 {strides = array<i32>} : memref<8x256xf32, #tpu.memory_space<vmem>>, vector<1x16xf32>,
    %c5 = arith.constant 5 : index
    %c0_54 = arith.constant 0 : index
    %47 = vector.load %arg12[%c5, %c0_54] : memref<98x16xf32, #tpu.memory_space<vmem>>, vector<1x16xf32>
    %c1_55 = arith.constant 1 : index
    %c48_56 = arith.constant 48 : index
    %48 = vector.load %arg13[%c1_55, %c48_56] : memref<8x256xf32, #tpu.memory_space<vmem>>, vector<1x16xf32>
    tpu.vector_store %arg13[%c1_55, %c48_56], %47 {strides = array<i32>} : memref<8x256xf32, #tpu.memory_space<vmem>>, vector<1x16xf32>,
    %c9_57 = arith.constant 9 : index
    %c0_58 = arith.constant 0 : index
    %49 = vector.load %arg12[%c9_57, %c0_58] : memref<98x16xf32, #tpu.memory_space<vmem>>, vector<1x16xf32>
    %c1_59 = arith.constant 1 : index
    %c64_60 = arith.constant 64 : index
    %50 = vector.load %arg13[%c1_59, %c64_60] : memref<8x256xf32, #tpu.memory_space<vmem>>, vector<1x16xf32>
    tpu.vector_store %arg13[%c1_59, %c64_60], %49 {strides = array<i32>} : memref<8x256xf32, #tpu.memory_space<vmem>>, vector<1x16xf32>,
    %c10_61 = arith.constant 10 : index
    %c0_62 = arith.constant 0 : index
    %51 = vector.load %arg12[%c10_61, %c0_62] : memref<98x16xf32, #tpu.memory_space<vmem>>, vector<1x16xf32>
    %c1_63 = arith.constant 1 : index
    %c80_64 = arith.constant 80 : index
    %52 = vector.load %arg13[%c1_63, %c80_64] : memref<8x256xf32, #tpu.memory_space<vmem>>, vector<1x16xf32>
    tpu.vector_store %arg13[%c1_63, %c80_64], %51 {strides = array<i32>} : memref<8x256xf32, #tpu.memory_space<vmem>>, vector<1x16xf32>,
    %c11 = arith.constant 11 : index
    %c0_65 = arith.constant 0 : index
    %53 = vector.load %arg12[%c11, %c0_65] : memref<98x16xf32, #tpu.memory_space<vmem>>, vector<1x16xf32>
    %c1_66 = arith.constant 1 : index
    %c96_67 = arith.constant 96 : index
    %54 = vector.load %arg13[%c1_66, %c96_67] : memref<8x256xf32, #tpu.memory_space<vmem>>, vector<1x16xf32>
    tpu.vector_store %arg13[%c1_66, %c96_67], %53 {strides = array<i32>} : memref<8x256xf32, #tpu.memory_space<vmem>>, vector<1x16xf32>,
    %c12 = arith.constant 12 : index
    %c0_68 = arith.constant 0 : index
    %55 = vector.load %arg12[%c12, %c0_68] : memref<98x16xf32, #tpu.memory_space<vmem>>, vector<1x16xf32>
    %c1_69 = arith.constant 1 : index
    %c112_70 = arith.constant 112 : index
    %56 = vector.load %arg13[%c1_69, %c112_70] : memref<8x256xf32, #tpu.memory_space<vmem>>, vector<1x16xf32>
    tpu.vector_store %arg13[%c1_69, %c112_70], %55 {strides = array<i32>} : memref<8x256xf32, #tpu.memory_space<vmem>>, vector<1x16xf32>,
    %c16_71 = arith.constant 16 : index
    %c0_72 = arith.constant 0 : index
    %57 = vector.load %arg12[%c16_71, %c0_72] : memref<98x16xf32, #tpu.memory_space<vmem>>, vector<1x16xf32>
    %c1_73 = arith.constant 1 : index
    %c128_74 = arith.constant 128 : index
    %58 = vector.load %arg13[%c1_73, %c128_74] : memref<8x256xf32, #tpu.memory_space<vmem>>, vector<1x16xf32>
    tpu.vector_store %arg13[%c1_73, %c128_74], %57 {strides = array<i32>} : memref<8x256xf32, #tpu.memory_space<vmem>>, vector<1x16xf32>,
    %c17_75 = arith.constant 17 : index
    %c0_76 = arith.constant 0 : index
    %59 = vector.load %arg12[%c17_75, %c0_76] : memref<98x16xf32, #tpu.memory_space<vmem>>, vector<1x16xf32>
    %c1_77 = arith.constant 1 : index
    %c144_78 = arith.constant 144 : index
    %60 = vector.load %arg13[%c1_77, %c144_78] : memref<8x256xf32, #tpu.memory_space<vmem>>, vector<1x16xf32>
    tpu.vector_store %arg13[%c1_77, %c144_78], %59 {strides = array<i32>} : memref<8x256xf32, #tpu.memory_space<vmem>>, vector<1x16xf32>,
    %c18 = arith.constant 18 : index
    %c0_79 = arith.constant 0 : index
    %61 = vector.load %arg12[%c18, %c0_79] : memref<98x16xf32, #tpu.memory_space<vmem>>, vector<1x16xf32>
    %c1_80 = arith.constant 1 : index
    %c160_81 = arith.constant 160 : index
    %62 = vector.load %arg13[%c1_80, %c160_81] : memref<8x256xf32, #tpu.memory_space<vmem>>, vector<1x16xf32>
    tpu.vector_store %arg13[%c1_80, %c160_81], %61 {strides = array<i32>} : memref<8x256xf32, #tpu.memory_space<vmem>>, vector<1x16xf32>,
    %c19 = arith.constant 19 : index
    %c0_82 = arith.constant 0 : index
    %63 = vector.load %arg12[%c19, %c0_82] : memref<98x16xf32, #tpu.memory_space<vmem>>, vector<1x16xf32>
    %c1_83 = arith.constant 1 : index
    %c176_84 = arith.constant 176 : index
    %64 = vector.load %arg13[%c1_83, %c176_84] : memref<8x256xf32, #tpu.memory_space<vmem>>, vector<1x16xf32>
    tpu.vector_store %arg13[%c1_83, %c176_84], %63 {strides = array<i32>} : memref<8x256xf32, #tpu.memory_space<vmem>>, vector<1x16xf32>,
    %c23_85 = arith.constant 23 : index
    %c0_86 = arith.constant 0 : index
    %65 = vector.load %arg12[%c23_85, %c0_86] : memref<98x16xf32, #tpu.memory_space<vmem>>, vector<1x16xf32>
    %c1_87 = arith.constant 1 : index
    %c192_88 = arith.constant 192 : index
    %66 = vector.load %arg13[%c1_87, %c192_88] : memref<8x256xf32, #tpu.memory_space<vmem>>, vector<1x16xf32>
    tpu.vector_store %arg13[%c1_87, %c192_88], %65 {strides = array<i32>} : memref<8x256xf32, #tpu.memory_space<vmem>>, vector<1x16xf32>,
    %c24_89 = arith.constant 24 : index
    %c0_90 = arith.constant 0 : index
    %67 = vector.load %arg12[%c24_89, %c0_90] : memref<98x16xf32, #tpu.memory_space<vmem>>, vector<1x16xf32>
    %c1_91 = arith.constant 1 : index
    %c208_92 = arith.constant 208 : index
    %68 = vector.load %arg13[%c1_91, %c208_92] : memref<8x256xf32, #tpu.memory_space<vmem>>, vector<1x16xf32>
    tpu.vector_store %arg13[%c1_91, %c208_92], %67 {strides = array<i32>} : memref<8x256xf32, #tpu.memory_space<vmem>>, vector<1x16xf32>,
    %c25 = arith.constant 25 : index
    %c0_93 = arith.constant 0 : index
    %69 = vector.load %arg12[%c25, %c0_93] : memref<98x16xf32, #tpu.memory_space<vmem>>, vector<1x16xf32>
    %c1_94 = arith.constant 1 : index
    %c224_95 = arith.constant 224 : index
    %70 = vector.load %arg13[%c1_94, %c224_95] : memref<8x256xf32, #tpu.memory_space<vmem>>, vector<1x16xf32>
    tpu.vector_store %arg13[%c1_94, %c224_95], %69 {strides = array<i32>} : memref<8x256xf32, #tpu.memory_space<vmem>>, vector<1x16xf32>,
    %c26 = arith.constant 26 : index
    %c0_96 = arith.constant 0 : index
    %71 = vector.load %arg12[%c26, %c0_96] : memref<98x16xf32, #tpu.memory_space<vmem>>, vector<1x16xf32>
    %c1_97 = arith.constant 1 : index
    %c240_98 = arith.constant 240 : index
    %72 = vector.load %arg13[%c1_97, %c240_98] : memref<8x256xf32, #tpu.memory_space<vmem>>, vector<1x16xf32>
    tpu.vector_store %arg13[%c1_97, %c240_98], %71 {strides = array<i32>} : memref<8x256xf32, #tpu.memory_space<vmem>>, vector<1x16xf32>,
    %c14_99 = arith.constant 14 : index
    %c0_100 = arith.constant 0 : index
    %73 = vector.load %arg12[%c14_99, %c0_100] : memref<98x16xf32, #tpu.memory_space<vmem>>, vector<1x16xf32>
    %c2_101 = arith.constant 2 : index
    %c0_102 = arith.constant 0 : index
    %74 = vector.load %arg13[%c2_101, %c0_102] : memref<8x256xf32, #tpu.memory_space<vmem>>, vector<1x16xf32>
    tpu.vector_store %arg13[%c2_101, %c0_102], %73 {strides = array<i32>} : memref<8x256xf32, #tpu.memory_space<vmem>>, vector<1x16xf32>,
    %c15_103 = arith.constant 15 : index
    %c0_104 = arith.constant 0 : index
    %75 = vector.load %arg12[%c15_103, %c0_104] : memref<98x16xf32, #tpu.memory_space<vmem>>, vector<1x16xf32>
    %c2_105 = arith.constant 2 : index
    %c16_106 = arith.constant 16 : index
    %76 = vector.load %arg13[%c2_105, %c16_106] : memref<8x256xf32, #tpu.memory_space<vmem>>, vector<1x16xf32>
    tpu.vector_store %arg13[%c2_105, %c16_106], %75 {strides = array<i32>} : memref<8x256xf32, #tpu.memory_space<vmem>>, vector<1x16xf32>,
    %c16_107 = arith.constant 16 : index
    %c0_108 = arith.constant 0 : index
    %77 = vector.load %arg12[%c16_107, %c0_108] : memref<98x16xf32, #tpu.memory_space<vmem>>, vector<1x16xf32>
    %c2_109 = arith.constant 2 : index
    %c32_110 = arith.constant 32 : index
    %78 = vector.load %arg13[%c2_109, %c32_110] : memref<8x256xf32, #tpu.memory_space<vmem>>, vector<1x16xf32>
    tpu.vector_store %arg13[%c2_109, %c32_110], %77 {strides = array<i32>} : memref<8x256xf32, #tpu.memory_space<vmem>>, vector<1x16xf32>,
    %c17_111 = arith.constant 17 : index
    %c0_112 = arith.constant 0 : index
    %79 = vector.load %arg12[%c17_111, %c0_112] : memref<98x16xf32, #tpu.memory_space<vmem>>, vector<1x16xf32>
    %c2_113 = arith.constant 2 : index
    %c48_114 = arith.constant 48 : index
    %80 = vector.load %arg13[%c2_113, %c48_114] : memref<8x256xf32, #tpu.memory_space<vmem>>, vector<1x16xf32>
    tpu.vector_store %arg13[%c2_113, %c48_114], %79 {strides = array<i32>} : memref<8x256xf32, #tpu.memory_space<vmem>>, vector<1x16xf32>,
    %c21_115 = arith.constant 21 : index
    %c0_116 = arith.constant 0 : index
    %81 = vector.load %arg12[%c21_115, %c0_116] : memref<98x16xf32, #tpu.memory_space<vmem>>, vector<1x16xf32>
    %c2_117 = arith.constant 2 : index
    %c64_118 = arith.constant 64 : index
    %82 = vector.load %arg13[%c2_117, %c64_118] : memref<8x256xf32, #tpu.memory_space<vmem>>, vector<1x16xf32>
    tpu.vector_store %arg13[%c2_117, %c64_118], %81 {strides = array<i32>} : memref<8x256xf32, #tpu.memory_space<vmem>>, vector<1x16xf32>,
    %c22_119 = arith.constant 22 : index
    %c0_120 = arith.constant 0 : index
    %83 = vector.load %arg12[%c22_119, %c0_120] : memref<98x16xf32, #tpu.memory_space<vmem>>, vector<1x16xf32>
    %c2_121 = arith.constant 2 : index
    %c80_122 = arith.constant 80 : index
    %84 = vector.load %arg13[%c2_121, %c80_122] : memref<8x256xf32, #tpu.memory_space<vmem>>, vector<1x16xf32>
    tpu.vector_store %arg13[%c2_121, %c80_122], %83 {strides = array<i32>} : memref<8x256xf32, #tpu.memory_space<vmem>>, vector<1x16xf32>,
    %c23_123 = arith.constant 23 : index
    %c0_124 = arith.constant 0 : index
    %85 = vector.load %arg12[%c23_123, %c0_124] : memref<98x16xf32, #tpu.memory_space<vmem>>, vector<1x16xf32>
    %c2_125 = arith.constant 2 : index
    %c96_126 = arith.constant 96 : index
    %86 = vector.load %arg13[%c2_125, %c96_126] : memref<8x256xf32, #tpu.memory_space<vmem>>, vector<1x16xf32>
    tpu.vector_store %arg13[%c2_125, %c96_126], %85 {strides = array<i32>} : memref<8x256xf32, #tpu.memory_space<vmem>>, vector<1x16xf32>,
    %c24_127 = arith.constant 24 : index
    %c0_128 = arith.constant 0 : index
    %87 = vector.load %arg12[%c24_127, %c0_128] : memref<98x16xf32, #tpu.memory_space<vmem>>, vector<1x16xf32>
    %c2_129 = arith.constant 2 : index
    %c112_130 = arith.constant 112 : index
    %88 = vector.load %arg13[%c2_129, %c112_130] : memref<8x256xf32, #tpu.memory_space<vmem>>, vector<1x16xf32>
    tpu.vector_store %arg13[%c2_129, %c112_130], %87 {strides = array<i32>} : memref<8x256xf32, #tpu.memory_space<vmem>>, vector<1x16xf32>,
    %c28 = arith.constant 28 : index
    %c0_131 = arith.constant 0 : index
    %89 = vector.load %arg12[%c28, %c0_131] : memref<98x16xf32, #tpu.memory_space<vmem>>, vector<1x16xf32>
    %c2_132 = arith.constant 2 : index
    %c128_133 = arith.constant 128 : index
    %90 = vector.load %arg13[%c2_132, %c128_133] : memref<8x256xf32, #tpu.memory_space<vmem>>, vector<1x16xf32>
    tpu.vector_store %arg13[%c2_132, %c128_133], %89 {strides = array<i32>} : memref<8x256xf32, #tpu.memory_space<vmem>>, vector<1x16xf32>,
    %c29 = arith.constant 29 : index
    %c0_134 = arith.constant 0 : index
    %91 = vector.load %arg12[%c29, %c0_134] : memref<98x16xf32, #tpu.memory_space<vmem>>, vector<1x16xf32>
    %c2_135 = arith.constant 2 : index
    %c144_136 = arith.constant 144 : index
    %92 = vector.load %arg13[%c2_135, %c144_136] : memref<8x256xf32, #tpu.memory_space<vmem>>, vector<1x16xf32>
    tpu.vector_store %arg13[%c2_135, %c144_136], %91 {strides = array<i32>} : memref<8x256xf32, #tpu.memory_space<vmem>>, vector<1x16xf32>,
    %c30 = arith.constant 30 : index
    %c0_137 = arith.constant 0 : index
    %93 = vector.load %arg12[%c30, %c0_137] : memref<98x16xf32, #tpu.memory_space<vmem>>, vector<1x16xf32>
    %c2_138 = arith.constant 2 : index
    %c160_139 = arith.constant 160 : index
    %94 = vector.load %arg13[%c2_138, %c160_139] : memref<8x256xf32, #tpu.memory_space<vmem>>, vector<1x16xf32>
    tpu.vector_store %arg13[%c2_138, %c160_139], %93 {strides = array<i32>} : memref<8x256xf32, #tpu.memory_space<vmem>>, vector<1x16xf32>,
    %c31 = arith.constant 31 : index
    %c0_140 = arith.constant 0 : index
    %95 = vector.load %arg12[%c31, %c0_140] : memref<98x16xf32, #tpu.memory_space<vmem>>, vector<1x16xf32>
    %c2_141 = arith.constant 2 : index
    %c176_142 = arith.constant 176 : index
    %96 = vector.load %arg13[%c2_141, %c176_142] : memref<8x256xf32, #tpu.memory_space<vmem>>, vector<1x16xf32>
    tpu.vector_store %arg13[%c2_141, %c176_142], %95 {strides = array<i32>} : memref<8x256xf32, #tpu.memory_space<vmem>>, vector<1x16xf32>,
    %c35 = arith.constant 35 : index
    %c0_143 = arith.constant 0 : index
    %97 = vector.load %arg12[%c35, %c0_143] : memref<98x16xf32, #tpu.memory_space<vmem>>, vector<1x16xf32>
    %c2_144 = arith.constant 2 : index
    %c192_145 = arith.constant 192 : index
    %98 = vector.load %arg13[%c2_144, %c192_145] : memref<8x256xf32, #tpu.memory_space<vmem>>, vector<1x16xf32>
    tpu.vector_store %arg13[%c2_144, %c192_145], %97 {strides = array<i32>} : memref<8x256xf32, #tpu.memory_space<vmem>>, vector<1x16xf32>,
    %c36 = arith.constant 36 : index
    %c0_146 = arith.constant 0 : index
    %99 = vector.load %arg12[%c36, %c0_146] : memref<98x16xf32, #tpu.memory_space<vmem>>, vector<1x16xf32>
    %c2_147 = arith.constant 2 : index
    %c208_148 = arith.constant 208 : index
    %100 = vector.load %arg13[%c2_147, %c208_148] : memref<8x256xf32, #tpu.memory_space<vmem>>, vector<1x16xf32>
    tpu.vector_store %arg13[%c2_147, %c208_148], %99 {strides = array<i32>} : memref<8x256xf32, #tpu.memory_space<vmem>>, vector<1x16xf32>,
    %c37 = arith.constant 37 : index
    %c0_149 = arith.constant 0 : index
    %101 = vector.load %arg12[%c37, %c0_149] : memref<98x16xf32, #tpu.memory_space<vmem>>, vector<1x16xf32>
    %c2_150 = arith.constant 2 : index
    %c224_151 = arith.constant 224 : index
    %102 = vector.load %arg13[%c2_150, %c224_151] : memref<8x256xf32, #tpu.memory_space<vmem>>, vector<1x16xf32>
    tpu.vector_store %arg13[%c2_150, %c224_151], %101 {strides = array<i32>} : memref<8x256xf32, #tpu.memory_space<vmem>>, vector<1x16xf32>,
    %c38 = arith.constant 38 : index
    %c0_152 = arith.constant 0 : index
    %103 = vector.load %arg12[%c38, %c0_152] : memref<98x16xf32, #tpu.memory_space<vmem>>, vector<1x16xf32>
    %c2_153 = arith.constant 2 : index
    %c240_154 = arith.constant 240 : index
    %104 = vector.load %arg13[%c2_153, %c240_154] : memref<8x256xf32, #tpu.memory_space<vmem>>, vector<1x16xf32>
    tpu.vector_store %arg13[%c2_153, %c240_154], %103 {strides = array<i32>} : memref<8x256xf32, #tpu.memory_space<vmem>>, vector<1x16xf32>,
    %c16_155 = arith.constant 16 : index
    %c0_156 = arith.constant 0 : index
    %105 = vector.load %arg12[%c16_155, %c0_156] : memref<98x16xf32, #tpu.memory_space<vmem>>, vector<1x16xf32>
    %c3_157 = arith.constant 3 : index
    %c0_158 = arith.constant 0 : index
    %106 = vector.load %arg13[%c3_157, %c0_158] : memref<8x256xf32, #tpu.memory_space<vmem>>, vector<1x16xf32>
    tpu.vector_store %arg13[%c3_157, %c0_158], %105 {strides = array<i32>} : memref<8x256xf32, #tpu.memory_space<vmem>>, vector<1x16xf32>,
    %c17_159 = arith.constant 17 : index
    %c0_160 = arith.constant 0 : index
    %107 = vector.load %arg12[%c17_159, %c0_160] : memref<98x16xf32, #tpu.memory_space<vmem>>, vector<1x16xf32>
    %c3_161 = arith.constant 3 : index
    %c16_162 = arith.constant 16 : index
    %108 = vector.load %arg13[%c3_161, %c16_162] : memref<8x256xf32, #tpu.memory_space<vmem>>, vector<1x16xf32>
    tpu.vector_store %arg13[%c3_161, %c16_162], %107 {strides = array<i32>} : memref<8x256xf32, #tpu.memory_space<vmem>>, vector<1x16xf32>,
    %c18_163 = arith.constant 18 : index
    %c0_164 = arith.constant 0 : index
    %109 = vector.load %arg12[%c18_163, %c0_164] : memref<98x16xf32, #tpu.memory_space<vmem>>, vector<1x16xf32>
    %c3_165 = arith.constant 3 : index
    %c32_166 = arith.constant 32 : index
    %110 = vector.load %arg13[%c3_165, %c32_166] : memref<8x256xf32, #tpu.memory_space<vmem>>, vector<1x16xf32>
    tpu.vector_store %arg13[%c3_165, %c32_166], %109 {strides = array<i32>} : memref<8x256xf32, #tpu.memory_space<vmem>>, vector<1x16xf32>,
    %c19_167 = arith.constant 19 : index
    %c0_168 = arith.constant 0 : index
    %111 = vector.load %arg12[%c19_167, %c0_168] : memref<98x16xf32, #tpu.memory_space<vmem>>, vector<1x16xf32>
    %c3_169 = arith.constant 3 : index
    %c48_170 = arith.constant 48 : index
    %112 = vector.load %arg13[%c3_169, %c48_170] : memref<8x256xf32, #tpu.memory_space<vmem>>, vector<1x16xf32>
    tpu.vector_store %arg13[%c3_169, %c48_170], %111 {strides = array<i32>} : memref<8x256xf32, #tpu.memory_space<vmem>>, vector<1x16xf32>,
    %c23_171 = arith.constant 23 : index
    %c0_172 = arith.constant 0 : index
    %113 = vector.load %arg12[%c23_171, %c0_172] : memref<98x16xf32, #tpu.memory_space<vmem>>, vector<1x16xf32>
    %c3_173 = arith.constant 3 : index
    %c64_174 = arith.constant 64 : index
    %114 = vector.load %arg13[%c3_173, %c64_174] : memref<8x256xf32, #tpu.memory_space<vmem>>, vector<1x16xf32>
    tpu.vector_store %arg13[%c3_173, %c64_174], %113 {strides = array<i32>} : memref<8x256xf32, #tpu.memory_space<vmem>>, vector<1x16xf32>,
    %c24_175 = arith.constant 24 : index
    %c0_176 = arith.constant 0 : index
    %115 = vector.load %arg12[%c24_175, %c0_176] : memref<98x16xf32, #tpu.memory_space<vmem>>, vector<1x16xf32>
    %c3_177 = arith.constant 3 : index
    %c80_178 = arith.constant 80 : index
    %116 = vector.load %arg13[%c3_177, %c80_178] : memref<8x256xf32, #tpu.memory_space<vmem>>, vector<1x16xf32>
    tpu.vector_store %arg13[%c3_177, %c80_178], %115 {strides = array<i32>} : memref<8x256xf32, #tpu.memory_space<vmem>>, vector<1x16xf32>,
    %c25_179 = arith.constant 25 : index
    %c0_180 = arith.constant 0 : index
    %117 = vector.load %arg12[%c25_179, %c0_180] : memref<98x16xf32, #tpu.memory_space<vmem>>, vector<1x16xf32>
    %c3_181 = arith.constant 3 : index
    %c96_182 = arith.constant 96 : index
    %118 = vector.load %arg13[%c3_181, %c96_182] : memref<8x256xf32, #tpu.memory_space<vmem>>, vector<1x16xf32>
    tpu.vector_store %arg13[%c3_181, %c96_182], %117 {strides = array<i32>} : memref<8x256xf32, #tpu.memory_space<vmem>>, vector<1x16xf32>,
    %c26_183 = arith.constant 26 : index
    %c0_184 = arith.constant 0 : index
    %119 = vector.load %arg12[%c26_183, %c0_184] : memref<98x16xf32, #tpu.memory_space<vmem>>, vector<1x16xf32>
    %c3_185 = arith.constant 3 : index
    %c112_186 = arith.constant 112 : index
    %120 = vector.load %arg13[%c3_185, %c112_186] : memref<8x256xf32, #tpu.memory_space<vmem>>, vector<1x16xf32>
    tpu.vector_store %arg13[%c3_185, %c112_186], %119 {strides = array<i32>} : memref<8x256xf32, #tpu.memory_space<vmem>>, vector<1x16xf32>,
    %c30_187 = arith.constant 30 : index
    %c0_188 = arith.constant 0 : index
    %121 = vector.load %arg12[%c30_187, %c0_188] : memref<98x16xf32, #tpu.memory_space<vmem>>, vector<1x16xf32>
    %c3_189 = arith.constant 3 : index
    %c128_190 = arith.constant 128 : index
    %122 = vector.load %arg13[%c3_189, %c128_190] : memref<8x256xf32, #tpu.memory_space<vmem>>, vector<1x16xf32>
    tpu.vector_store %arg13[%c3_189, %c128_190], %121 {strides = array<i32>} : memref<8x256xf32, #tpu.memory_space<vmem>>, vector<1x16xf32>,
    %c31_191 = arith.constant 31 : index
    %c0_192 = arith.constant 0 : index
    %123 = vector.load %arg12[%c31_191, %c0_192] : memref<98x16xf32, #tpu.memory_space<vmem>>, vector<1x16xf32>
    %c3_193 = arith.constant 3 : index
    %c144_194 = arith.constant 144 : index
    %124 = vector.load %arg13[%c3_193, %c144_194] : memref<8x256xf32, #tpu.memory_space<vmem>>, vector<1x16xf32>
    tpu.vector_store %arg13[%c3_193, %c144_194], %123 {strides = array<i32>} : memref<8x256xf32, #tpu.memory_space<vmem>>, vector<1x16xf32>,
    %c32_195 = arith.constant 32 : index
    %c0_196 = arith.constant 0 : index
    %125 = vector.load %arg12[%c32_195, %c0_196] : memref<98x16xf32, #tpu.memory_space<vmem>>, vector<1x16xf32>
    %c3_197 = arith.constant 3 : index
    %c160_198 = arith.constant 160 : index
    %126 = vector.load %arg13[%c3_197, %c160_198] : memref<8x256xf32, #tpu.memory_space<vmem>>, vector<1x16xf32>
    tpu.vector_store %arg13[%c3_197, %c160_198], %125 {strides = array<i32>} : memref<8x256xf32, #tpu.memory_space<vmem>>, vector<1x16xf32>,
    %c33 = arith.constant 33 : index
    %c0_199 = arith.constant 0 : index
    %127 = vector.load %arg12[%c33, %c0_199] : memref<98x16xf32, #tpu.memory_space<vmem>>, vector<1x16xf32>
    %c3_200 = arith.constant 3 : index
    %c176_201 = arith.constant 176 : index
    %128 = vector.load %arg13[%c3_200, %c176_201] : memref<8x256xf32, #tpu.memory_space<vmem>>, vector<1x16xf32>
    tpu.vector_store %arg13[%c3_200, %c176_201], %127 {strides = array<i32>} : memref<8x256xf32, #tpu.memory_space<vmem>>, vector<1x16xf32>,
    %c37_202 = arith.constant 37 : index
    %c0_203 = arith.constant 0 : index
    %129 = vector.load %arg12[%c37_202, %c0_203] : memref<98x16xf32, #tpu.memory_space<vmem>>, vector<1x16xf32>
    %c3_204 = arith.constant 3 : index
    %c192_205 = arith.constant 192 : index
    %130 = vector.load %arg13[%c3_204, %c192_205] : memref<8x256xf32, #tpu.memory_space<vmem>>, vector<1x16xf32>
    tpu.vector_store %arg13[%c3_204, %c192_205], %129 {strides = array<i32>} : memref<8x256xf32, #tpu.memory_space<vmem>>, vector<1x16xf32>,
    %c38_206 = arith.constant 38 : index
    %c0_207 = arith.constant 0 : index
    %131 = vector.load %arg12[%c38_206, %c0_207] : memref<98x16xf32, #tpu.memory_space<vmem>>, vector<1x16xf32>
    %c3_208 = arith.constant 3 : index
    %c208_209 = arith.constant 208 : index
    %132 = vector.load %arg13[%c3_208, %c208_209] : memref<8x256xf32, #tpu.memory_space<vmem>>, vector<1x16xf32>
    tpu.vector_store %arg13[%c3_208, %c208_209], %131 {strides = array<i32>} : memref<8x256xf32, #tpu.memory_space<vmem>>, vector<1x16xf32>,
    %c39 = arith.constant 39 : index
    %c0_210 = arith.constant 0 : index
    %133 = vector.load %arg12[%c39, %c0_210] : memref<98x16xf32, #tpu.memory_space<vmem>>, vector<1x16xf32>
    %c3_211 = arith.constant 3 : index
    %c224_212 = arith.constant 224 : index
    %134 = vector.load %arg13[%c3_211, %c224_212] : memref<8x256xf32, #tpu.memory_space<vmem>>, vector<1x16xf32>
    tpu.vector_store %arg13[%c3_211, %c224_212], %133 {strides = array<i32>} : memref<8x256xf32, #tpu.memory_space<vmem>>, vector<1x16xf32>,
    %c40 = arith.constant 40 : index
    %c0_213 = arith.constant 0 : index
    %135 = vector.load %arg12[%c40, %c0_213] : memref<98x16xf32, #tpu.memory_space<vmem>>, vector<1x16xf32>
    %c3_214 = arith.constant 3 : index
    %c240_215 = arith.constant 240 : index
    %136 = vector.load %arg13[%c3_214, %c240_215] : memref<8x256xf32, #tpu.memory_space<vmem>>, vector<1x16xf32>
    tpu.vector_store %arg13[%c3_214, %c240_215], %135 {strides = array<i32>} : memref<8x256xf32, #tpu.memory_space<vmem>>, vector<1x16xf32>,
    %c49 = arith.constant 49 : index
    %c0_216 = arith.constant 0 : index
    %137 = vector.load %arg12[%c49, %c0_216] : memref<98x16xf32, #tpu.memory_space<vmem>>, vector<1x16xf32>
    %c4_217 = arith.constant 4 : index
    %c0_218 = arith.constant 0 : index
    %138 = vector.load %arg13[%c4_217, %c0_218] : memref<8x256xf32, #tpu.memory_space<vmem>>, vector<1x16xf32>
    tpu.vector_store %arg13[%c4_217, %c0_218], %137 {strides = array<i32>} : memref<8x256xf32, #tpu.memory_space<vmem>>, vector<1x16xf32>,
    %c50 = arith.constant 50 : index
    %c0_219 = arith.constant 0 : index
    %139 = vector.load %arg12[%c50, %c0_219] : memref<98x16xf32, #tpu.memory_space<vmem>>, vector<1x16xf32>
    %c4_220 = arith.constant 4 : index
    %c16_221 = arith.constant 16 : index
    %140 = vector.load %arg13[%c4_220, %c16_221] : memref<8x256xf32, #tpu.memory_space<vmem>>, vector<1x16xf32>
    tpu.vector_store %arg13[%c4_220, %c16_221], %139 {strides = array<i32>} : memref<8x256xf32, #tpu.memory_space<vmem>>, vector<1x16xf32>,
    %c51 = arith.constant 51 : index
    %c0_222 = arith.constant 0 : index
    %141 = vector.load %arg12[%c51, %c0_222] : memref<98x16xf32, #tpu.memory_space<vmem>>, vector<1x16xf32>
    %c4_223 = arith.constant 4 : index
    %c32_224 = arith.constant 32 : index
    %142 = vector.load %arg13[%c4_223, %c32_224] : memref<8x256xf32, #tpu.memory_space<vmem>>, vector<1x16xf32>
    tpu.vector_store %arg13[%c4_223, %c32_224], %141 {strides = array<i32>} : memref<8x256xf32, #tpu.memory_space<vmem>>, vector<1x16xf32>,
    %c52 = arith.constant 52 : index
    %c0_225 = arith.constant 0 : index
    %143 = vector.load %arg12[%c52, %c0_225] : memref<98x16xf32, #tpu.memory_space<vmem>>, vector<1x16xf32>
    %c4_226 = arith.constant 4 : index
    %c48_227 = arith.constant 48 : index
    %144 = vector.load %arg13[%c4_226, %c48_227] : memref<8x256xf32, #tpu.memory_space<vmem>>, vector<1x16xf32>
    tpu.vector_store %arg13[%c4_226, %c48_227], %143 {strides = array<i32>} : memref<8x256xf32, #tpu.memory_space<vmem>>, vector<1x16xf32>,
    %c56 = arith.constant 56 : index
    %c0_228 = arith.constant 0 : index
    %145 = vector.load %arg12[%c56, %c0_228] : memref<98x16xf32, #tpu.memory_space<vmem>>, vector<1x16xf32>
    %c4_229 = arith.constant 4 : index
    %c64_230 = arith.constant 64 : index
    %146 = vector.load %arg13[%c4_229, %c64_230] : memref<8x256xf32, #tpu.memory_space<vmem>>, vector<1x16xf32>
    tpu.vector_store %arg13[%c4_229, %c64_230], %145 {strides = array<i32>} : memref<8x256xf32, #tpu.memory_space<vmem>>, vector<1x16xf32>,
    %c57 = arith.constant 57 : index
    %c0_231 = arith.constant 0 : index
    %147 = vector.load %arg12[%c57, %c0_231] : memref<98x16xf32, #tpu.memory_space<vmem>>, vector<1x16xf32>
    %c4_232 = arith.constant 4 : index
    %c80_233 = arith.constant 80 : index
    %148 = vector.load %arg13[%c4_232, %c80_233] : memref<8x256xf32, #tpu.memory_space<vmem>>, vector<1x16xf32>
    tpu.vector_store %arg13[%c4_232, %c80_233], %147 {strides = array<i32>} : memref<8x256xf32, #tpu.memory_space<vmem>>, vector<1x16xf32>,
    %c58 = arith.constant 58 : index
    %c0_234 = arith.constant 0 : index
    %149 = vector.load %arg12[%c58, %c0_234] : memref<98x16xf32, #tpu.memory_space<vmem>>, vector<1x16xf32>
    %c4_235 = arith.constant 4 : index
    %c96_236 = arith.constant 96 : index
    %150 = vector.load %arg13[%c4_235, %c96_236] : memref<8x256xf32, #tpu.memory_space<vmem>>, vector<1x16xf32>
    tpu.vector_store %arg13[%c4_235, %c96_236], %149 {strides = array<i32>} : memref<8x256xf32, #tpu.memory_space<vmem>>, vector<1x16xf32>,
    %c59 = arith.constant 59 : index
    %c0_237 = arith.constant 0 : index
    %151 = vector.load %arg12[%c59, %c0_237] : memref<98x16xf32, #tpu.memory_space<vmem>>, vector<1x16xf32>
    %c4_238 = arith.constant 4 : index
    %c112_239 = arith.constant 112 : index
    %152 = vector.load %arg13[%c4_238, %c112_239] : memref<8x256xf32, #tpu.memory_space<vmem>>, vector<1x16xf32>
    tpu.vector_store %arg13[%c4_238, %c112_239], %151 {strides = array<i32>} : memref<8x256xf32, #tpu.memory_space<vmem>>, vector<1x16xf32>,
    %c63 = arith.constant 63 : index
    %c0_240 = arith.constant 0 : index
    %153 = vector.load %arg12[%c63, %c0_240] : memref<98x16xf32, #tpu.memory_space<vmem>>, vector<1x16xf32>
    %c4_241 = arith.constant 4 : index
    %c128_242 = arith.constant 128 : index
    %154 = vector.load %arg13[%c4_241, %c128_242] : memref<8x256xf32, #tpu.memory_space<vmem>>, vector<1x16xf32>
    tpu.vector_store %arg13[%c4_241, %c128_242], %153 {strides = array<i32>} : memref<8x256xf32, #tpu.memory_space<vmem>>, vector<1x16xf32>,
    %c64_243 = arith.constant 64 : index
    %c0_244 = arith.constant 0 : index
    %155 = vector.load %arg12[%c64_243, %c0_244] : memref<98x16xf32, #tpu.memory_space<vmem>>, vector<1x16xf32>
    %c4_245 = arith.constant 4 : index
    %c144_246 = arith.constant 144 : index
    %156 = vector.load %arg13[%c4_245, %c144_246] : memref<8x256xf32, #tpu.memory_space<vmem>>, vector<1x16xf32>
    tpu.vector_store %arg13[%c4_245, %c144_246], %155 {strides = array<i32>} : memref<8x256xf32, #tpu.memory_space<vmem>>, vector<1x16xf32>,
    %c65 = arith.constant 65 : index
    %c0_247 = arith.constant 0 : index
    %157 = vector.load %arg12[%c65, %c0_247] : memref<98x16xf32, #tpu.memory_space<vmem>>, vector<1x16xf32>
    %c4_248 = arith.constant 4 : index
    %c160_249 = arith.constant 160 : index
    %158 = vector.load %arg13[%c4_248, %c160_249] : memref<8x256xf32, #tpu.memory_space<vmem>>, vector<1x16xf32>
    tpu.vector_store %arg13[%c4_248, %c160_249], %157 {strides = array<i32>} : memref<8x256xf32, #tpu.memory_space<vmem>>, vector<1x16xf32>,
    %c66 = arith.constant 66 : index
    %c0_250 = arith.constant 0 : index
    %159 = vector.load %arg12[%c66, %c0_250] : memref<98x16xf32, #tpu.memory_space<vmem>>, vector<1x16xf32>
    %c4_251 = arith.constant 4 : index
    %c176_252 = arith.constant 176 : index
    %160 = vector.load %arg13[%c4_251, %c176_252] : memref<8x256xf32, #tpu.memory_space<vmem>>, vector<1x16xf32>
    tpu.vector_store %arg13[%c4_251, %c176_252], %159 {strides = array<i32>} : memref<8x256xf32, #tpu.memory_space<vmem>>, vector<1x16xf32>,
    %c70 = arith.constant 70 : index
    %c0_253 = arith.constant 0 : index
    %161 = vector.load %arg12[%c70, %c0_253] : memref<98x16xf32, #tpu.memory_space<vmem>>, vector<1x16xf32>
    %c4_254 = arith.constant 4 : index
    %c192_255 = arith.constant 192 : index
    %162 = vector.load %arg13[%c4_254, %c192_255] : memref<8x256xf32, #tpu.memory_space<vmem>>, vector<1x16xf32>
    tpu.vector_store %arg13[%c4_254, %c192_255], %161 {strides = array<i32>} : memref<8x256xf32, #tpu.memory_space<vmem>>, vector<1x16xf32>,
    %c71 = arith.constant 71 : index
    %c0_256 = arith.constant 0 : index
    %163 = vector.load %arg12[%c71, %c0_256] : memref<98x16xf32, #tpu.memory_space<vmem>>, vector<1x16xf32>
    %c4_257 = arith.constant 4 : index
    %c208_258 = arith.constant 208 : index
    %164 = vector.load %arg13[%c4_257, %c208_258] : memref<8x256xf32, #tpu.memory_space<vmem>>, vector<1x16xf32>
    tpu.vector_store %arg13[%c4_257, %c208_258], %163 {strides = array<i32>} : memref<8x256xf32, #tpu.memory_space<vmem>>, vector<1x16xf32>,
    %c72 = arith.constant 72 : index
    %c0_259 = arith.constant 0 : index
    %165 = vector.load %arg12[%c72, %c0_259] : memref<98x16xf32, #tpu.memory_space<vmem>>, vector<1x16xf32>
    %c4_260 = arith.constant 4 : index
    %c224_261 = arith.constant 224 : index
    %166 = vector.load %arg13[%c4_260, %c224_261] : memref<8x256xf32, #tpu.memory_space<vmem>>, vector<1x16xf32>
    tpu.vector_store %arg13[%c4_260, %c224_261], %165 {strides = array<i32>} : memref<8x256xf32, #tpu.memory_space<vmem>>, vector<1x16xf32>,
    %c73 = arith.constant 73 : index
    %c0_262 = arith.constant 0 : index
    %167 = vector.load %arg12[%c73, %c0_262] : memref<98x16xf32, #tpu.memory_space<vmem>>, vector<1x16xf32>
    %c4_263 = arith.constant 4 : index
    %c240_264 = arith.constant 240 : index
    %168 = vector.load %arg13[%c4_263, %c240_264] : memref<8x256xf32, #tpu.memory_space<vmem>>, vector<1x16xf32>
    tpu.vector_store %arg13[%c4_263, %c240_264], %167 {strides = array<i32>} : memref<8x256xf32, #tpu.memory_space<vmem>>, vector<1x16xf32>,
    %c51_265 = arith.constant 51 : index
    %c0_266 = arith.constant 0 : index
    %169 = vector.load %arg12[%c51_265, %c0_266] : memref<98x16xf32, #tpu.memory_space<vmem>>, vector<1x16xf32>
    %c5_267 = arith.constant 5 : index
    %c0_268 = arith.constant 0 : index
    %170 = vector.load %arg13[%c5_267, %c0_268] : memref<8x256xf32, #tpu.memory_space<vmem>>, vector<1x16xf32>
    tpu.vector_store %arg13[%c5_267, %c0_268], %169 {strides = array<i32>} : memref<8x256xf32, #tpu.memory_space<vmem>>, vector<1x16xf32>,
    %c52_269 = arith.constant 52 : index
    %c0_270 = arith.constant 0 : index
    %171 = vector.load %arg12[%c52_269, %c0_270] : memref<98x16xf32, #tpu.memory_space<vmem>>, vector<1x16xf32>
    %c5_271 = arith.constant 5 : index
    %c16_272 = arith.constant 16 : index
    %172 = vector.load %arg13[%c5_271, %c16_272] : memref<8x256xf32, #tpu.memory_space<vmem>>, vector<1x16xf32>
    tpu.vector_store %arg13[%c5_271, %c16_272], %171 {strides = array<i32>} : memref<8x256xf32, #tpu.memory_space<vmem>>, vector<1x16xf32>,
    %c53 = arith.constant 53 : index
    %c0_273 = arith.constant 0 : index
    %173 = vector.load %arg12[%c53, %c0_273] : memref<98x16xf32, #tpu.memory_space<vmem>>, vector<1x16xf32>
    %c5_274 = arith.constant 5 : index
    %c32_275 = arith.constant 32 : index
    %174 = vector.load %arg13[%c5_274, %c32_275] : memref<8x256xf32, #tpu.memory_space<vmem>>, vector<1x16xf32>
    tpu.vector_store %arg13[%c5_274, %c32_275], %173 {strides = array<i32>} : memref<8x256xf32, #tpu.memory_space<vmem>>, vector<1x16xf32>,
    %c54 = arith.constant 54 : index
    %c0_276 = arith.constant 0 : index
    %175 = vector.load %arg12[%c54, %c0_276] : memref<98x16xf32, #tpu.memory_space<vmem>>, vector<1x16xf32>
    %c5_277 = arith.constant 5 : index
    %c48_278 = arith.constant 48 : index
    %176 = vector.load %arg13[%c5_277, %c48_278] : memref<8x256xf32, #tpu.memory_space<vmem>>, vector<1x16xf32>
    tpu.vector_store %arg13[%c5_277, %c48_278], %175 {strides = array<i32>} : memref<8x256xf32, #tpu.memory_space<vmem>>, vector<1x16xf32>,
    %c58_279 = arith.constant 58 : index
    %c0_280 = arith.constant 0 : index
    %177 = vector.load %arg12[%c58_279, %c0_280] : memref<98x16xf32, #tpu.memory_space<vmem>>, vector<1x16xf32>
    %c5_281 = arith.constant 5 : index
    %c64_282 = arith.constant 64 : index
    %178 = vector.load %arg13[%c5_281, %c64_282] : memref<8x256xf32, #tpu.memory_space<vmem>>, vector<1x16xf32>
    tpu.vector_store %arg13[%c5_281, %c64_282], %177 {strides = array<i32>} : memref<8x256xf32, #tpu.memory_space<vmem>>, vector<1x16xf32>,
    %c59_283 = arith.constant 59 : index
    %c0_284 = arith.constant 0 : index
    %179 = vector.load %arg12[%c59_283, %c0_284] : memref<98x16xf32, #tpu.memory_space<vmem>>, vector<1x16xf32>
    %c5_285 = arith.constant 5 : index
    %c80_286 = arith.constant 80 : index
    %180 = vector.load %arg13[%c5_285, %c80_286] : memref<8x256xf32, #tpu.memory_space<vmem>>, vector<1x16xf32>
    tpu.vector_store %arg13[%c5_285, %c80_286], %179 {strides = array<i32>} : memref<8x256xf32, #tpu.memory_space<vmem>>, vector<1x16xf32>,
    %c60 = arith.constant 60 : index
    %c0_287 = arith.constant 0 : index
    %181 = vector.load %arg12[%c60, %c0_287] : memref<98x16xf32, #tpu.memory_space<vmem>>, vector<1x16xf32>
    %c5_288 = arith.constant 5 : index
    %c96_289 = arith.constant 96 : index
    %182 = vector.load %arg13[%c5_288, %c96_289] : memref<8x256xf32, #tpu.memory_space<vmem>>, vector<1x16xf32>
    tpu.vector_store %arg13[%c5_288, %c96_289], %181 {strides = array<i32>} : memref<8x256xf32, #tpu.memory_space<vmem>>, vector<1x16xf32>,
    %c61 = arith.constant 61 : index
    %c0_290 = arith.constant 0 : index
    %183 = vector.load %arg12[%c61, %c0_290] : memref<98x16xf32, #tpu.memory_space<vmem>>, vector<1x16xf32>
    %c5_291 = arith.constant 5 : index
    %c112_292 = arith.constant 112 : index
    %184 = vector.load %arg13[%c5_291, %c112_292] : memref<8x256xf32, #tpu.memory_space<vmem>>, vector<1x16xf32>
    tpu.vector_store %arg13[%c5_291, %c112_292], %183 {strides = array<i32>} : memref<8x256xf32, #tpu.memory_space<vmem>>, vector<1x16xf32>,
    %c65_293 = arith.constant 65 : index
    %c0_294 = arith.constant 0 : index
    %185 = vector.load %arg12[%c65_293, %c0_294] : memref<98x16xf32, #tpu.memory_space<vmem>>, vector<1x16xf32>
    %c5_295 = arith.constant 5 : index
    %c128_296 = arith.constant 128 : index
    %186 = vector.load %arg13[%c5_295, %c128_296] : memref<8x256xf32, #tpu.memory_space<vmem>>, vector<1x16xf32>
    tpu.vector_store %arg13[%c5_295, %c128_296], %185 {strides = array<i32>} : memref<8x256xf32, #tpu.memory_space<vmem>>, vector<1x16xf32>,
    %c66_297 = arith.constant 66 : index
    %c0_298 = arith.constant 0 : index
    %187 = vector.load %arg12[%c66_297, %c0_298] : memref<98x16xf32, #tpu.memory_space<vmem>>, vector<1x16xf32>
    %c5_299 = arith.constant 5 : index
    %c144_300 = arith.constant 144 : index
    %188 = vector.load %arg13[%c5_299, %c144_300] : memref<8x256xf32, #tpu.memory_space<vmem>>, vector<1x16xf32>
    tpu.vector_store %arg13[%c5_299, %c144_300], %187 {strides = array<i32>} : memref<8x256xf32, #tpu.memory_space<vmem>>, vector<1x16xf32>,
    %c67 = arith.constant 67 : index
    %c0_301 = arith.constant 0 : index
    %189 = vector.load %arg12[%c67, %c0_301] : memref<98x16xf32, #tpu.memory_space<vmem>>, vector<1x16xf32>
    %c5_302 = arith.constant 5 : index
    %c160_303 = arith.constant 160 : index
    %190 = vector.load %arg13[%c5_302, %c160_303] : memref<8x256xf32, #tpu.memory_space<vmem>>, vector<1x16xf32>
    tpu.vector_store %arg13[%c5_302, %c160_303], %189 {strides = array<i32>} : memref<8x256xf32, #tpu.memory_space<vmem>>, vector<1x16xf32>,
    %c68 = arith.constant 68 : index
    %c0_304 = arith.constant 0 : index
    %191 = vector.load %arg12[%c68, %c0_304] : memref<98x16xf32, #tpu.memory_space<vmem>>, vector<1x16xf32>
    %c5_305 = arith.constant 5 : index
    %c176_306 = arith.constant 176 : index
    %192 = vector.load %arg13[%c5_305, %c176_306] : memref<8x256xf32, #tpu.memory_space<vmem>>, vector<1x16xf32>
    tpu.vector_store %arg13[%c5_305, %c176_306], %191 {strides = array<i32>} : memref<8x256xf32, #tpu.memory_space<vmem>>, vector<1x16xf32>,
    %c72_307 = arith.constant 72 : index
    %c0_308 = arith.constant 0 : index
    %193 = vector.load %arg12[%c72_307, %c0_308] : memref<98x16xf32, #tpu.memory_space<vmem>>, vector<1x16xf32>
    %c5_309 = arith.constant 5 : index
    %c192_310 = arith.constant 192 : index
    %194 = vector.load %arg13[%c5_309, %c192_310] : memref<8x256xf32, #tpu.memory_space<vmem>>, vector<1x16xf32>
    tpu.vector_store %arg13[%c5_309, %c192_310], %193 {strides = array<i32>} : memref<8x256xf32, #tpu.memory_space<vmem>>, vector<1x16xf32>,
    %c73_311 = arith.constant 73 : index
    %c0_312 = arith.constant 0 : index
    %195 = vector.load %arg12[%c73_311, %c0_312] : memref<98x16xf32, #tpu.memory_space<vmem>>, vector<1x16xf32>
    %c5_313 = arith.constant 5 : index
    %c208_314 = arith.constant 208 : index
    %196 = vector.load %arg13[%c5_313, %c208_314] : memref<8x256xf32, #tpu.memory_space<vmem>>, vector<1x16xf32>
    tpu.vector_store %arg13[%c5_313, %c208_314], %195 {strides = array<i32>} : memref<8x256xf32, #tpu.memory_space<vmem>>, vector<1x16xf32>,
    %c74 = arith.constant 74 : index
    %c0_315 = arith.constant 0 : index
    %197 = vector.load %arg12[%c74, %c0_315] : memref<98x16xf32, #tpu.memory_space<vmem>>, vector<1x16xf32>
    %c5_316 = arith.constant 5 : index
    %c224_317 = arith.constant 224 : index
    %198 = vector.load %arg13[%c5_316, %c224_317] : memref<8x256xf32, #tpu.memory_space<vmem>>, vector<1x16xf32>
    tpu.vector_store %arg13[%c5_316, %c224_317], %197 {strides = array<i32>} : memref<8x256xf32, #tpu.memory_space<vmem>>, vector<1x16xf32>,
    %c75 = arith.constant 75 : index
    %c0_318 = arith.constant 0 : index
    %199 = vector.load %arg12[%c75, %c0_318] : memref<98x16xf32, #tpu.memory_space<vmem>>, vector<1x16xf32>
    %c5_319 = arith.constant 5 : index
    %c240_320 = arith.constant 240 : index
    %200 = vector.load %arg13[%c5_319, %c240_320] : memref<8x256xf32, #tpu.memory_space<vmem>>, vector<1x16xf32>
    tpu.vector_store %arg13[%c5_319, %c240_320], %199 {strides = array<i32>} : memref<8x256xf32, #tpu.memory_space<vmem>>, vector<1x16xf32>,
    %c63_321 = arith.constant 63 : index
    %c0_322 = arith.constant 0 : index
    %201 = vector.load %arg12[%c63_321, %c0_322] : memref<98x16xf32, #tpu.memory_space<vmem>>, vector<1x16xf32>
    %c6 = arith.constant 6 : index
    %c0_323 = arith.constant 0 : index
    %202 = vector.load %arg13[%c6, %c0_323] : memref<8x256xf32, #tpu.memory_space<vmem>>, vector<1x16xf32>
    tpu.vector_store %arg13[%c6, %c0_323], %201 {strides = array<i32>} : memref<8x256xf32, #tpu.memory_space<vmem>>, vector<1x16xf32>,
    %c64_324 = arith.constant 64 : index
    %c0_325 = arith.constant 0 : index
    %203 = vector.load %arg12[%c64_324, %c0_325] : memref<98x16xf32, #tpu.memory_space<vmem>>, vector<1x16xf32>
    %c6_326 = arith.constant 6 : index
    %c16_327 = arith.constant 16 : index
    %204 = vector.load %arg13[%c6_326, %c16_327] : memref<8x256xf32, #tpu.memory_space<vmem>>, vector<1x16xf32>
    tpu.vector_store %arg13[%c6_326, %c16_327], %203 {strides = array<i32>} : memref<8x256xf32, #tpu.memory_space<vmem>>, vector<1x16xf32>,
    %c65_328 = arith.constant 65 : index
    %c0_329 = arith.constant 0 : index
    %205 = vector.load %arg12[%c65_328, %c0_329] : memref<98x16xf32, #tpu.memory_space<vmem>>, vector<1x16xf32>
    %c6_330 = arith.constant 6 : index
    %c32_331 = arith.constant 32 : index
    %206 = vector.load %arg13[%c6_330, %c32_331] : memref<8x256xf32, #tpu.memory_space<vmem>>, vector<1x16xf32>
    tpu.vector_store %arg13[%c6_330, %c32_331], %205 {strides = array<i32>} : memref<8x256xf32, #tpu.memory_space<vmem>>, vector<1x16xf32>,
    %c66_332 = arith.constant 66 : index
    %c0_333 = arith.constant 0 : index
    %207 = vector.load %arg12[%c66_332, %c0_333] : memref<98x16xf32, #tpu.memory_space<vmem>>, vector<1x16xf32>
    %c6_334 = arith.constant 6 : index
    %c48_335 = arith.constant 48 : index
    %208 = vector.load %arg13[%c6_334, %c48_335] : memref<8x256xf32, #tpu.memory_space<vmem>>, vector<1x16xf32>
    tpu.vector_store %arg13[%c6_334, %c48_335], %207 {strides = array<i32>} : memref<8x256xf32, #tpu.memory_space<vmem>>, vector<1x16xf32>,
    %c70_336 = arith.constant 70 : index
    %c0_337 = arith.constant 0 : index
    %209 = vector.load %arg12[%c70_336, %c0_337] : memref<98x16xf32, #tpu.memory_space<vmem>>, vector<1x16xf32>
    %c6_338 = arith.constant 6 : index
    %c64_339 = arith.constant 64 : index
    %210 = vector.load %arg13[%c6_338, %c64_339] : memref<8x256xf32, #tpu.memory_space<vmem>>, vector<1x16xf32>
    tpu.vector_store %arg13[%c6_338, %c64_339], %209 {strides = array<i32>} : memref<8x256xf32, #tpu.memory_space<vmem>>, vector<1x16xf32>,
    %c71_340 = arith.constant 71 : index
    %c0_341 = arith.constant 0 : index
    %211 = vector.load %arg12[%c71_340, %c0_341] : memref<98x16xf32, #tpu.memory_space<vmem>>, vector<1x16xf32>
    %c6_342 = arith.constant 6 : index
    %c80_343 = arith.constant 80 : index
    %212 = vector.load %arg13[%c6_342, %c80_343] : memref<8x256xf32, #tpu.memory_space<vmem>>, vector<1x16xf32>
    tpu.vector_store %arg13[%c6_342, %c80_343], %211 {strides = array<i32>} : memref<8x256xf32, #tpu.memory_space<vmem>>, vector<1x16xf32>,
    %c72_344 = arith.constant 72 : index
    %c0_345 = arith.constant 0 : index
    %213 = vector.load %arg12[%c72_344, %c0_345] : memref<98x16xf32, #tpu.memory_space<vmem>>, vector<1x16xf32>
    %c6_346 = arith.constant 6 : index
    %c96_347 = arith.constant 96 : index
    %214 = vector.load %arg13[%c6_346, %c96_347] : memref<8x256xf32, #tpu.memory_space<vmem>>, vector<1x16xf32>
    tpu.vector_store %arg13[%c6_346, %c96_347], %213 {strides = array<i32>} : memref<8x256xf32, #tpu.memory_space<vmem>>, vector<1x16xf32>,
    %c73_348 = arith.constant 73 : index
    %c0_349 = arith.constant 0 : index
    %215 = vector.load %arg12[%c73_348, %c0_349] : memref<98x16xf32, #tpu.memory_space<vmem>>, vector<1x16xf32>
    %c6_350 = arith.constant 6 : index
    %c112_351 = arith.constant 112 : index
    %216 = vector.load %arg13[%c6_350, %c112_351] : memref<8x256xf32, #tpu.memory_space<vmem>>, vector<1x16xf32>
    tpu.vector_store %arg13[%c6_350, %c112_351], %215 {strides = array<i32>} : memref<8x256xf32, #tpu.memory_space<vmem>>, vector<1x16xf32>,
    %c77 = arith.constant 77 : index
    %c0_352 = arith.constant 0 : index
    %217 = vector.load %arg12[%c77, %c0_352] : memref<98x16xf32, #tpu.memory_space<vmem>>, vector<1x16xf32>
    %c6_353 = arith.constant 6 : index
    %c128_354 = arith.constant 128 : index
    %218 = vector.load %arg13[%c6_353, %c128_354] : memref<8x256xf32, #tpu.memory_space<vmem>>, vector<1x16xf32>
    tpu.vector_store %arg13[%c6_353, %c128_354], %217 {strides = array<i32>} : memref<8x256xf32, #tpu.memory_space<vmem>>, vector<1x16xf32>,
    %c78 = arith.constant 78 : index
    %c0_355 = arith.constant 0 : index
    %219 = vector.load %arg12[%c78, %c0_355] : memref<98x16xf32, #tpu.memory_space<vmem>>, vector<1x16xf32>
    %c6_356 = arith.constant 6 : index
    %c144_357 = arith.constant 144 : index
    %220 = vector.load %arg13[%c6_356, %c144_357] : memref<8x256xf32, #tpu.memory_space<vmem>>, vector<1x16xf32>
    tpu.vector_store %arg13[%c6_356, %c144_357], %219 {strides = array<i32>} : memref<8x256xf32, #tpu.memory_space<vmem>>, vector<1x16xf32>,
    %c79 = arith.constant 79 : index
    %c0_358 = arith.constant 0 : index
    %221 = vector.load %arg12[%c79, %c0_358] : memref<98x16xf32, #tpu.memory_space<vmem>>, vector<1x16xf32>
    %c6_359 = arith.constant 6 : index
    %c160_360 = arith.constant 160 : index
    %222 = vector.load %arg13[%c6_359, %c160_360] : memref<8x256xf32, #tpu.memory_space<vmem>>, vector<1x16xf32>
    tpu.vector_store %arg13[%c6_359, %c160_360], %221 {strides = array<i32>} : memref<8x256xf32, #tpu.memory_space<vmem>>, vector<1x16xf32>,
    %c80_361 = arith.constant 80 : index
    %c0_362 = arith.constant 0 : index
    %223 = vector.load %arg12[%c80_361, %c0_362] : memref<98x16xf32, #tpu.memory_space<vmem>>, vector<1x16xf32>
    %c6_363 = arith.constant 6 : index
    %c176_364 = arith.constant 176 : index
    %224 = vector.load %arg13[%c6_363, %c176_364] : memref<8x256xf32, #tpu.memory_space<vmem>>, vector<1x16xf32>
    tpu.vector_store %arg13[%c6_363, %c176_364], %223 {strides = array<i32>} : memref<8x256xf32, #tpu.memory_space<vmem>>, vector<1x16xf32>,
    %c84 = arith.constant 84 : index
    %c0_365 = arith.constant 0 : index
    %225 = vector.load %arg12[%c84, %c0_365] : memref<98x16xf32, #tpu.memory_space<vmem>>, vector<1x16xf32>
    %c6_366 = arith.constant 6 : index
    %c192_367 = arith.constant 192 : index
    %226 = vector.load %arg13[%c6_366, %c192_367] : memref<8x256xf32, #tpu.memory_space<vmem>>, vector<1x16xf32>
    tpu.vector_store %arg13[%c6_366, %c192_367], %225 {strides = array<i32>} : memref<8x256xf32, #tpu.memory_space<vmem>>, vector<1x16xf32>,
    %c85 = arith.constant 85 : index
    %c0_368 = arith.constant 0 : index
    %227 = vector.load %arg12[%c85, %c0_368] : memref<98x16xf32, #tpu.memory_space<vmem>>, vector<1x16xf32>
    %c6_369 = arith.constant 6 : index
    %c208_370 = arith.constant 208 : index
    %228 = vector.load %arg13[%c6_369, %c208_370] : memref<8x256xf32, #tpu.memory_space<vmem>>, vector<1x16xf32>
    tpu.vector_store %arg13[%c6_369, %c208_370], %227 {strides = array<i32>} : memref<8x256xf32, #tpu.memory_space<vmem>>, vector<1x16xf32>,
    %c86 = arith.constant 86 : index
    %c0_371 = arith.constant 0 : index
    %229 = vector.load %arg12[%c86, %c0_371] : memref<98x16xf32, #tpu.memory_space<vmem>>, vector<1x16xf32>
    %c6_372 = arith.constant 6 : index
    %c224_373 = arith.constant 224 : index
    %230 = vector.load %arg13[%c6_372, %c224_373] : memref<8x256xf32, #tpu.memory_space<vmem>>, vector<1x16xf32>
    tpu.vector_store %arg13[%c6_372, %c224_373], %229 {strides = array<i32>} : memref<8x256xf32, #tpu.memory_space<vmem>>, vector<1x16xf32>,
    %c87 = arith.constant 87 : index
    %c0_374 = arith.constant 0 : index
    %231 = vector.load %arg12[%c87, %c0_374] : memref<98x16xf32, #tpu.memory_space<vmem>>, vector<1x16xf32>
    %c6_375 = arith.constant 6 : index
    %c240_376 = arith.constant 240 : index
    %232 = vector.load %arg13[%c6_375, %c240_376] : memref<8x256xf32, #tpu.memory_space<vmem>>, vector<1x16xf32>
    tpu.vector_store %arg13[%c6_375, %c240_376], %231 {strides = array<i32>} : memref<8x256xf32, #tpu.memory_space<vmem>>, vector<1x16xf32>,
    %c65_377 = arith.constant 65 : index
    %c0_378 = arith.constant 0 : index
    %233 = vector.load %arg12[%c65_377, %c0_378] : memref<98x16xf32, #tpu.memory_space<vmem>>, vector<1x16xf32>
    %c7_379 = arith.constant 7 : index
    %c0_380 = arith.constant 0 : index
    %234 = vector.load %arg13[%c7_379, %c0_380] : memref<8x256xf32, #tpu.memory_space<vmem>>, vector<1x16xf32>
    tpu.vector_store %arg13[%c7_379, %c0_380], %233 {strides = array<i32>} : memref<8x256xf32, #tpu.memory_space<vmem>>, vector<1x16xf32>,
    %c66_381 = arith.constant 66 : index
    %c0_382 = arith.constant 0 : index
    %235 = vector.load %arg12[%c66_381, %c0_382] : memref<98x16xf32, #tpu.memory_space<vmem>>, vector<1x16xf32>
    %c7_383 = arith.constant 7 : index
    %c16_384 = arith.constant 16 : index
    %236 = vector.load %arg13[%c7_383, %c16_384] : memref<8x256xf32, #tpu.memory_space<vmem>>, vector<1x16xf32>
    tpu.vector_store %arg13[%c7_383, %c16_384], %235 {strides = array<i32>} : memref<8x256xf32, #tpu.memory_space<vmem>>, vector<1x16xf32>,
    %c67_385 = arith.constant 67 : index
    %c0_386 = arith.constant 0 : index
    %237 = vector.load %arg12[%c67_385, %c0_386] : memref<98x16xf32, #tpu.memory_space<vmem>>, vector<1x16xf32>
    %c7_387 = arith.constant 7 : index
    %c32_388 = arith.constant 32 : index
    %238 = vector.load %arg13[%c7_387, %c32_388] : memref<8x256xf32, #tpu.memory_space<vmem>>, vector<1x16xf32>
    tpu.vector_store %arg13[%c7_387, %c32_388], %237 {strides = array<i32>} : memref<8x256xf32, #tpu.memory_space<vmem>>, vector<1x16xf32>,
    %c68_389 = arith.constant 68 : index
    %c0_390 = arith.constant 0 : index
    %239 = vector.load %arg12[%c68_389, %c0_390] : memref<98x16xf32, #tpu.memory_space<vmem>>, vector<1x16xf32>
    %c7_391 = arith.constant 7 : index
    %c48_392 = arith.constant 48 : index
    %240 = vector.load %arg13[%c7_391, %c48_392] : memref<8x256xf32, #tpu.memory_space<vmem>>, vector<1x16xf32>
    tpu.vector_store %arg13[%c7_391, %c48_392], %239 {strides = array<i32>} : memref<8x256xf32, #tpu.memory_space<vmem>>, vector<1x16xf32>,
    %c72_393 = arith.constant 72 : index
    %c0_394 = arith.constant 0 : index
    %241 = vector.load %arg12[%c72_393, %c0_394] : memref<98x16xf32, #tpu.memory_space<vmem>>, vector<1x16xf32>
    %c7_395 = arith.constant 7 : index
    %c64_396 = arith.constant 64 : index
    %242 = vector.load %arg13[%c7_395, %c64_396] : memref<8x256xf32, #tpu.memory_space<vmem>>, vector<1x16xf32>
    tpu.vector_store %arg13[%c7_395, %c64_396], %241 {strides = array<i32>} : memref<8x256xf32, #tpu.memory_space<vmem>>, vector<1x16xf32>,
    %c73_397 = arith.constant 73 : index
    %c0_398 = arith.constant 0 : index
    %243 = vector.load %arg12[%c73_397, %c0_398] : memref<98x16xf32, #tpu.memory_space<vmem>>, vector<1x16xf32>
    %c7_399 = arith.constant 7 : index
    %c80_400 = arith.constant 80 : index
    %244 = vector.load %arg13[%c7_399, %c80_400] : memref<8x256xf32, #tpu.memory_space<vmem>>, vector<1x16xf32>
    tpu.vector_store %arg13[%c7_399, %c80_400], %243 {strides = array<i32>} : memref<8x256xf32, #tpu.memory_space<vmem>>, vector<1x16xf32>,
    %c74_401 = arith.constant 74 : index
    %c0_402 = arith.constant 0 : index
    %245 = vector.load %arg12[%c74_401, %c0_402] : memref<98x16xf32, #tpu.memory_space<vmem>>, vector<1x16xf32>
    %c7_403 = arith.constant 7 : index
    %c96_404 = arith.constant 96 : index
    %246 = vector.load %arg13[%c7_403, %c96_404] : memref<8x256xf32, #tpu.memory_space<vmem>>, vector<1x16xf32>
    tpu.vector_store %arg13[%c7_403, %c96_404], %245 {strides = array<i32>} : memref<8x256xf32, #tpu.memory_space<vmem>>, vector<1x16xf32>,
    %c75_405 = arith.constant 75 : index
    %c0_406 = arith.constant 0 : index
    %247 = vector.load %arg12[%c75_405, %c0_406] : memref<98x16xf32, #tpu.memory_space<vmem>>, vector<1x16xf32>
    %c7_407 = arith.constant 7 : index
    %c112_408 = arith.constant 112 : index
    %248 = vector.load %arg13[%c7_407, %c112_408] : memref<8x256xf32, #tpu.memory_space<vmem>>, vector<1x16xf32>
    tpu.vector_store %arg13[%c7_407, %c112_408], %247 {strides = array<i32>} : memref<8x256xf32, #tpu.memory_space<vmem>>, vector<1x16xf32>,
    %c79_409 = arith.constant 79 : index
    %c0_410 = arith.constant 0 : index
    %249 = vector.load %arg12[%c79_409, %c0_410] : memref<98x16xf32, #tpu.memory_space<vmem>>, vector<1x16xf32>
    %c7_411 = arith.constant 7 : index
    %c128_412 = arith.constant 128 : index
    %250 = vector.load %arg13[%c7_411, %c128_412] : memref<8x256xf32, #tpu.memory_space<vmem>>, vector<1x16xf32>
    tpu.vector_store %arg13[%c7_411, %c128_412], %249 {strides = array<i32>} : memref<8x256xf32, #tpu.memory_space<vmem>>, vector<1x16xf32>,
    %c80_413 = arith.constant 80 : index
    %c0_414 = arith.constant 0 : index
    %251 = vector.load %arg12[%c80_413, %c0_414] : memref<98x16xf32, #tpu.memory_space<vmem>>, vector<1x16xf32>
    %c7_415 = arith.constant 7 : index
    %c144_416 = arith.constant 144 : index
    %252 = vector.load %arg13[%c7_415, %c144_416] : memref<8x256xf32, #tpu.memory_space<vmem>>, vector<1x16xf32>
    tpu.vector_store %arg13[%c7_415, %c144_416], %251 {strides = array<i32>} : memref<8x256xf32, #tpu.memory_space<vmem>>, vector<1x16xf32>,
    %c81 = arith.constant 81 : index
    %c0_417 = arith.constant 0 : index
    %253 = vector.load %arg12[%c81, %c0_417] : memref<98x16xf32, #tpu.memory_space<vmem>>, vector<1x16xf32>
    %c7_418 = arith.constant 7 : index
    %c160_419 = arith.constant 160 : index
    %254 = vector.load %arg13[%c7_418, %c160_419] : memref<8x256xf32, #tpu.memory_space<vmem>>, vector<1x16xf32>
    tpu.vector_store %arg13[%c7_418, %c160_419], %253 {strides = array<i32>} : memref<8x256xf32, #tpu.memory_space<vmem>>, vector<1x16xf32>,
    %c82 = arith.constant 82 : index
    %c0_420 = arith.constant 0 : index
    %255 = vector.load %arg12[%c82, %c0_420] : memref<98x16xf32, #tpu.memory_space<vmem>>, vector<1x16xf32>
    %c7_421 = arith.constant 7 : index
    %c176_422 = arith.constant 176 : index
    %256 = vector.load %arg13[%c7_421, %c176_422] : memref<8x256xf32, #tpu.memory_space<vmem>>, vector<1x16xf32>
    tpu.vector_store %arg13[%c7_421, %c176_422], %255 {strides = array<i32>} : memref<8x256xf32, #tpu.memory_space<vmem>>, vector<1x16xf32>,
    %c86_423 = arith.constant 86 : index
    %c0_424 = arith.constant 0 : index
    %257 = vector.load %arg12[%c86_423, %c0_424] : memref<98x16xf32, #tpu.memory_space<vmem>>, vector<1x16xf32>
    %c7_425 = arith.constant 7 : index
    %c192_426 = arith.constant 192 : index
    %258 = vector.load %arg13[%c7_425, %c192_426] : memref<8x256xf32, #tpu.memory_space<vmem>>, vector<1x16xf32>
    tpu.vector_store %arg13[%c7_425, %c192_426], %257 {strides = array<i32>} : memref<8x256xf32, #tpu.memory_space<vmem>>, vector<1x16xf32>,
    %c87_427 = arith.constant 87 : index
    %c0_428 = arith.constant 0 : index
    %259 = vector.load %arg12[%c87_427, %c0_428] : memref<98x16xf32, #tpu.memory_space<vmem>>, vector<1x16xf32>
    %c7_429 = arith.constant 7 : index
    %c208_430 = arith.constant 208 : index
    %260 = vector.load %arg13[%c7_429, %c208_430] : memref<8x256xf32, #tpu.memory_space<vmem>>, vector<1x16xf32>
    tpu.vector_store %arg13[%c7_429, %c208_430], %259 {strides = array<i32>} : memref<8x256xf32, #tpu.memory_space<vmem>>, vector<1x16xf32>,
    %c88 = arith.constant 88 : index
    %c0_431 = arith.constant 0 : index
    %261 = vector.load %arg12[%c88, %c0_431] : memref<98x16xf32, #tpu.memory_space<vmem>>, vector<1x16xf32>
    %c7_432 = arith.constant 7 : index
    %c224_433 = arith.constant 224 : index
    %262 = vector.load %arg13[%c7_432, %c224_433] : memref<8x256xf32, #tpu.memory_space<vmem>>, vector<1x16xf32>
    tpu.vector_store %arg13[%c7_432, %c224_433], %261 {strides = array<i32>} : memref<8x256xf32, #tpu.memory_space<vmem>>, vector<1x16xf32>,
    %c89 = arith.constant 89 : index
    %c0_434 = arith.constant 0 : index
    %263 = vector.load %arg12[%c89, %c0_434] : memref<98x16xf32, #tpu.memory_space<vmem>>, vector<1x16xf32>
    %c7_435 = arith.constant 7 : index
    %c240_436 = arith.constant 240 : index
    %264 = vector.load %arg13[%c7_435, %c240_436] : memref<8x256xf32, #tpu.memory_space<vmem>>, vector<1x16xf32>
    tpu.vector_store %arg13[%c7_435, %c240_436], %263 {strides = array<i32>} : memref<8x256xf32, #tpu.memory_space<vmem>>, vector<1x16xf32>,
    %c0_437 = arith.constant 0 : index
    %c0_438 = arith.constant 0 : index
    %265 = vector.load %arg13[%c0_437, %c0_438] : memref<8x256xf32, #tpu.memory_space<vmem>>, vector<8x256xf32>
    %c0_439 = arith.constant 0 : index
    %c0_440 = arith.constant 0 : index
    %266 = vector.load %arg3[%c0_439, %c0_440] : memref<256x32xf32, #tpu.memory_space<vmem>>, vector<256x32xf32>
    %cst_441 = arith.constant dense<0.000000e+00> : vector<8x32xf32>
    %267 = tpu.matmul %265, %266, %cst_441 {dimension_numbers = #tpu.dot_dimension_numbers<[1], [0], [0], [1], [0, 0, 1, 1], [], []>} : vector<8x256xf32>, vector<256x32xf32>, vector<8x32xf32> -> vector<8x32xf32>
    %c0_442 = arith.constant 0 : index
    %c0_443 = arith.constant 0 : index
    %268 = vector.load %arg4[%c0_442, %c0_443] : memref<1x32xf32, #tpu.memory_space<vmem>>, vector<1x32xf32>
    %269 = vector.broadcast %268 : vector<1x32xf32> to vector<8x32xf32>
    %270 = arith.addf %267, %269 : vector<8x32xf32>
    %cst_444 = arith.constant 0.000000e+00 : f32
    %271 = vector.broadcast %cst_444 : f32 to vector<8x32xf32>
    %272 = arith.maximumf %270, %271 : vector<8x32xf32>
    %c0_445 = arith.constant 0 : index
    %c0_446 = arith.constant 0 : index
    %273 = vector.load %arg14[%c0_445, %c0_446] : memref<8x32xf32, #tpu.memory_space<vmem>>, vector<8x32xf32>
    tpu.vector_store %arg14[%c0_445, %c0_446], %272 {strides = array<i32>} : memref<8x32xf32, #tpu.memory_space<vmem>>, vector<8x32xf32>,
    %c0_447 = arith.constant 0 : index
    %c0_448 = arith.constant 0 : index
    %274 = vector.load %arg14[%c0_447, %c0_448] : memref<8x32xf32, #tpu.memory_space<vmem>>, vector<1x32xf32>
    %c0_449 = arith.constant 0 : index
    %c0_450 = arith.constant 0 : index
    %275 = vector.load %arg15[%c0_449, %c0_450] : memref<2x128xf32, #tpu.memory_space<vmem>>, vector<1x32xf32>
    tpu.vector_store %arg15[%c0_449, %c0_450], %274 {strides = array<i32>} : memref<2x128xf32, #tpu.memory_space<vmem>>, vector<1x32xf32>,
    %c1_451 = arith.constant 1 : index
    %c0_452 = arith.constant 0 : index
    %276 = vector.load %arg14[%c1_451, %c0_452] : memref<8x32xf32, #tpu.memory_space<vmem>>, vector<1x32xf32>
    %c0_453 = arith.constant 0 : index
    %c32_454 = arith.constant 32 : index
    %277 = vector.load %arg15[%c0_453, %c32_454] : memref<2x128xf32, #tpu.memory_space<vmem>>, vector<1x32xf32>
    tpu.vector_store %arg15[%c0_453, %c32_454], %276 {strides = array<i32>} : memref<2x128xf32, #tpu.memory_space<vmem>>, vector<1x32xf32>,
    %c2_455 = arith.constant 2 : index
    %c0_456 = arith.constant 0 : index
    %278 = vector.load %arg14[%c2_455, %c0_456] : memref<8x32xf32, #tpu.memory_space<vmem>>, vector<1x32xf32>
    %c0_457 = arith.constant 0 : index
    %c64_458 = arith.constant 64 : index
    %279 = vector.load %arg15[%c0_457, %c64_458] : memref<2x128xf32, #tpu.memory_space<vmem>>, vector<1x32xf32>
    tpu.vector_store %arg15[%c0_457, %c64_458], %278 {strides = array<i32>} : memref<2x128xf32, #tpu.memory_space<vmem>>, vector<1x32xf32>,
    %c3_459 = arith.constant 3 : index
    %c0_460 = arith.constant 0 : index
    %280 = vector.load %arg14[%c3_459, %c0_460] : memref<8x32xf32, #tpu.memory_space<vmem>>, vector<1x32xf32>
    %c0_461 = arith.constant 0 : index
    %c96_462 = arith.constant 96 : index
    %281 = vector.load %arg15[%c0_461, %c96_462] : memref<2x128xf32, #tpu.memory_space<vmem>>, vector<1x32xf32>
    tpu.vector_store %arg15[%c0_461, %c96_462], %280 {strides = array<i32>} : memref<2x128xf32, #tpu.memory_space<vmem>>, vector<1x32xf32>,
    %c4_463 = arith.constant 4 : index
    %c0_464 = arith.constant 0 : index
    %282 = vector.load %arg14[%c4_463, %c0_464] : memref<8x32xf32, #tpu.memory_space<vmem>>, vector<1x32xf32>
    %c1_465 = arith.constant 1 : index
    %c0_466 = arith.constant 0 : index
    %283 = vector.load %arg15[%c1_465, %c0_466] : memref<2x128xf32, #tpu.memory_space<vmem>>, vector<1x32xf32>
    tpu.vector_store %arg15[%c1_465, %c0_466], %282 {strides = array<i32>} : memref<2x128xf32, #tpu.memory_space<vmem>>, vector<1x32xf32>,
    %c5_467 = arith.constant 5 : index
    %c0_468 = arith.constant 0 : index
    %284 = vector.load %arg14[%c5_467, %c0_468] : memref<8x32xf32, #tpu.memory_space<vmem>>, vector<1x32xf32>
    %c1_469 = arith.constant 1 : index
    %c32_470 = arith.constant 32 : index
    %285 = vector.load %arg15[%c1_469, %c32_470] : memref<2x128xf32, #tpu.memory_space<vmem>>, vector<1x32xf32>
    tpu.vector_store %arg15[%c1_469, %c32_470], %284 {strides = array<i32>} : memref<2x128xf32, #tpu.memory_space<vmem>>, vector<1x32xf32>,
    %c6_471 = arith.constant 6 : index
    %c0_472 = arith.constant 0 : index
    %286 = vector.load %arg14[%c6_471, %c0_472] : memref<8x32xf32, #tpu.memory_space<vmem>>, vector<1x32xf32>
    %c1_473 = arith.constant 1 : index
    %c64_474 = arith.constant 64 : index
    %287 = vector.load %arg15[%c1_473, %c64_474] : memref<2x128xf32, #tpu.memory_space<vmem>>, vector<1x32xf32>
    tpu.vector_store %arg15[%c1_473, %c64_474], %286 {strides = array<i32>} : memref<2x128xf32, #tpu.memory_space<vmem>>, vector<1x32xf32>,
    %c7_475 = arith.constant 7 : index
    %c0_476 = arith.constant 0 : index
    %288 = vector.load %arg14[%c7_475, %c0_476] : memref<8x32xf32, #tpu.memory_space<vmem>>, vector<1x32xf32>
    %c1_477 = arith.constant 1 : index
    %c96_478 = arith.constant 96 : index
    %289 = vector.load %arg15[%c1_477, %c96_478] : memref<2x128xf32, #tpu.memory_space<vmem>>, vector<1x32xf32>
    tpu.vector_store %arg15[%c1_477, %c96_478], %288 {strides = array<i32>} : memref<2x128xf32, #tpu.memory_space<vmem>>, vector<1x32xf32>,
    %c0_479 = arith.constant 0 : index
    %c0_480 = arith.constant 0 : index
    %290 = vector.load %arg15[%c0_479, %c0_480] : memref<2x128xf32, #tpu.memory_space<vmem>>, vector<2x128xf32>
    %c0_481 = arith.constant 0 : index
    %c0_482 = arith.constant 0 : index
    %291 = vector.load %arg6[%c0_481, %c0_482] : memref<128x256xf32, #tpu.memory_space<vmem>>, vector<128x256xf32>
    %cst_483 = arith.constant dense<0.000000e+00> : vector<2x256xf32>
    %292 = tpu.matmul %290, %291, %cst_483 {dimension_numbers = #tpu.dot_dimension_numbers<[1], [0], [0], [1], [0, 0, 1, 1], [], []>} : vector<2x128xf32>, vector<128x256xf32>, vector<2x256xf32> -> vector<2x256xf32>
    %c0_484 = arith.constant 0 : index
    %c0_485 = arith.constant 0 : index
    %293 = vector.load %arg5[%c0_484, %c0_485] : memref<2x4xf32, #tpu.memory_space<vmem>>, vector<2x4xf32>
    %c0_486 = arith.constant 0 : index
    %c0_487 = arith.constant 0 : index
    %294 = vector.load %arg7[%c0_486, %c0_487] : memref<4x256xf32, #tpu.memory_space<vmem>>, vector<4x256xf32>
    %cst_488 = arith.constant dense<0.000000e+00> : vector<2x256xf32>
    %295 = tpu.matmul %293, %294, %cst_488 {dimension_numbers = #tpu.dot_dimension_numbers<[1], [0], [0], [1], [0, 0, 1, 1], [], []>} : vector<2x4xf32>, vector<4x256xf32>, vector<2x256xf32> -> vector<2x256xf32>
    %296 = arith.addf %292, %295 : vector<2x256xf32>
    %c0_489 = arith.constant 0 : index
    %c0_490 = arith.constant 0 : index
    %297 = vector.load %arg8[%c0_489, %c0_490] : memref<1x256xf32, #tpu.memory_space<vmem>>, vector<1x256xf32>
    %298 = vector.broadcast %297 : vector<1x256xf32> to vector<2x256xf32>
    %299 = arith.addf %296, %298 : vector<2x256xf32>
    %cst_491 = arith.constant 0.000000e+00 : f32
    %300 = vector.broadcast %cst_491 : f32 to vector<2x256xf32>
    %301 = arith.maximumf %299, %300 : vector<2x256xf32>
    %c0_492 = arith.constant 0 : index
    %c0_493 = arith.constant 0 : index
    %302 = vector.load %arg9[%c0_492, %c0_493] : memref<1x256xf32, #tpu.memory_space<vmem>>, vector<1x256xf32>
    %303 = vector.broadcast %302 : vector<1x256xf32> to vector<2x256xf32>
    %304 = arith.mulf %301, %303 : vector<2x256xf32>
    %cst_494 = arith.constant dense<0.000000e+00> : vector<2xf32>
    %305 = vector.multi_reduction <add>, %304, %cst_494 [1] : vector<2x256xf32> to vector<2xf32>
    %306 = vector.shape_cast %305 : vector<2xf32> to vector<2x1xf32>
    %c0_495 = arith.constant 0 : index
    %c0_496 = arith.constant 0 : index
    %307 = vector.load %arg10[%c0_495, %c0_496] : memref<1x1xf32, #tpu.memory_space<vmem>>, vector<1x1xf32>
    %308 = vector.broadcast %307 : vector<1x1xf32> to vector<2x1xf32>
    %309 = arith.addf %306, %308 : vector<2x1xf32>
    %c0_497 = arith.constant 0 : index
    %c0_498 = arith.constant 0 : index
    %310 = vector.load %arg11[%c0_497, %c0_498] : memref<2x1xf32, #tpu.memory_space<vmem>>, vector<2x1xf32>
    tpu.vector_store %arg11[%c0_497, %c0_498], %309 {strides = array<i32>} : memref<2x1xf32, #tpu.memory_space<vmem>>, vector<2x1xf32>,
    return
  }
}

</mosaic_0001>

<bundles_post_ra>
// kernel: qofmu_forward.1
= control target key start
LH: loop header
LB: loop body
LE: loop exit
PB: predicated region body
PF: predicated region fallthrough
CT: control target
= control target key end

     0   :  { %vm227_vm0 = vcmask 130048   ;;  %vm243_vm1 = vcmask 122880   ;;  %s1258_s22 = smov 32   ;;  %s1259_s23 = smov 16   ;;  %vm250_vm2 = vcmask 254080   ;;  %vm257_vm3 = vcmask 385280   ;;  %s1988_s1 = inlined_call_operand.vmem [shape: f32[256,16], index: 1, kind: input, shape index: {}]   ;;  %s1989_s2 = inlined_call_operand.vmem [shape: f32[1,16], index: 2, kind: input, shape index: {}]   ;;  %s1990_s0 = inlined_call_operand.vmem [shape: f32[98,256], index: 0, kind: input, shape index: {}]   ;;  %s1991_s3 = inlined_call_operand.vmem [shape: f32[256,32], index: 3, kind: input, shape index: {}]   ;;  %s1992_s4 = inlined_call_operand.vmem [shape: f32[1,32], index: 4, kind: input, shape index: {}]   ;;  %s1993_s7 = inlined_call_operand.vmem [shape: f32[4,256], index: 7, kind: input, shape index: {}]   ;;  %s1994_s6 = inlined_call_operand.vmem [shape: f32[128,256], index: 6, kind: input, shape index: {}]   ;;  %s1995_s5 = inlined_call_operand.vmem [shape: f32[2,4], index: 5, kind: input, shape index: {}]   ;;  %s1996_s8 = inlined_call_operand.vmem [shape: f32[1,256], index: 8, kind: input, shape index: {}]   ;;  %s1997_s9 = inlined_call_operand.vmem [shape: f32[1,256], index: 9, kind: input, shape index: {}]   ;;  %s1998_s10 = inlined_call_operand.<no memory space> [shape: f32[1,1], index: 10, kind: input, shape index: {}]   ;;  %s1999_s11 = inlined_call_operand.vmem [shape: f32[2,1], index: 11, kind: output, shape index: {}]  }
   0x1   :  { %v81_v0 = vld [vmem:[%s1988_s1 + $0x78] sm:$0xff]  ;;  %v80_v1 = vld [vmem:[%s1988_s1 + $0x70] sm:$0xff]  ;;  %v79_v4 = vld [vmem:[%s1988_s1 + $0x68] sm:$0xff]  ;;  %s1260_s24 = smov 64   ;;  %s1261_s25 = smov 96   ;;  %vm264_vm4 = vcmask 516480  }
   0x2   :  { %v97_v2 = vld [vmem:[%s1988_s1 + $0xf8] sm:$0xff]  ;;  %102 = vmatpush.msra.mxu0 %v81_v0  ;;  %v96_v3 = vld [vmem:[%s1988_s1 + $0xf0] sm:$0xff]  ;;  %v95_v5 = vld [vmem:[%s1988_s1 + $0xe8] sm:$0xff]  ;;  %s1262_s26 = smov 80   ;;  %vm271_vm5 = vcmask 647680   ;;  %vm278_vm6 = vcmask 778880  }
   0x3   :  { %158 = vmatpush.msra.mxu1 %v97_v2  ;;  %v78_v6 = vld [vmem:[%s1988_s1 + $0x60] sm:$0xff]  ;;  %v77_v8 = vld [vmem:[%s1988_s1 + $0x58] sm:$0xff]  ;;  %v76_v10 = vld [vmem:[%s1988_s1 + $0x50] sm:$0xff]  ;;  %vm285_vm7 = vcmask 910080   ;;  %vm292_vm8 = vcmask 1041280   ;;  %vm1033_vm9 = vcmask 261120  }
   0x4   :  { %103 = vmatpush.msra.mxu0 %v80_v1  ;;  %v94_v7 = vld [vmem:[%s1988_s1 + $0xe0] sm:$0xff]  ;;  %v93_v9 = vld [vmem:[%s1988_s1 + $0xd8] sm:$0xff]  ;;  %v92_v11 = vld [vmem:[%s1988_s1 + $0xd0] sm:$0xff]  ;;  %vm1036_vm10 = vcmask 253952   ;;  %vm1122_vm11 = vcmask 1043456   ;;  %vm1043_vm12 = vcmask 516352  }
   0x5   :  { %159 = vmatpush.msra.mxu1 %v96_v3  ;;  %v75_v12 = vld [vmem:[%s1988_s1 + $0x48] sm:$0xff]  ;;  %v74_v14 = vld [vmem:[%s1988_s1 + $0x40] sm:$0xff]  ;;  %v73_v16 = vld [vmem:[%s1988_s1 + $0x38] sm:$0xff]  ;;  %vm1118_vm13 = vcmask 31744   ;;  %vm1050_vm14 = vcmask 778752   ;;  %vm1057_vm15 = vcmask 1041152  }
   0x6   :  { %104 = vmatpush.msra.mxu0 %v79_v4  ;;  %v91_v13 = vld [vmem:[%s1988_s1 + $0xc8] sm:$0xff]  ;;  %v90_v15 = vld [vmem:[%s1988_s1 + $0xc0] sm:$0xff]  ;;  %v89_v17 = vld [vmem:[%s1988_s1 + $0xb8] sm:$0xff] }
   0x7   :  { %160 = vmatpush.msra.mxu1 %v95_v5  ;;  %v72_v18 = vld [vmem:[%s1988_s1 + $0x30] sm:$0xff]  ;;  %v71_v20 = vld [vmem:[%s1988_s1 + $0x28] sm:$0xff]  ;;  %v70_v22 = vld [vmem:[%s1988_s1 + $0x20] sm:$0xff] }
   0x8   :  { %105 = vmatpush.msra.mxu0 %v78_v6  ;;  %v88_v19 = vld [vmem:[%s1988_s1 + $0xb0] sm:$0xff]  ;;  %v87_v21 = vld [vmem:[%s1988_s1 + $0xa8] sm:$0xff]  ;;  %v86_v23 = vld [vmem:[%s1988_s1 + $0xa0] sm:$0xff] }
   0x9   :  { %161 = vmatpush.msra.mxu1 %v94_v7  ;;  %v69_v24 = vld [vmem:[%s1988_s1 + $0x18] sm:$0xff]  ;;  %v68_v26 = vld [vmem:[%s1988_s1 + $0x10] sm:$0xff]  ;;  %v67_v28 = vld [vmem:[%s1988_s1 + $0x8] sm:$0xff] }
   0xa   :  { %106 = vmatpush.msra.mxu0 %v77_v8  ;;  %v85_v25 = vld [vmem:[%s1988_s1 + $0x98] sm:$0xff]  ;;  %v84_v27 = vld [vmem:[%s1988_s1 + $0x90] sm:$0xff]  ;;  %v83_v29 = vld [vmem:[%s1988_s1 + $0x88] sm:$0xff] }
   0xb   :  { %162 = vmatpush.msra.mxu1 %v93_v9  ;;  %v66_v30 = vld [vmem:[%s1988_s1] sm:$0xff]  ;;  %v41_v33 = vld [vmem:[%s1990_s0 + $0x8] sm:$0xff]  ;;  %v42_v34 = vld [vmem:[%s1990_s0 + $0x10] sm:$0xff] }
   0xc   :  { %107 = vmatpush.msra.mxu0 %v76_v10  ;;  %v82_v31 = vld [vmem:[%s1988_s1 + $0x80] sm:$0xff]  ;;  %v43_v35 = vld [vmem:[%s1990_s0 + $0x18] sm:$0xff]  ;;  %v45_v37 = vld [vmem:[%s1990_s0 + $0x28] sm:$0xff]  ;;  %s1263_s1 = smov 112  }
   0xd   :  { %163 = vmatpush.msra.mxu1 %v92_v11  ;;  %v40_v32 = vld [vmem:[%s1990_s0] sm:$0xff]  ;;  %v46_v38 = vld [vmem:[%s1990_s0 + $0x30] sm:$0xff]  ;;  %v47_v39 = vld [vmem:[%s1990_s0 + $0x38] sm:$0xff] }
   0xe   :  { %108 = vmatpush.msra.mxu0 %v75_v12  ;;  %v44_v36 = vld [vmem:[%s1990_s0 + $0x20] sm:$0xff]  ;;  %v49_v41 = vld [vmem:[%s1990_s0 + $0x48] sm:$0xff]  ;;  %v50_v42 = vld [vmem:[%s1990_s0 + $0x50] sm:$0xff] }
   0xf   :  { %164 = vmatpush.msra.mxu1 %v91_v13  ;;  %v48_v40 = vld [vmem:[%s1990_s0 + $0x40] sm:$0xff]  ;;  %v51_v43 = vld [vmem:[%s1990_s0 + $0x58] sm:$0xff]  ;;  %v53_v45 = vld [vmem:[%s1990_s0 + $0x68] sm:$0xff] }
  0x10   :  { %109 = vmatpush.msra.mxu0 %v74_v14  ;;  %v52_v44 = vld [vmem:[%s1990_s0 + $0x60] sm:$0xff]  ;;  %v54_v46 = vld [vmem:[%s1990_s0 + $0x70] sm:$0xff]  ;;  %v55_v47 = vld [vmem:[%s1990_s0 + $0x78] sm:$0xff] }
  0x11   :  { %165 = vmatpush.msra.mxu1 %v90_v15  ;;  %v1471_v48 = vld [vmem:[%s1989_s2] ss:$0 sm:$0xff]  ;;  %v57_v52 = vld [vmem:[%s1990_s0 + $0x88] sm:$0xff]  ;;  %s1257_s2 = smov 48  }
  0x12   :  { %110 = vmatpush.msra.mxu0 %v73_v16  ;;  %v56_v51 = vld [vmem:[%s1990_s0 + $0x80] sm:$0xff] }
  0x13   :  { %166 = vmatpush.msra.mxu1 %v89_v17 }
  0x14   :  { %111 = vmatpush.msra.mxu0 %v72_v18 }
  0x15   :  { %167 = vmatpush.msra.mxu1 %v88_v19 }
  0x16   :  { %112 = vmatpush.msra.mxu0 %v71_v20  ;;  %v58_v20 = vld [vmem:[%s1990_s0 + $0x90] sm:$0xff] }
  0x17   :  { %168 = vmatpush.msra.mxu1 %v87_v21  ;;  %v59_v21 = vld [vmem:[%s1990_s0 + $0x98] sm:$0xff] }
  0x18   :  { %113 = vmatpush.msra.mxu0 %v70_v22 }
  0x19   :  { %169 = vmatpush.msra.mxu1 %v86_v23 }
  0x1a   :  { %114 = vmatpush.msra.mxu0 %v69_v24 }
  0x1b   :  { %170 = vmatpush.msra.mxu1 %v85_v25 }
  0x1c   :  { %115 = vmatpush.msra.mxu0 %v68_v26 }
  0x1d   :  { %171 = vmatpush.msra.mxu1 %v84_v27 }
  0x1e   :  { %116 = vmatpush.msra.mxu0 %v67_v28 }
  0x1f   :  { %172 = vmatpush.msra.mxu1 %v83_v29 }
  0x20   :  { %117 = vmatpush.msra.mxu0 %v66_v30 }
  0x21   :  { %173 = vmatpush.msra.mxu1 %v82_v31  ;;  %118 = vmatmul.f32.vlgmr.msra.gmra.mxu0 %v40_v32 }
  0x22   :  { %174 = vmatmul.f32.vlgmr.msra.gmra.mxu1 %v41_v33 }
  0x29   :  { %121 = vmatmul.f32.gmra.mxu0 %v42_v34 }
  0x2a   :  { %177 = vmatmul.f32.gmra.mxu1 %v43_v35 }
  0x31   :  { %124 = vmatmul.f32.gmra.mxu0 %v44_v36 }
  0x32   :  { %180 = vmatmul.f32.gmra.mxu1 %v45_v37 }
  0x39   :  { %127 = vmatmul.f32.gmra.mxu0 %v46_v38 }
  0x3a   :  { %183 = vmatmul.f32.gmra.mxu1 %v47_v39 }
  0x41   :  { %130 = vmatmul.f32.gmra.mxu0 %v48_v40 }
  0x42   :  { %186 = vmatmul.f32.gmra.mxu1 %v49_v41 }
  0x49   :  { %133 = vmatmul.f32.gmra.mxu0 %v50_v42 }
  0x4a   :  { %189 = vmatmul.f32.gmra.mxu1 %v51_v43 }
  0x51   :  { %136 = vmatmul.f32.gmra.mxu0 %v52_v44  ;;  %v60_v44 = vld [vmem:[%s1990_s0 + $0xa0] sm:$0xff] }
  0x52   :  { %192 = vmatmul.f32.gmra.mxu1 %v53_v45  ;;  %v61_v45 = vld [vmem:[%s1990_s0 + $0xa8] sm:$0xff] }
  0x59   :  { %139 = vmatmul.f32.gmra.mxu0 %v54_v46 }
  0x5a   :  { %195 = vmatmul.f32.gmra.mxu1 %v55_v47 }
  0x61   :  { %142 = vmatmul.f32.gmra.mxu0 %v56_v51 }
  0x62   :  { %198 = vmatmul.f32.gmra.mxu1 %v57_v52 }
  0x69   :  { %145 = vmatmul.f32.gmra.mxu0 %v58_v20  ;;  %v63_v20 = vld [vmem:[%s1990_s0 + $0xb8] sm:$0xff] }
  0x6a   :  { %201 = vmatmul.f32.gmra.mxu1 %v59_v21 }
  0x71   :  { %148 = vmatmul.f32.gmra.mxu0 %v60_v44 }
  0x72   :  { %204 = vmatmul.f32.gmra.mxu1 %v61_v45 }
  0x7a   :  { %207 = vmatmul.f32.gmra.mxu1 %v63_v20 }
  0x9e   :  { %v119_v49 = vpop.f32.mrf.mxu0 }
  0x9f   :  { %v175_v50 = vpop.f32.mrf.mxu1  ;;  %v120_v53 = vadd.f32 %v1471_v48, %v119_v49 }
  0xa1   :  { %v176_v54 = vadd.f32 %v175_v50, %v120_v53 }
  0xa3   :  { %v214_v55 = vmax.f32 %v176_v54, 0.0 }
  0xa5   :  { %228 = vst.msk [vmem:[#allocation2] sm:$0xff] %vm227_vm0, %v214_v55 }
  0xa6   :  { %v122_v56 = vpop.f32.mrf.mxu0 }
  0xa7   :  { %v178_v57 = vpop.f32.mrf.mxu1  ;;  %v123_v58 = vadd.f32 %v1471_v48, %v122_v56 }
  0xa9   :  { %v179_v59 = vadd.f32 %v178_v57, %v123_v58 }
  0xab   :  { %v215_v60 = vmax.f32 %v179_v59, 0.0 }
  0xac   :  { %v259_v61 = vld [vmem:[#allocation2 + $0x3] sm:$0x1]  ;;  %v252_v62 = vld [vmem:[#allocation2 + $0x2] sm:$0x1]  ;;  %v245_v63 = vld [vmem:[#allocation2 + $0x1] sm:$0x1] }
  0xad   :  { %229 = vst.msk [vmem:[#allocation2 + $0x8] sm:$0xff] %vm227_vm0, %v215_v60  ;;  %261 = vrot.lane.b32.xlu1 %v259_v61, %s1257_s2  ;;  %254 = vrot.lane.b32.xlu2 %v252_v62, %s1258_s22  ;;  %v242_v2 = vld [vmem:[#allocation2] sm:$0x1]  ;;  %v338_v4 = vld [vmem:[#allocation2 + $0x2] sm:$0x1] }
  0xae   :  { %247 = vrot.lane.b32.xlu0 %v245_v63, %s1259_s23  ;;  %v125_v0 = vpop.f32.mrf.mxu0  ;;  %244 = vst.msk [vmem:[#allocation3] sm:$0x1] %vm243_vm1, %v242_v2  ;;  %v266_v8 = vld [vmem:[#allocation2 + $0x7] sm:$0x1]  ;;  %v340_v9 = vld [vmem:[#allocation2 + $0x3] sm:$0x1] }
  0xaf   :  { %v181_v1 = vpop.f32.mrf.mxu1  ;;  %v126_v3 = vadd.f32 %v1471_v48, %v125_v0  ;;  %339 = vst.msk [vmem:[#allocation3 + $0x1] sm:$0x1] %vm243_vm1, %v338_v4  ;;  %v346_v14 = vld [vmem:[#allocation2 + $0x4] sm:$0x1]  ;;  %v352_v19 = vld [vmem:[#allocation2 + $0x5] sm:$0x1] }
  0xb1   :  { %v182_v5 = vadd.f32 %v181_v1, %v126_v3 }
  0xb3   :  { %v216_v6 = vmax.f32 %v182_v5, 0.0 }
  0xb4   :  { %v428_v7 = vld [vmem:[#allocation2 + $0xf] sm:$0x1]  ;;  %v294_v10 = vld [vmem:[#allocation2 + $0xe] sm:$0x1]  ;;  %v358_v12 = vld [vmem:[#allocation2 + $0x9] sm:$0x1] }
  0xb5   :  { %430 = vrot.lane.b32.xlu1 %v428_v7, %s1259_s23  ;;  %268 = vrot.lane.b32.xlu2 %v266_v8, %s1260_s24  ;;  %230 = vst.msk [vmem:[#allocation2 + $0x10] sm:$0xff] %vm227_vm0, %v216_v6  ;;  %v426_v11 = vld [vmem:[#allocation2 + $0xe] sm:$0x1]  ;;  %v296_v13 = vld [vmem:[#allocation2 + $0xf] sm:$0x1] }
  0xb6   :  { %342 = vrot.lane.b32.xlu0 %v340_v9, %s1259_s23  ;;  %295 = vst.msk [vmem:[#allocation3 + $0x8] sm:$0x1] %vm243_vm1, %v294_v10  ;;  %v280_v17 = vld [vmem:[#allocation2 + $0x9] sm:$0x1]  ;;  %v364_v18 = vld [vmem:[#allocation2 + $0xa] sm:$0x1]  ;;  %v128_v25 = vpop.f32.mrf.mxu0 }
  0xb7   :  { %427 = vst.msk [vmem:[#allocation3 + $0x2] sm:$0x1] %vm243_vm1, %v426_v11  ;;  %v376_v22 = vld [vmem:[#allocation2 + $0xc] sm:$0x1]  ;;  %v287_v23 = vld [vmem:[#allocation2 + $0xa] sm:$0x1]  ;;  %v184_v26 = vpop.f32.mrf.mxu1  ;;  %v129_v27 = vadd.f32 %v1471_v48, %v128_v25 }
  0xb8   :  { %v273_v24 = vld [vmem:[#allocation2 + $0x8] sm:$0x1]  ;;  %v370_v32 = vld [vmem:[#allocation2 + $0xb] sm:$0x1] }
  0xb9   :  { %v185_v28 = vadd.f32 %v184_v26, %v129_v27 }
  0xbb   :  { %v217_v31 = vmax.f32 %v185_v28, 0.0 }
  0xbc   :  { %v514_v15 = vld [vmem:[#allocation2 + $0x10] sm:$0x1]  ;;  %v516_v29 = vld [vmem:[#allocation2 + $0x11] sm:$0x1]  ;;  %v522_v30 = vld [vmem:[#allocation2 + $0x12] sm:$0x1] }
  0xbd   :  { %360 = vrot.lane.b32.xlu1 %v358_v12, %s1260_s24  ;;  %298 = vrot.lane.b32.xlu2 %v296_v13, %s1259_s23  ;;  %v382_v16 = vld [vmem:[#allocation2 + $0x10] sm:$0x1]  ;;  %515 = vst.msk [vmem:[#allocation3 + $0x3] sm:$0x1] %vm243_vm1, %v514_v15  ;;  %v440_v34 = vld [vmem:[#allocation2 + $0x11] sm:$0x1] }
  0xbe   :  { %348 = vrot.lane.b32.xlu0 %v346_v14, %s1258_s22  ;;  %383 = vst.msk [vmem:[#allocation3 + $0x9] sm:$0x1] %vm243_vm1, %v382_v16  ;;  %v434_v33 = vld [vmem:[#allocation2 + $0x10] sm:$0x1]  ;;  %v384_v38 = vld [vmem:[#allocation2 + $0x11] sm:$0x1]  ;;  %v131_v41 = vpop.f32.mrf.mxu0 }
  0xbf   :  { %231 = vst.msk [vmem:[#allocation2 + $0x18] sm:$0xff] %vm227_vm0, %v217_v31  ;;  %v302_v35 = vld [vmem:[#allocation2 + $0x10] sm:$0x1]  ;;  %v390_v39 = vld [vmem:[#allocation2 + $0x12] sm:$0x1]  ;;  %v132_v42 = vadd.f32 %v1471_v48, %v131_v41  ;;  %v187_v43 = vpop.f32.mrf.mxu1 }
  0xc0   :  { %v446_v40 = vld [vmem:[#allocation2 + $0x15] sm:$0x1]  ;;  %v528_v49 = vld [vmem:[#allocation2 + $0x13] sm:$0x1]  ;;  %v534_v50 = vld [vmem:[#allocation2 + $0x17] sm:$0x1] }
  0xc1   :  { %v188_v46 = vadd.f32 %v187_v43, %v132_v42  ;;  %v396_v51 = vld [vmem:[#allocation2 + $0x13] sm:$0x1]  ;;  %v308_v52 = vld [vmem:[#allocation2 + $0x11] sm:$0x1]  ;;  %v314_v53 = vld [vmem:[#allocation2 + $0x15] sm:$0x1] }
  0xc2   :  { %v320_v54 = vld [vmem:[#allocation2 + $0x16] sm:$0x1]  ;;  %v458_v62 = vld [vmem:[#allocation2 + $0x17] sm:$0x1] }
  0xc3   :  { %v218_v47 = vmax.f32 %v188_v46, 0.0  ;;  %v452_v61 = vld [vmem:[#allocation2 + $0x16] sm:$0x1]  ;;  %v402_v3 = vld [vmem:[#allocation2 + $0x17] sm:$0x1] }
  0xc5   :  { %282 = vrot.lane.b32.xlu1 %v280_v17, %s1261_s25  ;;  %366 = vrot.lane.b32.xlu2 %v364_v18, %s1262_s26  ;;  %232 = vst.msk [vmem:[#allocation2 + $0x20] sm:$0xff] %vm227_vm0, %v218_v47 }
  0xc6   :  { %354 = vrot.lane.b32.xlu0 %v352_v19, %s1257_s2  ;;  %v558_v36 = vld [vmem:[#allocation2 + $0x1e] sm:$0x1]  ;;  %v470_v37 = vld [vmem:[#allocation2 + $0x1c] sm:$0x1]  ;;  %v134_v55 = vpop.f32.mrf.mxu0  ;;  %v472_v59 = vld [vmem:[#allocation2 + $0x1d] sm:$0x1] }
  0xc7   :  { %559 = vst.msk [vmem:[#allocation3 + $0xb] sm:$0x1] %vm243_vm1, %v558_v36  ;;  %v135_v56 = vadd.f32 %v1471_v48, %v134_v55  ;;  %v190_v57 = vpop.f32.mrf.mxu1  ;;  %v560_v4 = vld [vmem:[#allocation2 + $0x1f] sm:$0x1]  ;;  %v540_v5 = vld [vmem:[#allocation2 + $0x18] sm:$0x1] }
  0xc8   :  { %471 = vst.msk [vmem:[#allocation3 + $0xa] sm:$0x1] %vm243_vm1, %v470_v37  ;;  %v478_v12 = vld [vmem:[#allocation2 + $0x1e] sm:$0x1]  ;;  %v484_v13 = vld [vmem:[#allocation2 + $0x1f] sm:$0x1] }
  0xc9   :  { %v191_v58 = vadd.f32 %v190_v57, %v135_v56  ;;  %v464_v14 = vld [vmem:[#allocation2 + $0x18] sm:$0x1]  ;;  %v62_v19 = vld [vmem:[%s1990_s0 + $0xb0] sm:$0xff]  ;;  %v552_v26 = vld [vmem:[#allocation2 + $0x1a] sm:$0x1] }
  0xca   :  { %151 = vmatmul.f32.gmra.mxu0 %v62_v19 }
  0xcb   :  { %v219_v60 = vmax.f32 %v191_v58, 0.0 }
  0xcc   :  { %v566_v21 = vld [vmem:[#allocation2 + $0x20] sm:$0x1]  ;;  %v572_v25 = vld [vmem:[#allocation2 + $0x21] sm:$0x1]  ;;  %v490_v27 = vld [vmem:[#allocation2 + $0x23] sm:$0x1] }
  0xcd   :  { %378 = vrot.lane.b32.xlu1 %v376_v22, %s1263_s1  ;;  %289 = vrot.lane.b32.xlu2 %v287_v23, %s1263_s1  ;;  %233 = vst.msk [vmem:[#allocation2 + $0x28] sm:$0xff] %vm227_vm0, %v219_v60  ;;  %v546_v22 = vld [vmem:[#allocation2 + $0x19] sm:$0x1]  ;;  %v408_v23 = vld [vmem:[#allocation2 + $0x18] sm:$0x1] }
  0xce   :  { %275 = vrot.lane.b32.xlu0 %v273_v24, %s1262_s26  ;;  %v137_v63 = vpop.f32.mrf.mxu0  ;;  %v496_v36 = vld [vmem:[#allocation2 + $0x24] sm:$0x1]  ;;  %v578_v37 = vld [vmem:[#allocation2 + $0x25] sm:$0x1] }
  0xcf   :  { %v138_v0 = vadd.f32 %v1471_v48, %v137_v63  ;;  %v193_v1 = vpop.f32.mrf.mxu1 }
  0xd1   :  { %v194_v2 = vadd.f32 %v193_v1, %v138_v0 }
  0xd3   :  { %v220_v6 = vmax.f32 %v194_v2, 0.0 }
  0xd5   :  { %518 = vrot.lane.b32.xlu1 %v516_v29, %s1259_s23  ;;  %524 = vrot.lane.b32.xlu2 %v522_v30, %s1258_s22  ;;  %234 = vst.msk [vmem:[#allocation2 + $0x30] sm:$0xff] %vm227_vm0, %v220_v6 }
  0xd6   :  { %372 = vrot.lane.b32.xlu0 %v370_v32, %s1261_s25  ;;  %v140_v7 = vpop.f32.mrf.mxu0 }
  0xd7   :  { %v141_v9 = vadd.f32 %v1471_v48, %v140_v7  ;;  %v196_v10 = vpop.f32.mrf.mxu1 }
  0xd9   :  { %v197_v11 = vadd.f32 %v196_v10, %v141_v9 }
  0xdb   :  { %v221_v15 = vmax.f32 %v197_v11, 0.0 }
  0xdc   :  { %v602_v17 = vld [vmem:[#allocation2 + $0x31] sm:$0x1]  ;;  %v690_v18 = vld [vmem:[#allocation2 + $0x33] sm:$0x1]  ;;  %v698_v44 = vld [vmem:[#allocation2 + $0x35] sm:$0x1] }
  0xdd   :  { %436 = vrot.lane.b32.xlu1 %v434_v33, %s1258_s22  ;;  %442 = vrot.lane.b32.xlu2 %v440_v34, %s1257_s2  ;;  %235 = vst.msk [vmem:[#allocation2 + $0x38] sm:$0xff] %vm227_vm0, %v221_v15  ;;  %v604_v45 = vld [vmem:[#allocation2 + $0x32] sm:$0x1]  ;;  %v610_v46 = vld [vmem:[#allocation2 + $0x33] sm:$0x1] }
  0xde   :  { %304 = vrot.lane.b32.xlu0 %v302_v35, %s1258_s22  ;;  %603 = vst.msk [vmem:[#allocation3 + $0x4] sm:$0x1] %vm243_vm1, %v602_v17  ;;  %v143_v28 = vpop.f32.mrf.mxu0 }
  0xdf   :  { %691 = vst.msk [vmem:[#allocation3 + $0x5] sm:$0x1] %vm243_vm1, %v690_v18  ;;  %v144_v32 = vadd.f32 %v1471_v48, %v143_v28  ;;  %v199_v34 = vpop.f32.mrf.mxu1 }
  0xe4   :  { %v646_v33 = vld [vmem:[#allocation2 + $0x3f] sm:$0x1]  ;;  %v716_v57 = vld [vmem:[#allocation2 + $0x3b] sm:$0x1]  ;;  %v710_v58 = vld [vmem:[#allocation2 + $0x3a] sm:$0x1] }
  0xe5   :  { %386 = vrot.lane.b32.xlu1 %v384_v38, %s1259_s23  ;;  %392 = vrot.lane.b32.xlu2 %v390_v39, %s1258_s22  ;;  %v778_v35 = vld [vmem:[#allocation2 + $0x3f] sm:$0x1]  ;;  %v200_v38 = vadd.f32 %v199_v34, %v144_v32  ;;  %v584_v39 = vld [vmem:[#allocation2 + $0x26] sm:$0x1]  ;;  %647 = vst.msk [vmem:[#allocation3 + $0xc] sm:$0x1] %vm243_vm1, %v646_v33 }
  0xe6   :  { %448 = vrot.lane.b32.xlu0 %v446_v40, %s1260_s24  ;;  %779 = vst.msk [vmem:[#allocation3 + $0x6] sm:$0x1] %vm243_vm1, %v778_v35  ;;  %v640_v1 = vld [vmem:[#allocation2 + $0x3b] sm:$0x1]  ;;  %v628_v2 = vld [vmem:[#allocation2 + $0x39] sm:$0x1] }
  0xe7   :  { %v222_v40 = vmax.f32 %v200_v38, 0.0  ;;  %v202_v10 = vpop.f32.mrf.mxu1 }
  0xe9   :  { %236 = vst.msk [vmem:[#allocation2 + $0x40] sm:$0xff] %vm227_vm0, %v222_v40 }
  0xed   :  { %530 = vrot.lane.b32.xlu1 %v528_v49, %s1257_s2  ;;  %536 = vrot.lane.b32.xlu2 %v534_v50, %s1260_s24 }
  0xee   :  { %398 = vrot.lane.b32.xlu0 %v396_v51, %s1257_s2  ;;  %v622_v51 = vld [vmem:[#allocation2 + $0x38] sm:$0x1] }
  0xef   :  { %v205_v40 = vpop.f32.mrf.mxu1 }
  0xf0   :  { %v866_v60 = vld [vmem:[#allocation2 + $0x41] sm:$0x1]  ;;  %v868_v9 = vld [vmem:[#allocation2 + $0x42] sm:$0x1]  ;;  %v648_v18 = vld [vmem:[#allocation2 + $0x40] sm:$0x1] }
  0xf1   :  { %867 = vst.msk [vmem:[#allocation3 + $0x7] sm:$0x1] %vm243_vm1, %v866_v60  ;;  %v786_v19 = vld [vmem:[#allocation2 + $0x41] sm:$0x1]  ;;  %v780_v20 = vld [vmem:[#allocation2 + $0x40] sm:$0x1] }
  0xf2   :  { %v736_v34 = vld [vmem:[#allocation2 + $0x42] sm:$0x1] }
  0xf5   :  { %310 = vrot.lane.b32.xlu1 %v308_v52, %s1257_s2  ;;  %316 = vrot.lane.b32.xlu2 %v314_v53, %s1260_s24  ;;  %v692_v52 = vld [vmem:[#allocation2 + $0x34] sm:$0x1] }
  0xf6   :  { %322 = vrot.lane.b32.xlu0 %v320_v54, %s1262_s26  ;;  %v616_v53 = vld [vmem:[#allocation2 + $0x34] sm:$0x1] }
  0xfd   :  { %454 = vrot.lane.b32.xlu1 %v452_v61, %s1262_s26  ;;  %460 = vrot.lane.b32.xlu2 %v458_v62, %s1261_s25  ;;  %v734_v61 = vld [vmem:[#allocation2 + $0x41] sm:$0x1] }
  0xfe   :  { %474 = vrot.lane.b32.xlu0 %v472_v59, %s1259_s23  ;;  %v704_v59 = vld [vmem:[#allocation2 + $0x36] sm:$0x1]  ;;  %735 = vst.msk [vmem:[#allocation3 + $0xd] sm:$0x1] %vm243_vm1, %v734_v61 }
 0x105   :  { %404 = vrot.lane.b32.xlu1 %v402_v3, %s1260_s24  ;;  %562 = vrot.lane.b32.xlu2 %v560_v4, %s1259_s23  ;;  %v634_v3 = vld [vmem:[#allocation2 + $0x3a] sm:$0x1]  ;;  %v146_v4 = vpop.f32.mrf.mxu0 }
 0x106   :  { %542 = vrot.lane.b32.xlu0 %v540_v5, %s1262_s26  ;;  %v147_v7 = vadd.f32 %v1471_v48, %v146_v4 }
 0x107   :  { %v255_v8 = vpop.permute.xlu2 %254 }
 0x108   :  { %v203_v11 = vadd.f32 %v202_v10, %v147_v7 }
 0x10d   :  { %480 = vrot.lane.b32.xlu1 %v478_v12, %s1258_s22  ;;  %486 = vrot.lane.b32.xlu2 %v484_v13, %s1257_s2  ;;  %v722_v12 = vld [vmem:[#allocation2 + $0x3c] sm:$0x1]  ;;  %v728_v13 = vld [vmem:[#allocation2 + $0x3d] sm:$0x1]  ;;  %v149_v35 = vpop.f32.mrf.mxu0 }
 0x10e   :  { %466 = vrot.lane.b32.xlu0 %v464_v14, %s1263_s1  ;;  %v223_v14 = vmax.f32 %v203_v11, 0.0 }
 0x10f   :  { %v269_v16 = vpop.permute.xlu2 %268 }
 0x110   :  { %237 = vst.msk [vmem:[#allocation2 + $0x48] sm:$0xff] %vm227_vm0, %v223_v14  ;;  %v208_v14 = vpop.f32.mrf.mxu1 }
 0x115   :  { %548 = vrot.lane.b32.xlu1 %v546_v22, %s1261_s25  ;;  %410 = vrot.lane.b32.xlu2 %v408_v23, %s1262_s26 }
 0x116   :  { %568 = vrot.lane.b32.xlu0 %v566_v21, %s1258_s22 }
 0x117   :  { %v299_v24 = vpop.permute.xlu2 %298  ;;  %v822_v32 = vld [vmem:[#allocation2 + $0x4d] sm:$0x1]  ;;  %v910_v33 = vld [vmem:[#allocation2 + $0x4f] sm:$0x1]  ;;  %v904_v4 = vld [vmem:[#allocation2 + $0x4b] sm:$0x1] }
 0x118   :  { %301 = vst.msk [vmem:[#allocation3 + $0x8] sm:$0x1] %vm250_vm2, %v299_v24  ;;  %v792_v24 = vld [vmem:[#allocation2 + $0x42] sm:$0x1] }
 0x119   :  { %823 = vst.msk [vmem:[#allocation3 + $0xe] sm:$0x1] %vm243_vm1, %v822_v32  ;;  %v414_v32 = vld [vmem:[#allocation2 + $0x19] sm:$0x1] }
 0x11a   :  { %911 = vst.msk [vmem:[#allocation3 + $0xf] sm:$0x1] %vm243_vm1, %v910_v33  ;;  %v502_v33 = vld [vmem:[#allocation2 + $0x25] sm:$0x1]  ;;  %vm1236_vm1 = vcmask 1024  }
 0x11d   :  { %574 = vrot.lane.b32.xlu1 %v572_v25, %s1257_s2  ;;  %554 = vrot.lane.b32.xlu2 %v552_v26, %s1263_s1  ;;  %v654_v25 = vld [vmem:[#allocation2 + $0x41] sm:$0x1]  ;;  %v874_v26 = vld [vmem:[#allocation2 + $0x43] sm:$0x1] }
 0x11e   :  { %492 = vrot.lane.b32.xlu0 %v490_v27, %s1260_s24 }
 0x11f   :  { %v262_v29 = vpop.permute.xlu1 %261  ;;  %v367_v30 = vpop.permute.xlu2 %366 }
 0x120   :  { %v248_v31 = vpop.permute.xlu0 %247 }
 0x121   :  { %251 = vst.msk [vmem:[#allocation3] sm:$0x1] %vm250_vm2, %v248_v31  ;;  %v798_v31 = vld [vmem:[#allocation2 + $0x46] sm:$0x1] }
 0x122   :  { %258 = vst.msk [vmem:[#allocation3] sm:$0x1] %vm257_vm3, %v255_v8 }
 0x123   :  { %265 = vst.msk [vmem:[#allocation3] sm:$0x1] %vm264_vm4, %v262_v29 }
 0x124   :  { %272 = vst.msk [vmem:[#allocation3] sm:$0x1] %vm271_vm5, %v269_v16 }
 0x125   :  { %498 = vrot.lane.b32.xlu1 %v496_v36, %s1262_s26  ;;  %580 = vrot.lane.b32.xlu2 %v578_v37, %s1260_s24 }
 0x126   :  { %586 = vrot.lane.b32.xlu0 %v584_v39, %s1262_s26  ;;  %v150_v39 = vadd.f32 %v1471_v48, %v149_v35 }
 0x127   :  { %v431_v41 = vpop.permute.xlu1 %430  ;;  %v290_v42 = vpop.permute.xlu2 %289 }
 0x128   :  { %433 = vst.msk [vmem:[#allocation3 + $0x2] sm:$0x1] %vm250_vm2, %v431_v41  ;;  %v343_v43 = vpop.permute.xlu0 %342  ;;  %v666_v41 = vld [vmem:[#allocation2 + $0x46] sm:$0x1] }
 0x129   :  { %345 = vst.msk [vmem:[#allocation3 + $0x1] sm:$0x1] %vm250_vm2, %v343_v43  ;;  %v206_v43 = vadd.f32 %v205_v40, %v150_v39  ;;  %v766_v39 = vld [vmem:[#allocation2 + $0x4a] sm:$0x1]  ;;  %v590_v40 = vld [vmem:[#allocation2 + $0x27] sm:$0x1] }
 0x12d   :  { %700 = vrot.lane.b32.xlu1 %v698_v44, %s1258_s22  ;;  %606 = vrot.lane.b32.xlu2 %v604_v45, %s1259_s23  ;;  %v880_v44 = vld [vmem:[#allocation2 + $0x44] sm:$0x1] }
 0x12e   :  { %612 = vrot.lane.b32.xlu0 %v610_v46, %s1258_s22 }
 0x12f   :  { %v361_v47 = vpop.permute.xlu1 %360  ;;  %v525_v49 = vpop.permute.xlu2 %524 }
 0x130   :  { %v349_v50 = vpop.permute.xlu0 %348 }
 0x131   :  { %351 = vst.msk [vmem:[#allocation3 + $0x1] sm:$0x1] %vm257_vm3, %v349_v50  ;;  %v886_v50 = vld [vmem:[#allocation2 + $0x48] sm:$0x1] }
 0x135   :  { %624 = vrot.lane.b32.xlu1 %v622_v51, %s1260_s24  ;;  %694 = vrot.lane.b32.xlu2 %v692_v52, %s1259_s23  ;;  %v672_v51 = vld [vmem:[#allocation2 + $0x47] sm:$0x1]  ;;  %v660_v52 = vld [vmem:[#allocation2 + $0x42] sm:$0x1] }
 0x136   :  { %618 = vrot.lane.b32.xlu0 %v616_v53, %s1257_s2 }
 0x137   :  { %v283_v54 = vpop.permute.xlu1 %282  ;;  %v443_v55 = vpop.permute.xlu2 %442 }
 0x138   :  { %v355_v56 = vpop.permute.xlu0 %354 }
 0x139   :  { %357 = vst.msk [vmem:[#allocation3 + $0x1] sm:$0x1] %vm264_vm4, %v355_v56  ;;  %v810_v56 = vld [vmem:[#allocation2 + $0x48] sm:$0x1] }
 0x13a   :  { %363 = vst.msk [vmem:[#allocation3 + $0x1] sm:$0x1] %vm271_vm5, %v361_v47  ;;  %v224_v47 = vmax.f32 %v206_v43, 0.0 }
 0x13b   :  { %369 = vst.msk [vmem:[#allocation3 + $0x1] sm:$0x1] %vm278_vm6, %v367_v30  ;;  %v742_v30 = vld [vmem:[#allocation2 + $0x43] sm:$0x1] }
 0x13c   :  { %238 = vst.msk [vmem:[#allocation2 + $0x50] sm:$0xff] %vm227_vm0, %v224_v47 }
 0x13d   :  { %718 = vrot.lane.b32.xlu1 %v716_v57, %s1262_s26  ;;  %706 = vrot.lane.b32.xlu2 %v704_v59, %s1257_s2  ;;  %v824_v57 = vld [vmem:[#allocation2 + $0x4e] sm:$0x1] }
 0x13e   :  { %712 = vrot.lane.b32.xlu0 %v710_v58, %s1260_s24  ;;  %v804_v58 = vld [vmem:[#allocation2 + $0x47] sm:$0x1] }
 0x13f   :  { %v379_v62 = vpop.permute.xlu1 %378  ;;  %v393_v63 = vpop.permute.xlu2 %392 }
 0x140   :  { %v276_v0 = vpop.permute.xlu0 %275 }
 0x141   :  { %279 = vst.msk [vmem:[#allocation3] sm:$0x1] %vm278_vm6, %v276_v0  ;;  %v830_v0 = vld [vmem:[#allocation2 + $0x4f] sm:$0x1] }
 0x142   :  { %286 = vst.msk [vmem:[#allocation3] sm:$0x1] %vm285_vm7, %v283_v54 }
 0x143   :  { %293 = vst.msk [vmem:[#allocation3] sm:$0x1] %vm292_vm8, %v290_v42  ;;  %v748_v42 = vld [vmem:[#allocation2 + $0x44] sm:$0x1] }
 0x145   :  { %642 = vrot.lane.b32.xlu1 %v640_v1, %s1263_s1  ;;  %630 = vrot.lane.b32.xlu2 %v628_v2, %s1262_s26 }
 0x146   :  { %636 = vrot.lane.b32.xlu0 %v634_v3, %s1261_s25 }
 0x147   :  { %v519_v5 = vpop.permute.xlu1 %518  ;;  %v537_v6 = vpop.permute.xlu2 %536 }
 0x148   :  { %521 = vst.msk [vmem:[#allocation3 + $0x3] sm:$0x1] %vm250_vm2, %v519_v5  ;;  %v373_v8 = vpop.permute.xlu0 %372  ;;  %v816_v5 = vld [vmem:[#allocation2 + $0x49] sm:$0x1]  ;;  %v152_v10 = vpop.f32.mrf.mxu0 }
 0x149   :  { %527 = vst.msk [vmem:[#allocation3 + $0x3] sm:$0x1] %vm257_vm3, %v525_v49  ;;  %v153_v11 = vadd.f32 %v1471_v48, %v152_v10 }
 0x14a   :  { %375 = vst.msk [vmem:[#allocation3 + $0x1] sm:$0x1] %vm285_vm7, %v373_v8 }
 0x14b   :  { %381 = vst.msk [vmem:[#allocation3 + $0x1] sm:$0x1] %vm292_vm8, %v379_v62  ;;  %v760_v62 = vld [vmem:[#allocation2 + $0x49] sm:$0x1] }
 0x14d   :  { %870 = vrot.lane.b32.xlu1 %v868_v9, %s1259_s23  ;;  %724 = vrot.lane.b32.xlu2 %v722_v12, %s1261_s25  ;;  %v912_v12 = vld [vmem:[#allocation2 + $0x50] sm:$0x1] }
 0x14e   :  { %730 = vrot.lane.b32.xlu0 %v728_v13, %s1263_s1  ;;  %v918_v13 = vld [vmem:[#allocation2 + $0x51] sm:$0x1] }
 0x14f   :  { %v437_v15 = vpop.permute.xlu1 %436  ;;  %v317_v16 = vpop.permute.xlu2 %316 }
 0x150   :  { %439 = vst.msk [vmem:[#allocation3 + $0x2] sm:$0x1] %vm257_vm3, %v437_v15  ;;  %v305_v17 = vpop.permute.xlu0 %304  ;;  %v209_v15 = vadd.f32 %v208_v14, %v153_v11  ;;  %v963_v14 = vld [vmem:[%s1991_s3 + $0x38] sm:$0xff] }
 0x151   :  { %445 = vst.msk [vmem:[#allocation3 + $0x2] sm:$0x1] %vm264_vm4, %v443_v55 }
 0x152   :  { %307 = vst.msk [vmem:[#allocation3 + $0x8] sm:$0x1] %vm257_vm3, %v305_v17  ;;  %v225_v17 = vmax.f32 %v209_v15, 0.0  ;;  %v962_v15 = vld [vmem:[%s1991_s3 + $0x30] sm:$0xff] }
 0x154   :  { %239 = vst.msk [vmem:[#allocation2 + $0x58] sm:$0xff] %vm227_vm0, %v225_v17  ;;  %vm1225_vm0 = vcmask 1041408  }
 0x155   :  { %650 = vrot.lane.b32.xlu1 %v648_v18, %s1259_s23  ;;  %788 = vrot.lane.b32.xlu2 %v786_v19, %s1258_s22 }
 0x156   :  { %782 = vrot.lane.b32.xlu0 %v780_v20, %s1259_s23  ;;  %v836_v20 = vld [vmem:[#allocation2 + $0x50] sm:$0x1] }
 0x157   :  { %v387_v21 = vpop.permute.xlu1 %386  ;;  %v461_v22 = vpop.permute.xlu2 %460 }
 0x158   :  { %389 = vst.msk [vmem:[#allocation3 + $0x9] sm:$0x1] %vm250_vm2, %v387_v21  ;;  %v449_v23 = vpop.permute.xlu0 %448  ;;  %v842_v21 = vld [vmem:[#allocation2 + $0x54] sm:$0x1] }
 0x159   :  { %395 = vst.msk [vmem:[#allocation3 + $0x9] sm:$0x1] %vm257_vm3, %v393_v63  ;;  %v892_v63 = vld [vmem:[#allocation2 + $0x49] sm:$0x1] }
 0x15a   :  { %451 = vst.msk [vmem:[#allocation3 + $0x2] sm:$0x1] %vm271_vm5, %v449_v23 }
 0x15d   :  { %794 = vrot.lane.b32.xlu1 %v792_v24, %s1257_s2  ;;  %656 = vrot.lane.b32.xlu2 %v654_v25, %s1258_s22 }
 0x15e   :  { %876 = vrot.lane.b32.xlu0 %v874_v26, %s1258_s22  ;;  %v930_v26 = vld [vmem:[#allocation2 + $0x56] sm:$0x1] }
 0x15f   :  { %v531_v27 = vpop.permute.xlu1 %530  ;;  %v563_v28 = vpop.permute.xlu2 %562 }
 0x160   :  { %533 = vst.msk [vmem:[#allocation3 + $0x3] sm:$0x1] %vm264_vm4, %v531_v27  ;;  %v399_v29 = vpop.permute.xlu0 %398  ;;  %v936_v27 = vld [vmem:[#allocation2 + $0x57] sm:$0x1] }
 0x161   :  { %539 = vst.msk [vmem:[#allocation3 + $0x3] sm:$0x1] %vm271_vm5, %v537_v6  ;;  %v754_v6 = vld [vmem:[#allocation2 + $0x48] sm:$0x1] }
 0x162   :  { %565 = vst.msk [vmem:[#allocation3 + $0xb] sm:$0x1] %vm250_vm2, %v563_v28  ;;  %v848_v28 = vld [vmem:[#allocation2 + $0x55] sm:$0x1] }
 0x163   :  { %401 = vst.msk [vmem:[#allocation3 + $0x9] sm:$0x1] %vm264_vm4, %v399_v29 }
 0x165   :  { %744 = vrot.lane.b32.xlu1 %v742_v30, %s1258_s22  ;;  %800 = vrot.lane.b32.xlu2 %v798_v31, %s1260_s24 }
 0x166   :  { %738 = vrot.lane.b32.xlu0 %v736_v34, %s1259_s23  ;;  %v326_v34 = vld [vmem:[#allocation2 + $0x17] sm:$0x1] }
 0x167   :  { %v311_v36 = vpop.permute.xlu1 %310  ;;  %v487_v37 = vpop.permute.xlu2 %486 }
 0x168   :  { %313 = vst.msk [vmem:[#allocation3 + $0x8] sm:$0x1] %vm264_vm4, %v311_v36  ;;  %v323_v38 = vpop.permute.xlu0 %322 }
 0x169   :  { %319 = vst.msk [vmem:[#allocation3 + $0x8] sm:$0x1] %vm271_vm5, %v317_v16  ;;  %v898_v16 = vld [vmem:[#allocation2 + $0x4a] sm:$0x1] }
 0x16a   :  { %325 = vst.msk [vmem:[#allocation3 + $0x8] sm:$0x1] %vm278_vm6, %v323_v38  ;;  %v678_v38 = vld [vmem:[#allocation2 + $0x48] sm:$0x1] }
 0x16d   :  { %668 = vrot.lane.b32.xlu1 %v666_v41, %s1260_s24  ;;  %750 = vrot.lane.b32.xlu2 %v748_v42, %s1257_s2 }
 0x16e   :  { %882 = vrot.lane.b32.xlu0 %v880_v44, %s1257_s2  ;;  %v942_v44 = vld [vmem:[#allocation2 + $0x58] sm:$0x1] }
 0x16f   :  { %v455_v45 = vpop.permute.xlu1 %454  ;;  %v411_v46 = vpop.permute.xlu2 %410 }
 0x170   :  { %457 = vst.msk [vmem:[#allocation3 + $0x2] sm:$0x1] %vm278_vm6, %v455_v45  ;;  %v475_v49 = vpop.permute.xlu0 %474  ;;  %v332_v45 = vld [vmem:[#allocation2 + $0x18] sm:$0x1] }
 0x171   :  { %463 = vst.msk [vmem:[#allocation3 + $0x2] sm:$0x1] %vm285_vm7, %v461_v22  ;;  %v924_v22 = vld [vmem:[#allocation2 + $0x52] sm:$0x1] }
 0x172   :  { %477 = vst.msk [vmem:[#allocation3 + $0xa] sm:$0x1] %vm250_vm2, %v475_v49 }
 0x175   :  { %888 = vrot.lane.b32.xlu1 %v886_v50, %s1260_s24  ;;  %674 = vrot.lane.b32.xlu2 %v672_v51, %s1262_s26  ;;  %v508_v51 = vld [vmem:[#allocation2 + $0x26] sm:$0x1] }
 0x176   :  { %662 = vrot.lane.b32.xlu0 %v660_v52, %s1257_s2  ;;  %v596_v52 = vld [vmem:[#allocation2 + $0x28] sm:$0x1] }
 0x177   :  { %v405_v53 = vpop.permute.xlu1 %404  ;;  %v555_v54 = vpop.permute.xlu2 %554 }
 0x178   :  { %407 = vst.msk [vmem:[#allocation3 + $0x9] sm:$0x1] %vm271_vm5, %v405_v53  ;;  %v543_v55 = vpop.permute.xlu0 %542  ;;  %v420_v53 = vld [vmem:[#allocation2 + $0x1a] sm:$0x1] }
 0x179   :  { %413 = vst.msk [vmem:[#allocation3 + $0x9] sm:$0x1] %vm278_vm6, %v411_v46  ;;  %v854_v46 = vld [vmem:[#allocation2 + $0x56] sm:$0x1] }
 0x17a   :  { %545 = vst.msk [vmem:[#allocation3 + $0x3] sm:$0x1] %vm278_vm6, %v543_v55 }
 0x17d   :  { %812 = vrot.lane.b32.xlu1 %v810_v56, %s1261_s25  ;;  %826 = vrot.lane.b32.xlu2 %v824_v57, %s1259_s23  ;;  %v772_v57 = vld [vmem:[#allocation2 + $0x4b] sm:$0x1] }
 0x17e   :  { %806 = vrot.lane.b32.xlu0 %v804_v58, %s1262_s26  ;;  %v860_v58 = vld [vmem:[#allocation2 + $0x57] sm:$0x1] }
 0x17f   :  { %v481_v59 = vpop.permute.xlu1 %480  ;;  %v581_v60 = vpop.permute.xlu2 %580 }
 0x180   :  { %483 = vst.msk [vmem:[#allocation3 + $0xa] sm:$0x1] %vm257_vm3, %v481_v59  ;;  %v467_v61 = vpop.permute.xlu0 %466  ;;  %v684_v59 = vld [vmem:[#allocation2 + $0x49] sm:$0x1] }
 0x181   :  { %489 = vst.msk [vmem:[#allocation3 + $0xa] sm:$0x1] %vm264_vm4, %v487_v37 }
 0x182   :  { %469 = vst.msk [vmem:[#allocation3 + $0x2] sm:$0x1] %vm292_vm8, %v467_v61 }
 0x185   :  { %762 = vrot.lane.b32.xlu1 %v760_v62, %s1262_s26  ;;  %894 = vrot.lane.b32.xlu2 %v892_v63, %s1262_s26  ;;  %v971_v63 = vld [vmem:[%s1991_s3 + $0x78] sm:$0xff] }
 0x186   :  { %832 = vrot.lane.b32.xlu0 %v830_v0, %s1258_s22  ;;  %v970_v0 = vld [vmem:[%s1991_s3 + $0x70] sm:$0xff]  ;;  %992 = vmatpush.msra.mxu2 %v971_v63  ;;  %v973_v63 = vld [vmem:[%s1991_s3 + $0x88] sm:$0xff] }
 0x187   :  { %v549_v1 = vpop.permute.xlu1 %548  ;;  %v607_v2 = vpop.permute.xlu2 %606 }
 0x188   :  { %551 = vst.msk [vmem:[#allocation3 + $0x3] sm:$0x1] %vm285_vm7, %v549_v1  ;;  %v569_v3 = vpop.permute.xlu0 %568  ;;  %v948_v1 = vld [vmem:[#allocation2 + $0x59] sm:$0x1]  ;;  %993 = vmatpush.msra.mxu2 %v970_v0 }
 0x189   :  { %557 = vst.msk [vmem:[#allocation3 + $0x3] sm:$0x1] %vm292_vm8, %v555_v54  ;;  %v972_v0 = vld [vmem:[%s1991_s3 + $0x80] sm:$0xff] }
 0x18a   :  { %609 = vst.msk [vmem:[#allocation3 + $0x4] sm:$0x1] %vm250_vm2, %v607_v2  ;;  %v969_v2 = vld [vmem:[%s1991_s3 + $0x68] sm:$0xff] }
 0x18b   :  { %571 = vst.msk [vmem:[#allocation3 + $0xb] sm:$0x1] %vm257_vm3, %v569_v3  ;;  %994 = vmatpush.msra.mxu2 %v969_v2 }
 0x18d   :  { %906 = vrot.lane.b32.xlu1 %v904_v4, %s1263_s1  ;;  %818 = vrot.lane.b32.xlu2 %v816_v5, %s1263_s1 }
 0x18e   :  { %756 = vrot.lane.b32.xlu0 %v754_v6, %s1260_s24  ;;  %v968_v6 = vld [vmem:[%s1991_s3 + $0x60] sm:$0xff] }
 0x18f   :  { %v575_v7 = vpop.permute.xlu1 %574  ;;  %v695_v8 = vpop.permute.xlu2 %694  ;;  %995 = vmatpush.msra.mxu2 %v968_v6 }
 0x190   :  { %577 = vst.msk [vmem:[#allocation3 + $0xb] sm:$0x1] %vm264_vm4, %v575_v7  ;;  %v493_v9 = vpop.permute.xlu0 %492  ;;  %v967_v7 = vld [vmem:[%s1991_s3 + $0x58] sm:$0xff] }
 0x191   :  { %583 = vst.msk [vmem:[#allocation3 + $0xb] sm:$0x1] %vm271_vm5, %v581_v60  ;;  %996 = vmatpush.msra.mxu2 %v967_v7 }
 0x192   :  { %697 = vst.msk [vmem:[#allocation3 + $0x5] sm:$0x1] %vm250_vm2, %v695_v8  ;;  %v966_v8 = vld [vmem:[%s1991_s3 + $0x50] sm:$0xff] }
 0x193   :  { %495 = vst.msk [vmem:[#allocation3 + $0xa] sm:$0x1] %vm271_vm5, %v493_v9  ;;  %v965_v9 = vld [vmem:[%s1991_s3 + $0x48] sm:$0xff]  ;;  %997 = vmatpush.msra.mxu2 %v966_v8 }
 0x195   :  { %914 = vrot.lane.b32.xlu1 %v912_v12, %s1259_s23  ;;  %920 = vrot.lane.b32.xlu2 %v918_v13, %s1258_s22  ;;  %v964_v13 = vld [vmem:[%s1991_s3 + $0x40] sm:$0xff] }
 0x196   :  { %900 = vrot.lane.b32.xlu0 %v898_v16, %s1261_s25  ;;  %998 = vmatpush.msra.mxu2 %v965_v9  ;;  %v961_v16 = vld [vmem:[%s1991_s3 + $0x28] sm:$0xff] }
 0x197   :  { %v499_v18 = vpop.permute.xlu1 %498  ;;  %v707_v19 = vpop.permute.xlu2 %706 }
 0x198   :  { %501 = vst.msk [vmem:[#allocation3 + $0xa] sm:$0x1] %vm278_vm6, %v499_v18  ;;  %v587_v48 = vpop.permute.xlu0 %586  ;;  %999 = vmatpush.msra.mxu2 %v964_v13 }
 0x199   :  { %589 = vst.msk [vmem:[#allocation3 + $0xb] sm:$0x1] %vm278_vm6, %v587_v48  ;;  %v960_v48 = vld [vmem:[%s1991_s3 + $0x20] sm:$0xff] }
 0x19a   :  { %1000 = vmatpush.msra.mxu2 %v963_v14 }
 0x19c   :  { %1001 = vmatpush.msra.mxu2 %v962_v15 }
 0x19d   :  { %838 = vrot.lane.b32.xlu1 %v836_v20, %s1257_s2  ;;  %844 = vrot.lane.b32.xlu2 %v842_v21, %s1260_s24  ;;  %v959_v20 = vld [vmem:[%s1991_s3 + $0x18] sm:$0xff]  ;;  %v958_v21 = vld [vmem:[%s1991_s3 + $0x10] sm:$0xff] }
 0x19e   :  { %926 = vrot.lane.b32.xlu0 %v924_v22, %s1257_s2  ;;  %1002 = vmatpush.msra.mxu2 %v961_v16  ;;  %v957_v22 = vld [vmem:[%s1991_s3 + $0x8] sm:$0xff] }
 0x19f   :  { %v701_v23 = vpop.permute.xlu1 %700  ;;  %v631_v24 = vpop.permute.xlu2 %630 }
 0x1a0   :  { %703 = vst.msk [vmem:[#allocation3 + $0x5] sm:$0x1] %vm257_vm3, %v701_v23  ;;  %v613_v25 = vpop.permute.xlu0 %612  ;;  %1003 = vmatpush.msra.mxu2 %v960_v48 }
 0x1a1   :  { %709 = vst.msk [vmem:[#allocation3 + $0x5] sm:$0x1] %vm264_vm4, %v707_v19 }
 0x1a2   :  { %615 = vst.msk [vmem:[#allocation3 + $0x4] sm:$0x1] %vm257_vm3, %v613_v25  ;;  %1004 = vmatpush.msra.mxu2 %v959_v20 }
 0x1a4   :  { %1005 = vmatpush.msra.mxu2 %v958_v21 }
 0x1a5   :  { %932 = vrot.lane.b32.xlu1 %v930_v26, %s1260_s24  ;;  %938 = vrot.lane.b32.xlu2 %v936_v27, %s1262_s26  ;;  %v956_v26 = vld [vmem:[%s1991_s3] sm:$0xff] }
 0x1a6   :  { %850 = vrot.lane.b32.xlu0 %v848_v28, %s1262_s26  ;;  %1006 = vmatpush.msra.mxu2 %v957_v22 }
 0x1a7   :  { %v625_v29 = vpop.permute.xlu1 %624  ;;  %v725_v30 = vpop.permute.xlu2 %724 }
 0x1a8   :  { %v619_v31 = vpop.permute.xlu0 %618  ;;  %1007 = vmatpush.msra.mxu2 %v956_v26 }
 0x1a9   :  { %621 = vst.msk [vmem:[#allocation3 + $0x4] sm:$0x1] %vm264_vm4, %v619_v31 }
 0x1aa   :  { %627 = vst.msk [vmem:[#allocation3 + $0x4] sm:$0x1] %vm271_vm5, %v625_v29 }
 0x1ab   :  { %633 = vst.msk [vmem:[#allocation3 + $0x4] sm:$0x1] %vm278_vm6, %v631_v24 }
 0x1ad   :  { %416 = vrot.lane.b32.xlu1 %v414_v32, %s1261_s25  ;;  %504 = vrot.lane.b32.xlu2 %v502_v33, %s1261_s25 }
 0x1ae   :  { %328 = vrot.lane.b32.xlu0 %v326_v34, %s1261_s25 }
 0x1af   :  { %v719_v35 = vpop.permute.xlu1 %718  ;;  %v789_v36 = vpop.permute.xlu2 %788 }
 0x1b0   :  { %v713_v37 = vpop.permute.xlu0 %712 }
 0x1b1   :  { %715 = vst.msk [vmem:[#allocation3 + $0x5] sm:$0x1] %vm271_vm5, %v713_v37 }
 0x1b2   :  { %721 = vst.msk [vmem:[#allocation3 + $0x5] sm:$0x1] %vm278_vm6, %v719_v35 }
 0x1b3   :  { %727 = vst.msk [vmem:[#allocation3 + $0x5] sm:$0x1] %vm285_vm7, %v725_v30 }
 0x1b5   :  { %680 = vrot.lane.b32.xlu1 %v678_v38, %s1261_s25  ;;  %768 = vrot.lane.b32.xlu2 %v766_v39, %s1261_s25  ;;  %v987_v39 = vld [vmem:[%s1991_s3 + $0xf8] sm:$0xff] }
 0x1b6   :  { %592 = vrot.lane.b32.xlu0 %v590_v40, %s1261_s25  ;;  %v986_v40 = vld [vmem:[%s1991_s3 + $0xf0] sm:$0xff]  ;;  %1012 = vmatpush.msra.mxu3 %v987_v39  ;;  %v1099_v39 = vld [vmem:[%s1994_s6 + $0x98] sm:$0xff] }
 0x1b7   :  { %v643_v41 = vpop.permute.xlu1 %642  ;;  %v657_v42 = vpop.permute.xlu2 %656 }
 0x1b8   :  { %v637_v43 = vpop.permute.xlu0 %636  ;;  %1013 = vmatpush.msra.mxu3 %v986_v40  ;;  %v1096_v40 = vld [vmem:[%s1994_s6 + $0x80] sm:$0xff] }
 0x1b9   :  { %639 = vst.msk [vmem:[#allocation3 + $0x4] sm:$0x1] %vm285_vm7, %v637_v43  ;;  %v984_v43 = vld [vmem:[%s1991_s3 + $0xe0] sm:$0xff] }
 0x1ba   :  { %645 = vst.msk [vmem:[#allocation3 + $0x4] sm:$0x1] %vm292_vm8, %v643_v41 }
 0x1bd   :  { %944 = vrot.lane.b32.xlu1 %v942_v44, %s1261_s25  ;;  %334 = vrot.lane.b32.xlu2 %v332_v45, %s1263_s1 }
 0x1be   :  { %856 = vrot.lane.b32.xlu0 %v854_v46, %s1261_s25  ;;  %v983_v46 = vld [vmem:[%s1991_s3 + $0xd8] sm:$0xff] }
 0x1bf   :  { %v871_v47 = vpop.permute.xlu1 %870  ;;  %v801_v49 = vpop.permute.xlu2 %800 }
 0x1c0   :  { %873 = vst.msk [vmem:[#allocation3 + $0x7] sm:$0x1] %vm250_vm2, %v871_v47  ;;  %v731_v50 = vpop.permute.xlu0 %730  ;;  %v982_v47 = vld [vmem:[%s1991_s3 + $0xd0] sm:$0xff] }
 0x1c1   :  { %733 = vst.msk [vmem:[#allocation3 + $0x5] sm:$0x1] %vm292_vm8, %v731_v50 }
 0x1c5   :  { %510 = vrot.lane.b32.xlu1 %v508_v51, %s1263_s1  ;;  %598 = vrot.lane.b32.xlu2 %v596_v52, %s1263_s1  ;;  %v980_v51 = vld [vmem:[%s1991_s3 + $0xc0] sm:$0xff] }
 0x1c6   :  { %422 = vrot.lane.b32.xlu0 %v420_v53, %s1263_s1 }
 0x1c7   :  { %v651_v54 = vpop.permute.xlu1 %650  ;;  %v751_v55 = vpop.permute.xlu2 %750 }
 0x1c8   :  { %653 = vst.msk [vmem:[#allocation3 + $0xc] sm:$0x1] %vm250_vm2, %v651_v54  ;;  %v783_v56 = vpop.permute.xlu0 %782  ;;  %v979_v54 = vld [vmem:[%s1991_s3 + $0xb8] sm:$0xff] }
 0x1c9   :  { %659 = vst.msk [vmem:[#allocation3 + $0xc] sm:$0x1] %vm257_vm3, %v657_v42  ;;  %v985_v42 = vld [vmem:[%s1991_s3 + $0xe8] sm:$0xff] }
 0x1ca   :  { %785 = vst.msk [vmem:[#allocation3 + $0x6] sm:$0x1] %vm250_vm2, %v783_v56  ;;  %1014 = vmatpush.msra.mxu3 %v985_v42  ;;  %v977_v56 = vld [vmem:[%s1991_s3 + $0xa8] sm:$0xff]  ;;  %v1094_v42 = vld [vmem:[%s1994_s6 + $0x70] sm:$0xff] }
 0x1cb   :  { %791 = vst.msk [vmem:[#allocation3 + $0x6] sm:$0x1] %vm257_vm3, %v789_v36 }
 0x1cc   :  { %1015 = vmatpush.msra.mxu3 %v984_v43  ;;  %v1095_v43 = vld [vmem:[%s1994_s6 + $0x78] sm:$0xff] }
 0x1cd   :  { %774 = vrot.lane.b32.xlu1 %v772_v57, %s1263_s1  ;;  %862 = vrot.lane.b32.xlu2 %v860_v58, %s1263_s1  ;;  %v976_v57 = vld [vmem:[%s1991_s3 + $0xa0] sm:$0xff] }
 0x1ce   :  { %686 = vrot.lane.b32.xlu0 %v684_v59, %s1263_s1  ;;  %1016 = vmatpush.msra.mxu3 %v983_v46  ;;  %v1090_v46 = vld [vmem:[%s1994_s6 + $0x50] sm:$0xff] }
 0x1cf   :  { %v795_v60 = vpop.permute.xlu1 %794  ;;  %v675_v61 = vpop.permute.xlu2 %674 }
 0x1d0   :  { %797 = vst.msk [vmem:[#allocation3 + $0x6] sm:$0x1] %vm264_vm4, %v795_v60  ;;  %v877_v62 = vpop.permute.xlu0 %876  ;;  %1017 = vmatpush.msra.mxu3 %v982_v47  ;;  %v1091_v47 = vld [vmem:[%s1994_s6 + $0x58] sm:$0xff] }
 0x1d1   :  { %803 = vst.msk [vmem:[#allocation3 + $0x6] sm:$0x1] %vm271_vm5, %v801_v49  ;;  %v981_v49 = vld [vmem:[%s1991_s3 + $0xc8] sm:$0xff] }
 0x1d2   :  { %879 = vst.msk [vmem:[#allocation3 + $0x7] sm:$0x1] %vm257_vm3, %v877_v62  ;;  %1018 = vmatpush.msra.mxu3 %v981_v49  ;;  %v974_v62 = vld [vmem:[%s1991_s3 + $0x90] sm:$0xff] }
 0x1d4   :  { %1019 = vmatpush.msra.mxu3 %v980_v51  ;;  %v1089_v51 = vld [vmem:[%s1994_s6 + $0x48] sm:$0xff] }
 0x1d6   :  { %950 = vrot.lane.b32.xlu0 %v948_v1, %s1263_s1  ;;  %1020 = vmatpush.msra.mxu3 %v979_v54  ;;  %v1087_v54 = vld [vmem:[%s1994_s6 + $0x38] sm:$0xff] }
 0x1d7   :  { %v745_v3 = vpop.permute.xlu1 %744  ;;  %v827_v4 = vpop.permute.xlu2 %826 }
 0x1d8   :  { %829 = vst.msk [vmem:[#allocation3 + $0xe] sm:$0x1] %vm250_vm2, %v827_v4  ;;  %v739_v5 = vpop.permute.xlu0 %738 }
 0x1d9   :  { %741 = vst.msk [vmem:[#allocation3 + $0xd] sm:$0x1] %vm250_vm2, %v739_v5 }
 0x1da   :  { %747 = vst.msk [vmem:[#allocation3 + $0xd] sm:$0x1] %vm257_vm3, %v745_v3 }
 0x1db   :  { %753 = vst.msk [vmem:[#allocation3 + $0xd] sm:$0x1] %vm264_vm4, %v751_v55  ;;  %v978_v55 = vld [vmem:[%s1991_s3 + $0xb0] sm:$0xff] }
 0x1dc   :  { %1021 = vmatpush.msra.mxu3 %v978_v55  ;;  %v1084_v55 = vld [vmem:[%s1994_s6 + $0x20] sm:$0xff] }
 0x1de   :  { %1022 = vmatpush.msra.mxu3 %v977_v56  ;;  %v1085_v56 = vld [vmem:[%s1994_s6 + $0x28] sm:$0xff] }
 0x1df   :  { %v669_v10 = vpop.permute.xlu1 %668  ;;  %v895_v11 = vpop.permute.xlu2 %894 }
 0x1e0   :  { %v883_v12 = vpop.permute.xlu0 %882  ;;  %1023 = vmatpush.msra.mxu3 %v976_v57  ;;  %v1082_v57 = vld [vmem:[%s1994_s6 + $0x10] sm:$0xff] }
 0x1e1   :  { %885 = vst.msk [vmem:[#allocation3 + $0x7] sm:$0x1] %vm264_vm4, %v883_v12 }
 0x1e7   :  { %v889_v17 = vpop.permute.xlu1 %888  ;;  %v819_v18 = vpop.permute.xlu2 %818 }
 0x1e8   :  { %891 = vst.msk [vmem:[#allocation3 + $0x7] sm:$0x1] %vm271_vm5, %v889_v17  ;;  %v663_v19 = vpop.permute.xlu0 %662 }
 0x1e9   :  { %897 = vst.msk [vmem:[#allocation3 + $0x7] sm:$0x1] %vm278_vm6, %v895_v11 }
 0x1ea   :  { %665 = vst.msk [vmem:[#allocation3 + $0xc] sm:$0x1] %vm264_vm4, %v663_v19 }
 0x1eb   :  { %671 = vst.msk [vmem:[#allocation3 + $0xc] sm:$0x1] %vm271_vm5, %v669_v10  ;;  %v1254_v10 = vld [vmem:[%s1992_s4] ss:$0 sm:$0xff] }
 0x1ec   :  { %677 = vst.msk [vmem:[#allocation3 + $0xc] sm:$0x1] %vm278_vm6, %v675_v61  ;;  %v975_v61 = vld [vmem:[%s1991_s3 + $0x98] sm:$0xff] }
 0x1ed   :  { %1024 = vmatpush.msra.mxu3 %v975_v61 }
 0x1ef   :  { %v813_v23 = vpop.permute.xlu1 %812  ;;  %v921_v24 = vpop.permute.xlu2 %920  ;;  %1025 = vmatpush.msra.mxu3 %v974_v62 }
 0x1f0   :  { %v807_v25 = vpop.permute.xlu0 %806 }
 0x1f1   :  { %809 = vst.msk [vmem:[#allocation3 + $0x6] sm:$0x1] %vm278_vm6, %v807_v25  ;;  %1026 = vmatpush.msra.mxu3 %v973_v63  ;;  %v1111_v25 = vld [vmem:[%s1994_s6 + $0xf8] sm:$0xff] }
 0x1f2   :  { %815 = vst.msk [vmem:[#allocation3 + $0x6] sm:$0x1] %vm285_vm7, %v813_v23  ;;  %v1113_v23 = vld [vmem:[%s1993_s7] sm:$0xff] }
 0x1f3   :  { %821 = vst.msk [vmem:[#allocation3 + $0x6] sm:$0x1] %vm292_vm8, %v819_v18  ;;  %1027 = vmatpush.msra.mxu3 %v972_v0 }
 0x1f4   :  { %1115 = vst [vmem:[#allocation1] ss:$2 sm:$0xff] %v1113_v23 }
 0x1f7   :  { %v763_v27 = vpop.permute.xlu1 %762  ;;  %v845_v28 = vpop.permute.xlu2 %844 }
 0x1f8   :  { %v833_v29 = vpop.permute.xlu0 %832 }
 0x1f9   :  { %835 = vst.msk [vmem:[#allocation3 + $0xe] sm:$0x1] %vm257_vm3, %v833_v29  ;;  %v1109_v29 = vld [vmem:[%s1994_s6 + $0xe8] sm:$0xff] }
 0x1fb   :  { %v1116_v26 = vld.sshfl [vmem:[#allocation1] sm:$0xff pattern:$0x75316420] }
 0x1fc   :  { %1242 = vmatpush.msk.msrb.mxu2 %vm1122_vm11, %v1116_v26 }
 0x1ff   :  { %v907_v30 = vpop.permute.xlu1 %906  ;;  %v939_v31 = vpop.permute.xlu2 %938 }
 0x200   :  { %v757_v32 = vpop.permute.xlu0 %756 }
 0x201   :  { %759 = vst.msk [vmem:[#allocation3 + $0xd] sm:$0x1] %vm271_vm5, %v757_v32  ;;  %v1104_v32 = vld [vmem:[%s1994_s6 + $0xc0] sm:$0xff] }
 0x202   :  { %765 = vst.msk [vmem:[#allocation3 + $0xd] sm:$0x1] %vm278_vm6, %v763_v27  ;;  %v1117_v27 = vld.sshfl [vmem:[#allocation1 + $0x8] sm:$0xff pattern:$0x75316420] }
 0x203   :  { %1244 = vmatpush.msk.msrb.mxu3 %vm1122_vm11, %v1117_v27 }
 0x207   :  { %v915_v33 = vpop.permute.xlu1 %914  ;;  %v505_v34 = vpop.permute.xlu2 %504 }
 0x208   :  { %917 = vst.msk [vmem:[#allocation3 + $0xf] sm:$0x1] %vm250_vm2, %v915_v33  ;;  %v901_v35 = vpop.permute.xlu0 %900  ;;  %v1105_v33 = vld [vmem:[%s1994_s6 + $0xc8] sm:$0xff] }
 0x209   :  { %923 = vst.msk [vmem:[#allocation3 + $0xf] sm:$0x1] %vm257_vm3, %v921_v24  ;;  %v1110_v24 = vld [vmem:[%s1994_s6 + $0xf0] sm:$0xff] }
 0x20a   :  { %507 = vst.msk [vmem:[#allocation3 + $0xa] sm:$0x1] %vm285_vm7, %v505_v34  ;;  %v1102_v34 = vld [vmem:[%s1994_s6 + $0xb0] sm:$0xff] }
 0x20b   :  { %903 = vst.msk [vmem:[#allocation3 + $0x7] sm:$0x1] %vm285_vm7, %v901_v35  ;;  %v1103_v35 = vld [vmem:[%s1994_s6 + $0xb8] sm:$0xff] }
 0x20c   :  { %909 = vst.msk [vmem:[#allocation3 + $0x7] sm:$0x1] %vm292_vm8, %v907_v30  ;;  %v1106_v30 = vld [vmem:[%s1994_s6 + $0xd0] sm:$0xff] }
 0x20f   :  { %v839_v36 = vpop.permute.xlu1 %838  ;;  %v769_v37 = vpop.permute.xlu2 %768 }
 0x210   :  { %841 = vst.msk [vmem:[#allocation3 + $0xe] sm:$0x1] %vm264_vm4, %v839_v36  ;;  %v927_v38 = vpop.permute.xlu0 %926  ;;  %v1100_v36 = vld [vmem:[%s1994_s6 + $0xa0] sm:$0xff] }
 0x211   :  { %847 = vst.msk [vmem:[#allocation3 + $0xe] sm:$0x1] %vm271_vm5, %v845_v28  ;;  %v1108_v28 = vld [vmem:[%s1994_s6 + $0xe0] sm:$0xff] }
 0x212   :  { %771 = vst.msk [vmem:[#allocation3 + $0xd] sm:$0x1] %vm285_vm7, %v769_v37  ;;  %v1101_v37 = vld [vmem:[%s1994_s6 + $0xa8] sm:$0xff] }
 0x213   :  { %929 = vst.msk [vmem:[#allocation3 + $0xf] sm:$0x1] %vm264_vm4, %v927_v38  ;;  %v954_v41 = vld [vmem:[#allocation3] sm:$0xff] }
 0x214   :  { %1008 = vmatmul.f32.vlgmr.msra.gmra.mxu2 %v954_v41  ;;  %v1098_v38 = vld [vmem:[%s1994_s6 + $0x90] sm:$0xff]  ;;  %v1097_v41 = vld [vmem:[%s1994_s6 + $0x88] sm:$0xff] }
 0x215   :  { %1167 = vmatpush.msra.mxu2 %v1110_v24 }
 0x217   :  { %v933_v44 = vpop.permute.xlu1 %932  ;;  %v335_v50 = vpop.permute.xlu2 %334  ;;  %1168 = vmatpush.msra.mxu2 %v1108_v28 }
 0x218   :  { %935 = vst.msk [vmem:[#allocation3 + $0xf] sm:$0x1] %vm271_vm5, %v933_v44  ;;  %v851_v45 = vpop.permute.xlu0 %850  ;;  %v1092_v44 = vld [vmem:[%s1994_s6 + $0x60] sm:$0xff] }
 0x219   :  { %941 = vst.msk [vmem:[#allocation3 + $0xf] sm:$0x1] %vm278_vm6, %v939_v31  ;;  %v1107_v31 = vld [vmem:[%s1994_s6 + $0xd8] sm:$0xff]  ;;  %1169 = vmatpush.msra.mxu2 %v1106_v30 }
 0x21a   :  { %853 = vst.msk [vmem:[#allocation3 + $0xe] sm:$0x1] %vm278_vm6, %v851_v45  ;;  %v1093_v45 = vld [vmem:[%s1994_s6 + $0x68] sm:$0xff] }
 0x21b   :  { %1170 = vmatpush.msra.mxu2 %v1104_v32 }
 0x21d   :  { %1171 = vmatpush.msra.mxu2 %v1102_v34 }
 0x21f   :  { %v417_v52 = vpop.permute.xlu1 %416  ;;  %v599_v58 = vpop.permute.xlu2 %598  ;;  %1172 = vmatpush.msra.mxu2 %v1100_v36 }
 0x220   :  { %419 = vst.msk [vmem:[#allocation3 + $0x9] sm:$0x1] %vm285_vm7, %v417_v52  ;;  %v329_v53 = vpop.permute.xlu0 %328  ;;  %v1112_v52 = vld [vmem:[%s1995_s5] sm:$0x3] }
 0x221   :  { %331 = vst.msk [vmem:[#allocation3 + $0x8] sm:$0x1] %vm285_vm7, %v329_v53  ;;  %1173 = vmatpush.msra.mxu2 %v1098_v38  ;;  %v1086_v53 = vld [vmem:[%s1994_s6 + $0x30] sm:$0xff] }
 0x222   :  { %337 = vst.msk [vmem:[#allocation3 + $0x8] sm:$0x1] %vm292_vm8, %v335_v50  ;;  %v1088_v50 = vld [vmem:[%s1994_s6 + $0x40] sm:$0xff]  ;;  %1243 = vmatmul.msk.f32.vlgmr.msrb.gmra.mxu2 %vm1118_vm13, %v1112_v52 }
 0x223   :  { %1174 = vmatpush.msra.mxu2 %v1096_v40 }
 0x225   :  { %1175 = vmatpush.msra.mxu2 %v1094_v42 }
 0x227   :  { %v681_v59 = vpop.permute.xlu1 %680  ;;  %v863_v3 = vpop.permute.xlu2 %862  ;;  %1176 = vmatpush.msra.mxu2 %v1092_v44 }
 0x228   :  { %683 = vst.msk [vmem:[#allocation3 + $0xc] sm:$0x1] %vm285_vm7, %v681_v59  ;;  %v593_v60 = vpop.permute.xlu0 %592  ;;  %v1080_v59 = vld [vmem:[%s1994_s6] sm:$0xff] }
 0x229   :  { %595 = vst.msk [vmem:[#allocation3 + $0xb] sm:$0x1] %vm285_vm7, %v593_v60  ;;  %1177 = vmatpush.msra.mxu2 %v1090_v46  ;;  %v1081_v60 = vld [vmem:[%s1994_s6 + $0x8] sm:$0xff] }
 0x22a   :  { %601 = vst.msk [vmem:[#allocation3 + $0xb] sm:$0x1] %vm292_vm8, %v599_v58  ;;  %v1083_v58 = vld [vmem:[%s1994_s6 + $0x18] sm:$0xff] }
 0x22b   :  { %1178 = vmatpush.msra.mxu2 %v1088_v50 }
 0x22d   :  { %1179 = vmatpush.msra.mxu2 %v1086_v53 }
 0x22f   :  { %v945_v1 = vpop.permute.xlu1 %944  ;;  %1180 = vmatpush.msra.mxu2 %v1084_v55 }
 0x230   :  { %947 = vst.msk [vmem:[#allocation3 + $0xf] sm:$0x1] %vm285_vm7, %v945_v1  ;;  %v857_v2 = vpop.permute.xlu0 %856 }
 0x231   :  { %859 = vst.msk [vmem:[#allocation3 + $0xe] sm:$0x1] %vm285_vm7, %v857_v2  ;;  %1181 = vmatpush.msra.mxu2 %v1082_v57 }
 0x232   :  { %865 = vst.msk [vmem:[#allocation3 + $0xe] sm:$0x1] %vm292_vm8, %v863_v3  ;;  %v64_v3 = vld [vmem:[%s1990_s0 + $0xc0] sm:$0x3] }
 0x233   :  { %1182 = vmatpush.msra.mxu2 %v1080_v59  ;;  %154 = vmatmul.f32.gmra.mxu0 %v64_v3 }
 0x237   :  { %v511_v4 = vpop.permute.xlu1 %510 }
 0x238   :  { %513 = vst.msk [vmem:[#allocation3 + $0xa] sm:$0x1] %vm292_vm8, %v511_v4  ;;  %v423_v5 = vpop.permute.xlu0 %422  ;;  %v65_v4 = vld [vmem:[%s1990_s0 + $0xc8] sm:$0x3] }
 0x239   :  { %425 = vst.msk [vmem:[#allocation3 + $0x9] sm:$0x1] %vm292_vm8, %v423_v5  ;;  %210 = vmatmul.f32.gmra.mxu1 %v65_v4 }
 0x23f   :  { %v775_v6 = vpop.permute.xlu1 %774 }
 0x240   :  { %777 = vst.msk [vmem:[#allocation3 + $0xd] sm:$0x1] %vm292_vm8, %v775_v6  ;;  %v687_v7 = vpop.permute.xlu0 %686 }
 0x241   :  { %689 = vst.msk [vmem:[#allocation3 + $0xc] sm:$0x1] %vm292_vm8, %v687_v7  ;;  %v1207_v7 = vld [vmem:[%s1996_s8] sm:$0x3] }
 0x248   :  { %v951_v8 = vpop.permute.xlu0 %950 }
 0x249   :  { %953 = vst.msk [vmem:[#allocation3 + $0xf] sm:$0x1] %vm292_vm8, %v951_v8  ;;  %v1209_v8 = vperm.slane %v1207_v7, 0 }
 0x250   :  { %v955_v9 = vld [vmem:[#allocation3 + $0x8] sm:$0xff] }
 0x251   :  { %1028 = vmatmul.f32.vlgmr.msra.gmra.mxu3 %v955_v9  ;;  %v1210_v9 = vperm.slane %v1207_v7, 1 }
 0x252   :  { %1187 = vmatpush.msra.mxu3 %v1111_v25  ;;  %v16_v25 = vstv %s1998_s10 }
 0x253   :  { %17 = vst [vmem:[#allocation6] sm:$0x1] %v16_v25 }
 0x254   :  { %1188 = vmatpush.msra.mxu3 %v1109_v29 }
 0x256   :  { %1189 = vmatpush.msra.mxu3 %v1107_v31 }
 0x258   :  { %1190 = vmatpush.msra.mxu3 %v1105_v33 }
 0x259   :  { %1245 = vmatmul.msk.f32.vlgmr.msrb.gmra.mxu3 %vm1118_vm13, %v1112_v52 }
 0x25a   :  { %1191 = vmatpush.msra.mxu3 %v1103_v35  ;;  %v1255_v28 = vld [vmem:[#allocation6] ss:$0 sm:$0xff] }
 0x25c   :  { %1192 = vmatpush.msra.mxu3 %v1101_v37 }
 0x25e   :  { %1193 = vmatpush.msra.mxu3 %v1099_v39 }
 0x260   :  { %1194 = vmatpush.msra.mxu3 %v1097_v41 }
 0x262   :  { %1195 = vmatpush.msra.mxu3 %v1095_v43 }
 0x264   :  { %1196 = vmatpush.msra.mxu3 %v1093_v45 }
 0x266   :  { %1197 = vmatpush.msra.mxu3 %v1091_v47 }
 0x268   :  { %1198 = vmatpush.msra.mxu3 %v1089_v51 }
 0x26a   :  { %1199 = vmatpush.msra.mxu3 %v1087_v54 }
 0x26c   :  { %1200 = vmatpush.msra.mxu3 %v1085_v56 }
 0x26e   :  { %1201 = vmatpush.msra.mxu3 %v1083_v58 }
 0x270   :  { %1202 = vmatpush.msra.mxu3 %v1081_v60 }
 0x297   :  { %v1009_v11 = vpop.f32.mrf.mxu2 }
 0x298   :  { %v1010_v12 = vadd.f32 %v1254_v10, %v1009_v11 }
 0x2a5   :  { %v1144_v5 = vpop.f32.mrf.mxu2 }
 0x2b0   :  { %v155_v26 = vpop.f32.mrf.mxu0 }
 0x2b6   :  { %v211_v27 = vpop.f32.mrf.mxu1 }
 0x2d4   :  { %v1029_v13 = vpop.f32.mrf.mxu3 }
 0x2d5   :  { %v1030_v14 = vadd.f32 %v1029_v13, %v1010_v12  ;;  %v1217_v12 = vld [vmem:[%s1997_s9] sm:$0x3] }
 0x2d7   :  { %v1032_v15 = vmax.f32 %v1030_v14, 0.0 }
 0x2d9   :  { %1034 = vst.msk [vmem:[#allocation4] sm:$0xff] %vm1033_vm9, %v1032_v15 }
 0x2dc   :  { %v1164_v6 = vpop.f32.mrf.mxu3 }
 0x2e0   :  { %v1061_v16 = vld [vmem:[#allocation4 + $0x5] sm:$0x1]  ;;  %v1045_v17 = vld [vmem:[#allocation4 + $0x2] sm:$0x1]  ;;  %v1038_v18 = vld [vmem:[#allocation4 + $0x1] sm:$0x1] }
 0x2e1   :  { %1063 = vrot.lane.b32.xlu2 %v1061_v16, %s1258_s22  ;;  %1047 = vrot.lane.b32.xlu0 %v1045_v17, %s1260_s24  ;;  %v1059_v19 = vld [vmem:[#allocation4 + $0x4] sm:$0x1]  ;;  %v1035_v48 = vld [vmem:[#allocation4] sm:$0x1]  ;;  %v1052_v20 = vld [vmem:[#allocation4 + $0x3] sm:$0x1] }
 0x2e2   :  { %1040 = vrot.lane.b32.xlu1 %v1038_v18, %s1258_s22  ;;  %1060 = vst.msk [vmem:[#allocation5 + $0x1] sm:$0x1] %vm1036_vm10, %v1059_v19  ;;  %v1073_v21 = vld [vmem:[#allocation4 + $0x7] sm:$0x1]  ;;  %v1067_v22 = vld [vmem:[#allocation4 + $0x6] sm:$0x1] }
 0x2e3   :  { %1037 = vst.msk [vmem:[#allocation5] sm:$0x1] %vm1036_vm10, %v1035_v48  ;;  %v1219_v17 = vperm.slane %v1217_v12, 0  ;;  %v1220_v18 = vperm.slane %v1217_v12, 1 }
 0x2e9   :  { %1054 = vrot.lane.b32.xlu2 %v1052_v20, %s1261_s25  ;;  %1075 = vrot.lane.b32.xlu0 %v1073_v21, %s1261_s25 }
 0x2ea   :  { %1069 = vrot.lane.b32.xlu1 %v1067_v22, %s1260_s24 }
 0x33b   :  { %v1064_v49 = vpop.permute.xlu2 %1063 }
 0x33c   :  { %1066 = vst.msk [vmem:[#allocation5 + $0x1] sm:$0x1] %vm1043_vm12, %v1064_v49 }
 0x343   :  { %v1055_v63 = vpop.permute.xlu2 %1054 }
 0x353   :  { %v1048_v61 = vpop.permute.xlu0 %1047 }
 0x354   :  { %v1041_v62 = vpop.permute.xlu1 %1040 }
 0x355   :  { %1044 = vst.msk [vmem:[#allocation5] sm:$0x1] %vm1043_vm12, %v1041_v62 }
 0x356   :  { %1051 = vst.msk [vmem:[#allocation5] sm:$0x1] %vm1050_vm14, %v1048_v61 }
 0x357   :  { %1058 = vst.msk [vmem:[#allocation5] sm:$0x1] %vm1057_vm15, %v1055_v63 }
 0x35b   :  { %v1076_v0 = vpop.permute.xlu0 %1075 }
 0x35c   :  { %v1070_v1 = vpop.permute.xlu1 %1069 }
 0x35d   :  { %1072 = vst.msk [vmem:[#allocation5 + $0x1] sm:$0x1] %vm1050_vm14, %v1070_v1 }
 0x35e   :  { %1078 = vst.msk [vmem:[#allocation5 + $0x1] sm:$0x1] %vm1057_vm15, %v1076_v0 }
 0x365   :  { %v1079_v2 = vld [vmem:[#allocation5] sm:$0x3] }
 0x366   :  { %1183 = vmatmul.f32.vlgmr.msra.gmra.mxu2 %v1079_v2  ;;  %1203 = vmatmul.f32.vlgmr.msra.gmra.mxu3 %v1079_v2 }
 0x3e9   :  { %v1184_v10 = vpop.f32.mrf.mxu2  ;;  %v1204_v11 = vpop.f32.mrf.mxu3 }
 0x3ea   :  { %v1185_v13 = vadd.f32 %v1184_v10, %v1144_v5  ;;  %v1205_v14 = vadd.f32 %v1204_v11, %v1164_v6 }
 0x3ec   :  { %v1213_v15 = vadd.f32 %v1209_v8, %v1185_v13  ;;  %v1214_v16 = vadd.f32 %v1210_v9, %v1205_v14 }
 0x3ee   :  { %v1215_v19 = vmax.f32 %v1213_v15, 0.0  ;;  %v1216_v48 = vmax.f32 %v1214_v16, 0.0 }
 0x3f0   :  { %v1223_v20 = vmul.f32 %v1219_v17, %v1215_v19  ;;  %v1224_v21 = vmul.f32 %v1220_v18, %v1216_v48 }
 0x3f2   :  { %v1226_v22 = vsel %vm1225_vm0, %v1223_v20, 0.0  ;;  %v1227_v23 = vsel %vm1225_vm0, %v1224_v21, 0.0 }
 0x3f3   :  { %v1228_v24 = vadd.f32 %v1227_v23, %v1226_v22 }
 0x3f5   :  { %1229 = vadd.xlane.f32.xlu1 %v1228_v24 }
 0x468   :  { %v1230_v29 = vpop.xlane.xlu1 %1229 }
 0x469   :  { %v1235_v30 = vadd.f32 %v1255_v28, %v1230_v29 }
 0x46b   :  { %1237 = vst.msk [vmem:[%s1999_s11] sm:$0x3] %vm1236_vm1, %v1235_v30 }

</bundles_post_ra>
